<compile_context>
chip_gen: v7x
topology: tpu7x:2x2x1
jax: 0.10.0
libtpu: 0.0.40
codegen_flags: <defaults>
</compile_context>

<pallas_src>
import jax
import jax.numpy as jnp
import numpy as np
from jax import lax
from jax.experimental import pallas as pl
from jax.experimental.pallas import tpu as pltpu

KH, KW = 3, 3  # kernel_size=(3,3), padding=(1,1), stride=(1,1)


def _resblock_kernel(x_ref, w1_ref, w2_ref, b1_ref, b2_ref, o_ref, pad_ref):
    """Fused ResBlock for one batch element.

    x_ref  : (1, H, W, C)          input (unpadded; also the identity branch)
    w1_ref : (KH, KW, C, C)        conv1 weights (BN1 scale folded), HWIO
    w2_ref : (KH, KW, C, C)        conv2 weights (BN2 scale folded), HWIO
    b1/b2  : (1, C) float32        folded BatchNorm biases
    o_ref  : (1, H, W, C)
    pad_ref: VMEM scratch (H+2, W+2, C) f32 — reused as the zero-padded
             source for BOTH convolutions (only its interior is rewritten).
    """
    f32 = jnp.float32
    Hp, Wp, C = pad_ref.shape
    H, W = Hp - 2, Wp - 2
    cdt = w1_ref.dtype  # MXU operand dtype (f32 or bf16); accumulation is f32

    # --- zero only the 1-pixel halo border (interior is fully rewritten
    # below).  Cheap strips; done every step so the kernel is correct even
    # when the "parallel" batch axis is split across TensorCores (each core
    # has its own scratch and may never see program_id == 0).
    pad_ref[0:1, :, :] = jnp.zeros((1, Wp, C), f32)
    pad_ref[Hp - 1:Hp, :, :] = jnp.zeros((1, Wp, C), f32)
    pad_ref[:, 0:1, :] = jnp.zeros((Hp, 1, C), f32)
    pad_ref[:, Wp - 1:Wp, :] = jnp.zeros((Hp, 1, C), f32)

    # Single f32 copy of the input; reused for conv1 source and identity.
    xf = x_ref[0].astype(f32)                      # (H, W, C)
    pad_ref[1:1 + H, 1:1 + W, :] = xf              # conv1 'same' padding

    def conv3x3_bias(w_ref, b_ref):
        """3x3 same conv of pad_ref interior as 9 accumulated matmuls,
        starting from the (folded BN) bias."""
        src = pad_ref[...]                         # (Hp, Wp, C), f32
        cout = w_ref.shape[-1]
        acc = jnp.broadcast_to(b_ref[0], (H * W, cout)).astype(f32)
        for kh in range(KH):
            for kw in range(KW):
                patch = src[kh:kh + H, kw:kw + W, :].reshape(H * W, C)
                acc = acc + jnp.dot(patch.astype(cdt), w_ref[kh, kw],
                                    preferred_element_type=f32)
        return acc

    # ---- conv1 (scale folded) -> +bias1 -> relu  (all accumulation in f32)
    out1 = jnp.maximum(conv3x3_bias(w1_ref, b1_ref), 0.0)

    # ---- reuse the same padded scratch for conv2's input (border still zero)
    pad_ref[1:1 + H, 1:1 + W, :] = out1.reshape(H, W, C)

    # ---- conv2 (scale folded) -> +bias2 -> +identity -> relu
    out2 = conv3x3_bias(w2_ref, b2_ref)
    res = jnp.maximum(out2 + xf.reshape(H * W, C), 0.0)

    o_ref[0] = res.reshape(H, W, C).astype(o_ref.dtype)


def resblock_pallas(x_nhwc, w1f, b1, w2f, b2, *, compute_dtype=None):
    """x_nhwc: (N,H,W,C); w*f: (KH,KW,Cin,Cout) HWIO with BN scale folded in;
    b*: (C,) folded BN bias."""
    N, H, W, Cin = x_nhwc.shape
    kh, kw, _, Cout = w1f.shape
    assert (kh, kw) == (KH, KW)
    assert Cin == Cout, "downsample=None requires Cin == Cout"
    Hp, Wp = H + 2, W + 2

    # MXU operand dtype (bf16 ~2x MXU throughput on v6e/v7x); f32 accumulate.
    cdt = jnp.dtype(compute_dtype) if compute_dtype is not None else x_nhwc.dtype
    w1c = w1f.astype(cdt)
    w2c = w2f.astype(cdt)

    # Bias / ReLU math stays f32 everywhere.
    b1c = b1.astype(jnp.float32).reshape(1, Cout)
    b2c = b2.astype(jnp.float32).reshape(1, Cout)

    return pl.pallas_call(
        _resblock_kernel,
        out_shape=jax.ShapeDtypeStruct((N, H, W, Cout), x_nhwc.dtype),
        grid_spec=pltpu.PrefetchScalarGridSpec(
            num_scalar_prefetch=0,
            grid=(N,),
            in_specs=[
                pl.BlockSpec((1, H, W, Cin), lambda n: (n, 0, 0, 0)),
                pl.BlockSpec((KH, KW, Cin, Cout), lambda n: (0, 0, 0, 0)),
                pl.BlockSpec((KH, KW, Cout, Cout), lambda n: (0, 0, 0, 0)),
                pl.BlockSpec((1, Cout), lambda n: (0, 0)),
                pl.BlockSpec((1, Cout), lambda n: (0, 0)),
            ],
            out_specs=pl.BlockSpec((1, H, W, Cout), lambda n: (n, 0, 0, 0)),
            scratch_shapes=[pltpu.VMEM((Hp, Wp, Cout), jnp.float32)],
        ),
        compiler_params=pltpu.CompilerParams(
            dimension_semantics=("parallel",),      # batch elems independent
            vmem_limit_bytes=32 * 1024 * 1024,
        ),
    )(x_nhwc, w1c, w2c, b1c, b2c)


def resblock_reference(x_nhwc, w1f, b1, w2f, b2, compute_dtype=jnp.float32):
    """Pure-JAX reference (same NHWC math, same operand-rounding points)."""
    f32 = jnp.float32
    q = lambda a: a.astype(compute_dtype).astype(f32)
    dn = ("NHWC", "HWIO", "NHWC")
    out = lax.conv_general_dilated(q(x_nhwc), q(w1f), (1, 1), "SAME",
                                   dimension_numbers=dn,
                                   precision=lax.Precision.HIGHEST) + b1
    out = jnp.maximum(out, 0.0)
    out = lax.conv_general_dilated(q(out), q(w2f), (1, 1), "SAME",
                                   dimension_numbers=dn,
                                   precision=lax.Precision.HIGHEST) + b2
    return jnp.maximum(out + x_nhwc.astype(f32), 0.0)


if __name__ == "__main__":
    # PyTorch-convention input: NCHW
    N, C, H, W = 2, 4, 16, 16
    key = jax.random.PRNGKey(0)
    kx, k1, k2, kg1, kb1, km1, kv1, kg2, kb2, km2, kv2 = jax.random.split(key, 11)

    x_nchw = jax.random.normal(kx, (N, C, H, W), jnp.float32)

    # Conv weights: PyTorch layout (Cout, Cin, KH, KW) -> HWIO for the kernel
    w1_oihw = jax.random.normal(k1, (C, C, KH, KW), jnp.float32) * 0.2
    w2_oihw = jax.random.normal(k2, (C, C, KH, KW), jnp.float32) * 0.2
    w1 = jnp.transpose(w1_oihw, (2, 3, 1, 0))  # (KH, KW, Cin, Cout)
    w2 = jnp.transpose(w2_oihw, (2, 3, 1, 0))

    # BatchNorm (inference form): fold (gamma, beta, running_mean, running_var)
    eps = 1e-5
    gamma1 = 1.0 + 0.1 * jax.random.normal(kg1, (C,), jnp.float32)
    beta1 = 0.1 * jax.random.normal(kb1, (C,), jnp.float32)
    mean1 = 0.1 * jax.random.normal(km1, (C,), jnp.float32)
    var1 = jnp.abs(jax.random.normal(kv1, (C,), jnp.float32)) + 0.5
    gamma2 = 1.0 + 0.1 * jax.random.normal(kg2, (C,), jnp.float32)
    beta2 = 0.1 * jax.random.normal(kb2, (C,), jnp.float32)
    mean2 = 0.1 * jax.random.normal(km2, (C,), jnp.float32)
    var2 = jnp.abs(jax.random.normal(kv2, (C,), jnp.float32)) + 0.5

    scale1 = gamma1 / jnp.sqrt(var1 + eps)
    bias1 = beta1 - mean1 * scale1
    scale2 = gamma2 / jnp.sqrt(var2 + eps)
    bias2 = beta2 - mean2 * scale2

    # Fold BN scales into the conv weights (per output channel), in f32.
    w1f = w1 * scale1.reshape(1, 1, 1, C)
    w2f = w2 * scale2.reshape(1, 1, 1, C)

    # NCHW -> NHWC for the kernel
    x_nhwc = jnp.transpose(x_nchw, (0, 2, 3, 1))

    # --- f32 MXU operands: tight check against HIGHEST-precision reference
    out_f32 = jax.block_until_ready(
        resblock_pallas(x_nhwc, w1f, bias1, w2f, bias2))
    ref_f32 = resblock_reference(x_nhwc, w1f, bias1, w2f, bias2, jnp.float32)
    np.testing.assert_allclose(np.asarray(out_f32), np.asarray(ref_f32),
                               rtol=1e-3, atol=1e-3)

    # --- bf16 MXU operands (f32 accumulation): check against a reference
    # that rounds the matmul operands at the same points.
    out_bf16 = jax.block_until_ready(
        resblock_pallas(x_nhwc, w1f, bias1, w2f, bias2,
                        compute_dtype=jnp.bfloat16))
    ref_bf16 = resblock_reference(x_nhwc, w1f, bias1, w2f, bias2,
                                  jnp.bfloat16)
    np.testing.assert_allclose(np.asarray(out_bf16), np.asarray(ref_bf16),
                               rtol=2e-2, atol=2e-2)

    out_nchw = jnp.transpose(out_f32, (0, 3, 1, 2))  # back to PyTorch layout
    assert out_nchw.shape == (N, C, H, W)
    print("KERNEL_OK")
</pallas_src>

<mosaic_0001>
module attributes {stable_mosaic.version = 11 : i64} {
  func.func @_resblock_kernel(%arg0: i32, %arg1: memref<1x16x16x4xf32, #tpu.memory_space<vmem>>, %arg2: memref<3x3x4x4xf32, #tpu.memory_space<vmem>>, %arg3: memref<3x3x4x4xf32, #tpu.memory_space<vmem>>, %arg4: memref<1x4xf32, #tpu.memory_space<vmem>>, %arg5: memref<1x4xf32, #tpu.memory_space<vmem>>, %arg6: memref<1x16x16x4xf32, #tpu.memory_space<vmem>>, %arg7: memref<18x18x4xf32, #tpu.memory_space<vmem>>) attributes {dimension_semantics = [#tpu.dimension_semantics<parallel>], iteration_bounds = array<i64: 2>, scalar_prefetch = 0 : i64, scratch_operands = 1 : i64, tpu.core_type = #tpu.core_type<tc>, window_params = [{transform_indices = @transform_0, window_bounds = array<i64: 1, 16, 16, 4>}, {pipeline_mode = #tpu.pipeline_mode<synchronous>, transform_indices = @transform_1, window_bounds = array<i64: 3, 3, 4, 4>}, {pipeline_mode = #tpu.pipeline_mode<synchronous>, transform_indices = @transform_2, window_bounds = array<i64: 3, 3, 4, 4>}, {pipeline_mode = #tpu.pipeline_mode<synchronous>, transform_indices = @transform_3, window_bounds = array<i64: 1, 4>}, {pipeline_mode = #tpu.pipeline_mode<synchronous>, transform_indices = @transform_4, window_bounds = array<i64: 1, 4>}, {transform_indices = @transform_5, window_bounds = array<i64: 1, 16, 16, 4>}]} {
    %cst = arith.constant 0.000000e+00 : f32
    %0 = vector.broadcast %cst : f32 to vector<1x18x4xf32>
    %c0 = arith.constant 0 : index
    %c0_0 = arith.constant 0 : index
    %c0_1 = arith.constant 0 : index
    %1 = vector.load %arg7[%c0, %c0_0, %c0_1] : memref<18x18x4xf32, #tpu.memory_space<vmem>>, vector<1x18x4xf32>
    tpu.vector_store %arg7[%c0, %c0_0, %c0_1], %0 {strides = array<i32>} : memref<18x18x4xf32, #tpu.memory_space<vmem>>, vector<1x18x4xf32>,
    %cst_2 = arith.constant 0.000000e+00 : f32
    %2 = vector.broadcast %cst_2 : f32 to vector<1x18x4xf32>
    %c17 = arith.constant 17 : index
    %c0_3 = arith.constant 0 : index
    %c0_4 = arith.constant 0 : index
    %3 = vector.load %arg7[%c17, %c0_3, %c0_4] : memref<18x18x4xf32, #tpu.memory_space<vmem>>, vector<1x18x4xf32>
    tpu.vector_store %arg7[%c17, %c0_3, %c0_4], %2 {strides = array<i32>} : memref<18x18x4xf32, #tpu.memory_space<vmem>>, vector<1x18x4xf32>,
    %cst_5 = arith.constant 0.000000e+00 : f32
    %4 = vector.broadcast %cst_5 : f32 to vector<18x1x4xf32>
    %c0_6 = arith.constant 0 : index
    %c0_7 = arith.constant 0 : index
    %c0_8 = arith.constant 0 : index
    %5 = vector.load %arg7[%c0_6, %c0_7, %c0_8] : memref<18x18x4xf32, #tpu.memory_space<vmem>>, vector<18x1x4xf32>
    tpu.vector_store %arg7[%c0_6, %c0_7, %c0_8], %4 {strides = array<i32>} : memref<18x18x4xf32, #tpu.memory_space<vmem>>, vector<18x1x4xf32>,
    %cst_9 = arith.constant 0.000000e+00 : f32
    %6 = vector.broadcast %cst_9 : f32 to vector<18x1x4xf32>
    %c0_10 = arith.constant 0 : index
    %c17_11 = arith.constant 17 : index
    %c0_12 = arith.constant 0 : index
    %7 = vector.load %arg7[%c0_10, %c17_11, %c0_12] : memref<18x18x4xf32, #tpu.memory_space<vmem>>, vector<18x1x4xf32>
    tpu.vector_store %arg7[%c0_10, %c17_11, %c0_12], %6 {strides = array<i32>} : memref<18x18x4xf32, #tpu.memory_space<vmem>>, vector<18x1x4xf32>,
    %c0_13 = arith.constant 0 : index
    %c0_14 = arith.constant 0 : index
    %c0_15 = arith.constant 0 : index
    %c0_16 = arith.constant 0 : index
    %8 = vector.load %arg1[%c0_13, %c0_14, %c0_15, %c0_16] : memref<1x16x16x4xf32, #tpu.memory_space<vmem>>, vector<1x16x16x4xf32>
    %9 = vector.shape_cast %8 : vector<1x16x16x4xf32> to vector<16x16x4xf32>
    %c1 = arith.constant 1 : index
    %c1_17 = arith.constant 1 : index
    %c0_18 = arith.constant 0 : index
    %10 = vector.load %arg7[%c1, %c1_17, %c0_18] : memref<18x18x4xf32, #tpu.memory_space<vmem>>, vector<16x16x4xf32>
    tpu.vector_store %arg7[%c1, %c1_17, %c0_18], %9 {strides = array<i32>} : memref<18x18x4xf32, #tpu.memory_space<vmem>>, vector<16x16x4xf32>,
    %c0_19 = arith.constant 0 : index
    %c0_20 = arith.constant 0 : index
    %c0_21 = arith.constant 0 : index
    %11 = vector.load %arg7[%c0_19, %c0_20, %c0_21] : memref<18x18x4xf32, #tpu.memory_space<vmem>>, vector<18x18x4xf32>
    %c0_22 = arith.constant 0 : index
    %c0_23 = arith.constant 0 : index
    %12 = vector.load %arg4[%c0_22, %c0_23] : memref<1x4xf32, #tpu.memory_space<vmem>>, vector<1x4xf32>
    %13 = vector.shape_cast %12 : vector<1x4xf32> to vector<4xf32>
    %14 = vector.shape_cast %13 : vector<4xf32> to vector<1x4xf32>
    %15 = vector.broadcast %14 : vector<1x4xf32> to vector<256x4xf32>
    %16 = vector.extract_strided_slice %11 {offsets = [0, 0, 0], sizes = [16, 16, 4], strides = [1, 1, 1]} : vector<18x18x4xf32> to vector<16x16x4xf32>
    %17 = vector.shape_cast %16 : vector<16x16x4xf32> to vector<256x4xf32>
    %c0_24 = arith.constant 0 : index
    %c0_25 = arith.constant 0 : index
    %c0_26 = arith.constant 0 : index
    %c0_27 = arith.constant 0 : index
    %18 = vector.load %arg2[%c0_24, %c0_25, %c0_26, %c0_27] : memref<3x3x4x4xf32, #tpu.memory_space<vmem>>, vector<1x1x4x4xf32>
    %19 = vector.shape_cast %18 : vector<1x1x4x4xf32> to vector<4x4xf32>
    %cst_28 = arith.constant dense<0.000000e+00> : vector<256x4xf32>
    %20 = tpu.matmul %17, %19, %cst_28 {dimension_numbers = #tpu.dot_dimension_numbers<[1], [0], [0], [1], [0, 0, 1, 1], [], []>} : vector<256x4xf32>, vector<4x4xf32>, vector<256x4xf32> -> vector<256x4xf32>
    %21 = arith.addf %15, %20 : vector<256x4xf32>
    %22 = vector.extract_strided_slice %11 {offsets = [0, 1, 0], sizes = [16, 16, 4], strides = [1, 1, 1]} : vector<18x18x4xf32> to vector<16x16x4xf32>
    %23 = vector.shape_cast %22 : vector<16x16x4xf32> to vector<256x4xf32>
    %c0_29 = arith.constant 0 : index
    %c1_30 = arith.constant 1 : index
    %c0_31 = arith.constant 0 : index
    %c0_32 = arith.constant 0 : index
    %24 = vector.load %arg2[%c0_29, %c1_30, %c0_31, %c0_32] : memref<3x3x4x4xf32, #tpu.memory_space<vmem>>, vector<1x1x4x4xf32>
    %25 = vector.shape_cast %24 : vector<1x1x4x4xf32> to vector<4x4xf32>
    %cst_33 = arith.constant dense<0.000000e+00> : vector<256x4xf32>
    %26 = tpu.matmul %23, %25, %cst_33 {dimension_numbers = #tpu.dot_dimension_numbers<[1], [0], [0], [1], [0, 0, 1, 1], [], []>} : vector<256x4xf32>, vector<4x4xf32>, vector<256x4xf32> -> vector<256x4xf32>
    %27 = arith.addf %21, %26 : vector<256x4xf32>
    %28 = vector.extract_strided_slice %11 {offsets = [0, 2, 0], sizes = [16, 16, 4], strides = [1, 1, 1]} : vector<18x18x4xf32> to vector<16x16x4xf32>
    %29 = vector.shape_cast %28 : vector<16x16x4xf32> to vector<256x4xf32>
    %c0_34 = arith.constant 0 : index
    %c2 = arith.constant 2 : index
    %c0_35 = arith.constant 0 : index
    %c0_36 = arith.constant 0 : index
    %30 = vector.load %arg2[%c0_34, %c2, %c0_35, %c0_36] : memref<3x3x4x4xf32, #tpu.memory_space<vmem>>, vector<1x1x4x4xf32>
    %31 = vector.shape_cast %30 : vector<1x1x4x4xf32> to vector<4x4xf32>
    %cst_37 = arith.constant dense<0.000000e+00> : vector<256x4xf32>
    %32 = tpu.matmul %29, %31, %cst_37 {dimension_numbers = #tpu.dot_dimension_numbers<[1], [0], [0], [1], [0, 0, 1, 1], [], []>} : vector<256x4xf32>, vector<4x4xf32>, vector<256x4xf32> -> vector<256x4xf32>
    %33 = arith.addf %27, %32 : vector<256x4xf32>
    %34 = vector.extract_strided_slice %11 {offsets = [1, 0, 0], sizes = [16, 16, 4], strides = [1, 1, 1]} : vector<18x18x4xf32> to vector<16x16x4xf32>
    %35 = vector.shape_cast %34 : vector<16x16x4xf32> to vector<256x4xf32>
    %c1_38 = arith.constant 1 : index
    %c0_39 = arith.constant 0 : index
    %c0_40 = arith.constant 0 : index
    %c0_41 = arith.constant 0 : index
    %36 = vector.load %arg2[%c1_38, %c0_39, %c0_40, %c0_41] : memref<3x3x4x4xf32, #tpu.memory_space<vmem>>, vector<1x1x4x4xf32>
    %37 = vector.shape_cast %36 : vector<1x1x4x4xf32> to vector<4x4xf32>
    %cst_42 = arith.constant dense<0.000000e+00> : vector<256x4xf32>
    %38 = tpu.matmul %35, %37, %cst_42 {dimension_numbers = #tpu.dot_dimension_numbers<[1], [0], [0], [1], [0, 0, 1, 1], [], []>} : vector<256x4xf32>, vector<4x4xf32>, vector<256x4xf32> -> vector<256x4xf32>
    %39 = arith.addf %33, %38 : vector<256x4xf32>
    %40 = vector.extract_strided_slice %11 {offsets = [1, 1, 0], sizes = [16, 16, 4], strides = [1, 1, 1]} : vector<18x18x4xf32> to vector<16x16x4xf32>
    %41 = vector.shape_cast %40 : vector<16x16x4xf32> to vector<256x4xf32>
    %c1_43 = arith.constant 1 : index
    %c1_44 = arith.constant 1 : index
    %c0_45 = arith.constant 0 : index
    %c0_46 = arith.constant 0 : index
    %42 = vector.load %arg2[%c1_43, %c1_44, %c0_45, %c0_46] : memref<3x3x4x4xf32, #tpu.memory_space<vmem>>, vector<1x1x4x4xf32>
    %43 = vector.shape_cast %42 : vector<1x1x4x4xf32> to vector<4x4xf32>
    %cst_47 = arith.constant dense<0.000000e+00> : vector<256x4xf32>
    %44 = tpu.matmul %41, %43, %cst_47 {dimension_numbers = #tpu.dot_dimension_numbers<[1], [0], [0], [1], [0, 0, 1, 1], [], []>} : vector<256x4xf32>, vector<4x4xf32>, vector<256x4xf32> -> vector<256x4xf32>
    %45 = arith.addf %39, %44 : vector<256x4xf32>
    %46 = vector.extract_strided_slice %11 {offsets = [1, 2, 0], sizes = [16, 16, 4], strides = [1, 1, 1]} : vector<18x18x4xf32> to vector<16x16x4xf32>
    %47 = vector.shape_cast %46 : vector<16x16x4xf32> to vector<256x4xf32>
    %c1_48 = arith.constant 1 : index
    %c2_49 = arith.constant 2 : index
    %c0_50 = arith.constant 0 : index
    %c0_51 = arith.constant 0 : index
    %48 = vector.load %arg2[%c1_48, %c2_49, %c0_50, %c0_51] : memref<3x3x4x4xf32, #tpu.memory_space<vmem>>, vector<1x1x4x4xf32>
    %49 = vector.shape_cast %48 : vector<1x1x4x4xf32> to vector<4x4xf32>
    %cst_52 = arith.constant dense<0.000000e+00> : vector<256x4xf32>
    %50 = tpu.matmul %47, %49, %cst_52 {dimension_numbers = #tpu.dot_dimension_numbers<[1], [0], [0], [1], [0, 0, 1, 1], [], []>} : vector<256x4xf32>, vector<4x4xf32>, vector<256x4xf32> -> vector<256x4xf32>
    %51 = arith.addf %45, %50 : vector<256x4xf32>
    %52 = vector.extract_strided_slice %11 {offsets = [2, 0, 0], sizes = [16, 16, 4], strides = [1, 1, 1]} : vector<18x18x4xf32> to vector<16x16x4xf32>
    %53 = vector.shape_cast %52 : vector<16x16x4xf32> to vector<256x4xf32>
    %c2_53 = arith.constant 2 : index
    %c0_54 = arith.constant 0 : index
    %c0_55 = arith.constant 0 : index
    %c0_56 = arith.constant 0 : index
    %54 = vector.load %arg2[%c2_53, %c0_54, %c0_55, %c0_56] : memref<3x3x4x4xf32, #tpu.memory_space<vmem>>, vector<1x1x4x4xf32>
    %55 = vector.shape_cast %54 : vector<1x1x4x4xf32> to vector<4x4xf32>
    %cst_57 = arith.constant dense<0.000000e+00> : vector<256x4xf32>
    %56 = tpu.matmul %53, %55, %cst_57 {dimension_numbers = #tpu.dot_dimension_numbers<[1], [0], [0], [1], [0, 0, 1, 1], [], []>} : vector<256x4xf32>, vector<4x4xf32>, vector<256x4xf32> -> vector<256x4xf32>
    %57 = arith.addf %51, %56 : vector<256x4xf32>
    %58 = vector.extract_strided_slice %11 {offsets = [2, 1, 0], sizes = [16, 16, 4], strides = [1, 1, 1]} : vector<18x18x4xf32> to vector<16x16x4xf32>
    %59 = vector.shape_cast %58 : vector<16x16x4xf32> to vector<256x4xf32>
    %c2_58 = arith.constant 2 : index
    %c1_59 = arith.constant 1 : index
    %c0_60 = arith.constant 0 : index
    %c0_61 = arith.constant 0 : index
    %60 = vector.load %arg2[%c2_58, %c1_59, %c0_60, %c0_61] : memref<3x3x4x4xf32, #tpu.memory_space<vmem>>, vector<1x1x4x4xf32>
    %61 = vector.shape_cast %60 : vector<1x1x4x4xf32> to vector<4x4xf32>
    %cst_62 = arith.constant dense<0.000000e+00> : vector<256x4xf32>
    %62 = tpu.matmul %59, %61, %cst_62 {dimension_numbers = #tpu.dot_dimension_numbers<[1], [0], [0], [1], [0, 0, 1, 1], [], []>} : vector<256x4xf32>, vector<4x4xf32>, vector<256x4xf32> -> vector<256x4xf32>
    %63 = arith.addf %57, %62 : vector<256x4xf32>
    %64 = vector.extract_strided_slice %11 {offsets = [2, 2, 0], sizes = [16, 16, 4], strides = [1, 1, 1]} : vector<18x18x4xf32> to vector<16x16x4xf32>
    %65 = vector.shape_cast %64 : vector<16x16x4xf32> to vector<256x4xf32>
    %c2_63 = arith.constant 2 : index
    %c2_64 = arith.constant 2 : index
    %c0_65 = arith.constant 0 : index
    %c0_66 = arith.constant 0 : index
    %66 = vector.load %arg2[%c2_63, %c2_64, %c0_65, %c0_66] : memref<3x3x4x4xf32, #tpu.memory_space<vmem>>, vector<1x1x4x4xf32>
    %67 = vector.shape_cast %66 : vector<1x1x4x4xf32> to vector<4x4xf32>
    %cst_67 = arith.constant dense<0.000000e+00> : vector<256x4xf32>
    %68 = tpu.matmul %65, %67, %cst_67 {dimension_numbers = #tpu.dot_dimension_numbers<[1], [0], [0], [1], [0, 0, 1, 1], [], []>} : vector<256x4xf32>, vector<4x4xf32>, vector<256x4xf32> -> vector<256x4xf32>
    %69 = arith.addf %63, %68 : vector<256x4xf32>
    %cst_68 = arith.constant 0.000000e+00 : f32
    %70 = vector.broadcast %cst_68 : f32 to vector<256x4xf32>
    %71 = arith.maximumf %69, %70 : vector<256x4xf32>
    %72 = vector.shape_cast %71 : vector<256x4xf32> to vector<16x16x4xf32>
    %c1_69 = arith.constant 1 : index
    %c1_70 = arith.constant 1 : index
    %c0_71 = arith.constant 0 : index
    %73 = vector.load %arg7[%c1_69, %c1_70, %c0_71] : memref<18x18x4xf32, #tpu.memory_space<vmem>>, vector<16x16x4xf32>
    tpu.vector_store %arg7[%c1_69, %c1_70, %c0_71], %72 {strides = array<i32>} : memref<18x18x4xf32, #tpu.memory_space<vmem>>, vector<16x16x4xf32>,
    %c0_72 = arith.constant 0 : index
    %c0_73 = arith.constant 0 : index
    %c0_74 = arith.constant 0 : index
    %74 = vector.load %arg7[%c0_72, %c0_73, %c0_74] : memref<18x18x4xf32, #tpu.memory_space<vmem>>, vector<18x18x4xf32>
    %c0_75 = arith.constant 0 : index
    %c0_76 = arith.constant 0 : index
    %75 = vector.load %arg5[%c0_75, %c0_76] : memref<1x4xf32, #tpu.memory_space<vmem>>, vector<1x4xf32>
    %76 = vector.shape_cast %75 : vector<1x4xf32> to vector<4xf32>
    %77 = vector.shape_cast %76 : vector<4xf32> to vector<1x4xf32>
    %78 = vector.broadcast %77 : vector<1x4xf32> to vector<256x4xf32>
    %79 = vector.extract_strided_slice %74 {offsets = [0, 0, 0], sizes = [16, 16, 4], strides = [1, 1, 1]} : vector<18x18x4xf32> to vector<16x16x4xf32>
    %80 = vector.shape_cast %79 : vector<16x16x4xf32> to vector<256x4xf32>
    %c0_77 = arith.constant 0 : index
    %c0_78 = arith.constant 0 : index
    %c0_79 = arith.constant 0 : index
    %c0_80 = arith.constant 0 : index
    %81 = vector.load %arg3[%c0_77, %c0_78, %c0_79, %c0_80] : memref<3x3x4x4xf32, #tpu.memory_space<vmem>>, vector<1x1x4x4xf32>
    %82 = vector.shape_cast %81 : vector<1x1x4x4xf32> to vector<4x4xf32>
    %cst_81 = arith.constant dense<0.000000e+00> : vector<256x4xf32>
    %83 = tpu.matmul %80, %82, %cst_81 {dimension_numbers = #tpu.dot_dimension_numbers<[1], [0], [0], [1], [0, 0, 1, 1], [], []>} : vector<256x4xf32>, vector<4x4xf32>, vector<256x4xf32> -> vector<256x4xf32>
    %84 = arith.addf %78, %83 : vector<256x4xf32>
    %85 = vector.extract_strided_slice %74 {offsets = [0, 1, 0], sizes = [16, 16, 4], strides = [1, 1, 1]} : vector<18x18x4xf32> to vector<16x16x4xf32>
    %86 = vector.shape_cast %85 : vector<16x16x4xf32> to vector<256x4xf32>
    %c0_82 = arith.constant 0 : index
    %c1_83 = arith.constant 1 : index
    %c0_84 = arith.constant 0 : index
    %c0_85 = arith.constant 0 : index
    %87 = vector.load %arg3[%c0_82, %c1_83, %c0_84, %c0_85] : memref<3x3x4x4xf32, #tpu.memory_space<vmem>>, vector<1x1x4x4xf32>
    %88 = vector.shape_cast %87 : vector<1x1x4x4xf32> to vector<4x4xf32>
    %cst_86 = arith.constant dense<0.000000e+00> : vector<256x4xf32>
    %89 = tpu.matmul %86, %88, %cst_86 {dimension_numbers = #tpu.dot_dimension_numbers<[1], [0], [0], [1], [0, 0, 1, 1], [], []>} : vector<256x4xf32>, vector<4x4xf32>, vector<256x4xf32> -> vector<256x4xf32>
    %90 = arith.addf %84, %89 : vector<256x4xf32>
    %91 = vector.extract_strided_slice %74 {offsets = [0, 2, 0], sizes = [16, 16, 4], strides = [1, 1, 1]} : vector<18x18x4xf32> to vector<16x16x4xf32>
    %92 = vector.shape_cast %91 : vector<16x16x4xf32> to vector<256x4xf32>
    %c0_87 = arith.constant 0 : index
    %c2_88 = arith.constant 2 : index
    %c0_89 = arith.constant 0 : index
    %c0_90 = arith.constant 0 : index
    %93 = vector.load %arg3[%c0_87, %c2_88, %c0_89, %c0_90] : memref<3x3x4x4xf32, #tpu.memory_space<vmem>>, vector<1x1x4x4xf32>
    %94 = vector.shape_cast %93 : vector<1x1x4x4xf32> to vector<4x4xf32>
    %cst_91 = arith.constant dense<0.000000e+00> : vector<256x4xf32>
    %95 = tpu.matmul %92, %94, %cst_91 {dimension_numbers = #tpu.dot_dimension_numbers<[1], [0], [0], [1], [0, 0, 1, 1], [], []>} : vector<256x4xf32>, vector<4x4xf32>, vector<256x4xf32> -> vector<256x4xf32>
    %96 = arith.addf %90, %95 : vector<256x4xf32>
    %97 = vector.extract_strided_slice %74 {offsets = [1, 0, 0], sizes = [16, 16, 4], strides = [1, 1, 1]} : vector<18x18x4xf32> to vector<16x16x4xf32>
    %98 = vector.shape_cast %97 : vector<16x16x4xf32> to vector<256x4xf32>
    %c1_92 = arith.constant 1 : index
    %c0_93 = arith.constant 0 : index
    %c0_94 = arith.constant 0 : index
    %c0_95 = arith.constant 0 : index
    %99 = vector.load %arg3[%c1_92, %c0_93, %c0_94, %c0_95] : memref<3x3x4x4xf32, #tpu.memory_space<vmem>>, vector<1x1x4x4xf32>
    %100 = vector.shape_cast %99 : vector<1x1x4x4xf32> to vector<4x4xf32>
    %cst_96 = arith.constant dense<0.000000e+00> : vector<256x4xf32>
    %101 = tpu.matmul %98, %100, %cst_96 {dimension_numbers = #tpu.dot_dimension_numbers<[1], [0], [0], [1], [0, 0, 1, 1], [], []>} : vector<256x4xf32>, vector<4x4xf32>, vector<256x4xf32> -> vector<256x4xf32>
    %102 = arith.addf %96, %101 : vector<256x4xf32>
    %103 = vector.extract_strided_slice %74 {offsets = [1, 1, 0], sizes = [16, 16, 4], strides = [1, 1, 1]} : vector<18x18x4xf32> to vector<16x16x4xf32>
    %104 = vector.shape_cast %103 : vector<16x16x4xf32> to vector<256x4xf32>
    %c1_97 = arith.constant 1 : index
    %c1_98 = arith.constant 1 : index
    %c0_99 = arith.constant 0 : index
    %c0_100 = arith.constant 0 : index
    %105 = vector.load %arg3[%c1_97, %c1_98, %c0_99, %c0_100] : memref<3x3x4x4xf32, #tpu.memory_space<vmem>>, vector<1x1x4x4xf32>
    %106 = vector.shape_cast %105 : vector<1x1x4x4xf32> to vector<4x4xf32>
    %cst_101 = arith.constant dense<0.000000e+00> : vector<256x4xf32>
    %107 = tpu.matmul %104, %106, %cst_101 {dimension_numbers = #tpu.dot_dimension_numbers<[1], [0], [0], [1], [0, 0, 1, 1], [], []>} : vector<256x4xf32>, vector<4x4xf32>, vector<256x4xf32> -> vector<256x4xf32>
    %108 = arith.addf %102, %107 : vector<256x4xf32>
    %109 = vector.extract_strided_slice %74 {offsets = [1, 2, 0], sizes = [16, 16, 4], strides = [1, 1, 1]} : vector<18x18x4xf32> to vector<16x16x4xf32>
    %110 = vector.shape_cast %109 : vector<16x16x4xf32> to vector<256x4xf32>
    %c1_102 = arith.constant 1 : index
    %c2_103 = arith.constant 2 : index
    %c0_104 = arith.constant 0 : index
    %c0_105 = arith.constant 0 : index
    %111 = vector.load %arg3[%c1_102, %c2_103, %c0_104, %c0_105] : memref<3x3x4x4xf32, #tpu.memory_space<vmem>>, vector<1x1x4x4xf32>
    %112 = vector.shape_cast %111 : vector<1x1x4x4xf32> to vector<4x4xf32>
    %cst_106 = arith.constant dense<0.000000e+00> : vector<256x4xf32>
    %113 = tpu.matmul %110, %112, %cst_106 {dimension_numbers = #tpu.dot_dimension_numbers<[1], [0], [0], [1], [0, 0, 1, 1], [], []>} : vector<256x4xf32>, vector<4x4xf32>, vector<256x4xf32> -> vector<256x4xf32>
    %114 = arith.addf %108, %113 : vector<256x4xf32>
    %115 = vector.extract_strided_slice %74 {offsets = [2, 0, 0], sizes = [16, 16, 4], strides = [1, 1, 1]} : vector<18x18x4xf32> to vector<16x16x4xf32>
    %116 = vector.shape_cast %115 : vector<16x16x4xf32> to vector<256x4xf32>
    %c2_107 = arith.constant 2 : index
    %c0_108 = arith.constant 0 : index
    %c0_109 = arith.constant 0 : index
    %c0_110 = arith.constant 0 : index
    %117 = vector.load %arg3[%c2_107, %c0_108, %c0_109, %c0_110] : memref<3x3x4x4xf32, #tpu.memory_space<vmem>>, vector<1x1x4x4xf32>
    %118 = vector.shape_cast %117 : vector<1x1x4x4xf32> to vector<4x4xf32>
    %cst_111 = arith.constant dense<0.000000e+00> : vector<256x4xf32>
    %119 = tpu.matmul %116, %118, %cst_111 {dimension_numbers = #tpu.dot_dimension_numbers<[1], [0], [0], [1], [0, 0, 1, 1], [], []>} : vector<256x4xf32>, vector<4x4xf32>, vector<256x4xf32> -> vector<256x4xf32>
    %120 = arith.addf %114, %119 : vector<256x4xf32>
    %121 = vector.extract_strided_slice %74 {offsets = [2, 1, 0], sizes = [16, 16, 4], strides = [1, 1, 1]} : vector<18x18x4xf32> to vector<16x16x4xf32>
    %122 = vector.shape_cast %121 : vector<16x16x4xf32> to vector<256x4xf32>
    %c2_112 = arith.constant 2 : index
    %c1_113 = arith.constant 1 : index
    %c0_114 = arith.constant 0 : index
    %c0_115 = arith.constant 0 : index
    %123 = vector.load %arg3[%c2_112, %c1_113, %c0_114, %c0_115] : memref<3x3x4x4xf32, #tpu.memory_space<vmem>>, vector<1x1x4x4xf32>
    %124 = vector.shape_cast %123 : vector<1x1x4x4xf32> to vector<4x4xf32>
    %cst_116 = arith.constant dense<0.000000e+00> : vector<256x4xf32>
    %125 = tpu.matmul %122, %124, %cst_116 {dimension_numbers = #tpu.dot_dimension_numbers<[1], [0], [0], [1], [0, 0, 1, 1], [], []>} : vector<256x4xf32>, vector<4x4xf32>, vector<256x4xf32> -> vector<256x4xf32>
    %126 = arith.addf %120, %125 : vector<256x4xf32>
    %127 = vector.extract_strided_slice %74 {offsets = [2, 2, 0], sizes = [16, 16, 4], strides = [1, 1, 1]} : vector<18x18x4xf32> to vector<16x16x4xf32>
    %128 = vector.shape_cast %127 : vector<16x16x4xf32> to vector<256x4xf32>
    %c2_117 = arith.constant 2 : index
    %c2_118 = arith.constant 2 : index
    %c0_119 = arith.constant 0 : index
    %c0_120 = arith.constant 0 : index
    %129 = vector.load %arg3[%c2_117, %c2_118, %c0_119, %c0_120] : memref<3x3x4x4xf32, #tpu.memory_space<vmem>>, vector<1x1x4x4xf32>
    %130 = vector.shape_cast %129 : vector<1x1x4x4xf32> to vector<4x4xf32>
    %cst_121 = arith.constant dense<0.000000e+00> : vector<256x4xf32>
    %131 = tpu.matmul %128, %130, %cst_121 {dimension_numbers = #tpu.dot_dimension_numbers<[1], [0], [0], [1], [0, 0, 1, 1], [], []>} : vector<256x4xf32>, vector<4x4xf32>, vector<256x4xf32> -> vector<256x4xf32>
    %132 = arith.addf %126, %131 : vector<256x4xf32>
    %133 = vector.shape_cast %9 : vector<16x16x4xf32> to vector<256x4xf32>
    %134 = arith.addf %132, %133 : vector<256x4xf32>
    %cst_122 = arith.constant 0.000000e+00 : f32
    %135 = vector.broadcast %cst_122 : f32 to vector<256x4xf32>
    %136 = arith.maximumf %134, %135 : vector<256x4xf32>
    %137 = vector.shape_cast %136 : vector<256x4xf32> to vector<16x16x4xf32>
    %c0_123 = arith.constant 0 : index
    %c0_124 = arith.constant 0 : index
    %c0_125 = arith.constant 0 : index
    %c0_126 = arith.constant 0 : index
    %138 = vector.load %arg6[%c0_123, %c0_124, %c0_125, %c0_126] : memref<1x16x16x4xf32, #tpu.memory_space<vmem>>, vector<1x16x16x4xf32>
    %139 = vector.shape_cast %138 : vector<1x16x16x4xf32> to vector<16x16x4xf32>
    %140 = vector.shape_cast %137 : vector<16x16x4xf32> to vector<1x16x16x4xf32>
    tpu.vector_store %arg6[%c0_123, %c0_124, %c0_125, %c0_126], %140 {strides = array<i32>} : memref<1x16x16x4xf32, #tpu.memory_space<vmem>>, vector<1x16x16x4xf32>,
    return
  }
  func.func @transform_0(%arg0: i32) -> (i32, i32, i32, i32) {
    %c0_i32 = arith.constant 0 : i32
    %c0_i32_0 = arith.constant 0 : i32
    %c0_i32_1 = arith.constant 0 : i32
    %c0_i32_2 = arith.constant 0 : i32
    return %arg0, %c0_i32, %c0_i32_0, %c0_i32_1 : i32, i32, i32, i32
  }
  func.func @transform_1(%arg0: i32) -> (i32, i32, i32, i32) {
    %c0_i32 = arith.constant 0 : i32
    %c0_i32_0 = arith.constant 0 : i32
    %c0_i32_1 = arith.constant 0 : i32
    %c0_i32_2 = arith.constant 0 : i32
    %c0_i32_3 = arith.constant 0 : i32
    return %c0_i32, %c0_i32_0, %c0_i32_1, %c0_i32_2 : i32, i32, i32, i32
  }
  func.func @transform_2(%arg0: i32) -> (i32, i32, i32, i32) {
    %c0_i32 = arith.constant 0 : i32
    %c0_i32_0 = arith.constant 0 : i32
    %c0_i32_1 = arith.constant 0 : i32
    %c0_i32_2 = arith.constant 0 : i32
    %c0_i32_3 = arith.constant 0 : i32
    return %c0_i32, %c0_i32_0, %c0_i32_1, %c0_i32_2 : i32, i32, i32, i32
  }
  func.func @transform_3(%arg0: i32) -> (i32, i32) {
    %c0_i32 = arith.constant 0 : i32
    %c0_i32_0 = arith.constant 0 : i32
    %c0_i32_1 = arith.constant 0 : i32
    return %c0_i32, %c0_i32_0 : i32, i32
  }
  func.func @transform_4(%arg0: i32) -> (i32, i32) {
    %c0_i32 = arith.constant 0 : i32
    %c0_i32_0 = arith.constant 0 : i32
    %c0_i32_1 = arith.constant 0 : i32
    return %c0_i32, %c0_i32_0 : i32, i32
  }
  func.func @transform_5(%arg0: i32) -> (i32, i32, i32, i32) {
    %c0_i32 = arith.constant 0 : i32
    %c0_i32_0 = arith.constant 0 : i32
    %c0_i32_1 = arith.constant 0 : i32
    %c0_i32_2 = arith.constant 0 : i32
    return %arg0, %c0_i32, %c0_i32_0, %c0_i32_1 : i32, i32, i32, i32
  }
}

</mosaic_0001>

<bundles_post_ra>
// kernel: tpu_custom_call.1
= control target key start
LH: loop header
LB: loop body
LE: loop exit
PB: predicated region body
PF: predicated region fallthrough
CT: control target
= control target key end

     0   :  { %s9033_s18 = smov 0   ;;  %s11547_s0 = inlined_call_operand.vmem [shape: f32[2,16,16,4], index: 0, kind: input, shape index: {}]   ;;  %s11548_s1 = inlined_call_operand.vmem [shape: f32[3,3,4,4], index: 1, kind: input, shape index: {}]   ;;  %s11549_s2 = inlined_call_operand.vmem [shape: f32[3,3,4,4], index: 2, kind: input, shape index: {}]   ;;  %s11550_s3 = inlined_call_operand.vmem [shape: f32[1,4], index: 3, kind: input, shape index: {}]   ;;  %s11551_s4 = inlined_call_operand.vmem [shape: f32[1,4], index: 4, kind: input, shape index: {}]   ;;  %s11552_s5 = inlined_call_operand.vmem [shape: f32[2,16,16,4], index: 5, kind: output, shape index: {}]  }
   0x1 LB: > { %s6290_s19 = sadd.s32 4294967295, %s9000_s18   ;;  %p6294_p0 = scmp.ge.s32.totalorder %s9000_s18, 1  ;;  %s9000_s18 = sphi %s9033_s18, %s15_s18  }
   0x2   : > { %p187_p1 = scmp.lt.s32.totalorder %s9000_s18, 3 }
   0x4   : > { %p188_p2 = pnand %p6294_p0, %p187_p1 }
   0x6   : > { %191 = sbr.rel (%p188_p2) target bundleno = 1567 (0x61f), region = 40 }
   0xd   : > { %v397_v0 = vld [vmem:[%s11548_s1] sm:$0xf]  ;;  %vm494_vm0 = vcmask 1043456   ;;  %vm225_vm1 = vcmask 31744   ;;  %vm234_vm2 = vcmask 24576   ;;  %v9002_v1 = vmov 0.0  }
   0xe   : > { %7509 = vmatprep.subr.msk.mxu0 %vm494_vm0, %v397_v0  ;;  %226 = vst.msk [vmem:[#allocation2] sm:$0xff] %vm225_vm1, %v9002_v1  ;;  %227 = vst.msk [vmem:[#allocation2 + $0x8] sm:$0xff] %vm225_vm1, %v9002_v1  ;;  %v6333_v2 = vld [vmem:[%s11548_s1 + $0x4] sm:$0xf]  ;;  %p215_p3 = scmp.lt.s32.totalorder %s6290_s19, 1  ;;  %vm228_vm3 = vcmask 25600  }
   0xf   : > { %231 = vst.msk [vmem:[#allocation2 + $0x198] sm:$0xff] %vm225_vm1, %v9002_v1  ;;  %232 = vst.msk [vmem:[#allocation2 + $0x1a0] sm:$0xff] %vm225_vm1, %v9002_v1  ;;  %7510 = vmatpush3.msk.msra.mxu0 %vm494_vm0, %v397_v0  ;;  %v9130_v9 = vld [vmem:[%s11548_s1 + $0x8] sm:$0xf]  ;;  %vm1178_vm4 = vcmask 1045504   ;;  %vm771_vm5 = vcmask 1046528  }
  0x10   : > { %236 = vst.msk [vmem:[#allocation2 + $0x18] sm:$0x1] %vm234_vm2, %v9002_v1  ;;  %237 = vst.msk [vmem:[#allocation2 + $0x30] sm:$0x1] %vm234_vm2, %v9002_v1  ;;  %7559 = vmatprep.subr.msk.mxu0 %vm494_vm0, %v6333_v2  ;;  %s12001_s19 = smov (!%p215_p3, %s6290_s19), 1 }
  0x11   : > { %238 = vst.msk [vmem:[#allocation2 + $0x48] sm:$0x1] %vm234_vm2, %v9002_v1  ;;  %239 = vst.msk [vmem:[#allocation2 + $0x60] sm:$0x1] %vm234_vm2, %v9002_v1  ;;  %s6913_s24 = sshll.u32 %s12001_s19, 8 }
  0x12   : > { %240 = vst.msk [vmem:[#allocation2 + $0x78] sm:$0x1] %vm234_vm2, %v9002_v1  ;;  %241 = vst.msk [vmem:[#allocation2 + $0x90] sm:$0x1] %vm234_vm2, %v9002_v1  ;;  %s9102_s27 = scalar_lea.vmem %s11547_s0, %s6913_s24  ;;  %s11417_s21 = scalar_lea.vmem %s11552_s5, %s6913_s24 }
  0x13   : > { %242 = vst.msk [vmem:[#allocation2 + $0xa8] sm:$0x1] %vm234_vm2, %v9002_v1  ;;  %243 = vst.msk [vmem:[#allocation2 + $0xc0] sm:$0x1] %vm234_vm2, %v9002_v1  ;;  %v9105_v3 = vld [vmem:[%s9102_s27] sm:$0xff]  ;;  %v9108_v4 = vld [vmem:[%s9102_s27 + $0x8] sm:$0xff] }
  0x14   : > { %244 = vst.msk [vmem:[#allocation2 + $0xd8] sm:$0x1] %vm234_vm2, %v9002_v1  ;;  %245 = vst.msk [vmem:[#allocation2 + $0xf0] sm:$0x1] %vm234_vm2, %v9002_v1  ;;  %v9111_v5 = vld [vmem:[%s9102_s27 + $0x10] sm:$0xff]  ;;  %v9122_v7 = vld [vmem:[%s9102_s27 + $0x18] sm:$0xff] }
  0x15   : > { %246 = vst.msk [vmem:[#allocation2 + $0x108] sm:$0x1] %vm234_vm2, %v9002_v1  ;;  %247 = vst.msk [vmem:[#allocation2 + $0x120] sm:$0x1] %vm234_vm2, %v9002_v1  ;;  %v9113_v6 = vld [vmem:[#allocation2 + $0x8] sm:$0xff]  ;;  %v9125_v8 = vld [vmem:[%s9102_s27 + $0x20] sm:$0xff] }
  0x16   : > { %248 = vst.msk [vmem:[#allocation2 + $0x138] sm:$0x1] %vm234_vm2, %v9002_v1  ;;  %249 = vst.msk [vmem:[#allocation2 + $0x150] sm:$0x1] %vm234_vm2, %v9002_v1  ;;  %v1180_v11 = vrot.slane %v9113_v6, 2  ;;  %v9140_v12 = vld [vmem:[%s9102_s27 + $0x28] sm:$0xff] }
  0x17   : > { %250 = vst.msk [vmem:[#allocation2 + $0x168] sm:$0x1] %vm234_vm2, %v9002_v1  ;;  %251 = vst.msk [vmem:[#allocation2 + $0x180] sm:$0x1] %vm234_vm2, %v9002_v1  ;;  %v9143_v13 = vld [vmem:[%s9102_s27 + $0x30] sm:$0xff]  ;;  %v9153_v15 = vld [vmem:[%s9102_s27 + $0x38] sm:$0xff] }
  0x18   : > { %254 = vst.msk [vmem:[#allocation2 + $0x29] sm:$0x1] %vm234_vm2, %v9002_v1  ;;  %255 = vst.msk [vmem:[#allocation2 + $0x41] sm:$0x1] %vm234_vm2, %v9002_v1  ;;  %v9156_v16 = vld [vmem:[%s9102_s27 + $0x40] sm:$0xff]  ;;  %v9159_v17 = vld [vmem:[%s9102_s27 + $0x48] sm:$0xff] }
  0x19   : > { %256 = vst.msk [vmem:[#allocation2 + $0x59] sm:$0x1] %vm234_vm2, %v9002_v1  ;;  %257 = vst.msk [vmem:[#allocation2 + $0x71] sm:$0x1] %vm234_vm2, %v9002_v1  ;;  %v9170_v18 = vld [vmem:[%s9102_s27 + $0x50] sm:$0xff]  ;;  %v9173_v19 = vld [vmem:[%s9102_s27 + $0x58] sm:$0xff] }
  0x1a   : > { %258 = vst.msk [vmem:[#allocation2 + $0x89] sm:$0x1] %vm234_vm2, %v9002_v1  ;;  %259 = vst.msk [vmem:[#allocation2 + $0xa1] sm:$0x1] %vm234_vm2, %v9002_v1  ;;  %v9176_v20 = vld [vmem:[%s9102_s27 + $0x60] sm:$0xff]  ;;  %v9186_v21 = vld [vmem:[%s9102_s27 + $0x68] sm:$0xff] }
  0x1b   : > { %260 = vst.msk [vmem:[#allocation2 + $0xb9] sm:$0x1] %vm234_vm2, %v9002_v1  ;;  %261 = vst.msk [vmem:[#allocation2 + $0xd1] sm:$0x1] %vm234_vm2, %v9002_v1  ;;  %v9189_v22 = vld [vmem:[%s9102_s27 + $0x70] sm:$0xff]  ;;  %v9192_v23 = vld [vmem:[%s9102_s27 + $0x78] sm:$0xff] }
  0x1c   : > { %262 = vst.msk [vmem:[#allocation2 + $0xe9] sm:$0x1] %vm234_vm2, %v9002_v1  ;;  %263 = vst.msk [vmem:[#allocation2 + $0x101] sm:$0x1] %vm234_vm2, %v9002_v1  ;;  %v9206_v25 = vld [vmem:[%s9102_s27 + $0x80] sm:$0xff]  ;;  %v9209_v26 = vld [vmem:[%s9102_s27 + $0x88] sm:$0xff] }
  0x1d   : > { %264 = vst.msk [vmem:[#allocation2 + $0x119] sm:$0x1] %vm234_vm2, %v9002_v1  ;;  %265 = vst.msk [vmem:[#allocation2 + $0x131] sm:$0x1] %vm234_vm2, %v9002_v1  ;;  %v9212_v27 = vld [vmem:[%s9102_s27 + $0x90] sm:$0xff]  ;;  %v9223_v28 = vld [vmem:[%s9102_s27 + $0x98] sm:$0xff] }
  0x1e   : > { %266 = vst.msk [vmem:[#allocation2 + $0x149] sm:$0x1] %vm234_vm2, %v9002_v1  ;;  %267 = vst.msk [vmem:[#allocation2 + $0x161] sm:$0x1] %vm234_vm2, %v9002_v1  ;;  %v9226_v29 = vld [vmem:[%s9102_s27 + $0xa0] sm:$0xff]  ;;  %v9229_v30 = vld [vmem:[%s9102_s27 + $0xa8] sm:$0xff] }
  0x1f   : > { %268 = vst.msk [vmem:[#allocation2 + $0x179] sm:$0x1] %vm234_vm2, %v9002_v1  ;;  %269 = vst.msk [vmem:[#allocation2 + $0x191] sm:$0x1] %vm234_vm2, %v9002_v1  ;;  %v9246_v34 = vld [vmem:[%s9102_s27 + $0xb0] sm:$0xff]  ;;  %v9253_v35 = vld [vmem:[%s9102_s27 + $0xb8] sm:$0xff] }
  0x20   : > { %235 = vst.msk [vmem:[#allocation2] sm:$0x1] %vm234_vm2, %v9002_v1  ;;  %252 = vst.msk [vmem:[#allocation2 + $0x198] sm:$0x1] %vm234_vm2, %v9002_v1  ;;  %v9272_v40 = vld [vmem:[%s9102_s27 + $0xc0] sm:$0xff]  ;;  %v9275_v41 = vld [vmem:[%s9102_s27 + $0xc8] sm:$0xff] }
  0x21   : > { %229 = vst.msk [vmem:[#allocation2 + $0x10] sm:$0x3] %vm228_vm3, %v9002_v1  ;;  %233 = vst.msk [vmem:[#allocation2 + $0x1a8] sm:$0x3] %vm228_vm3, %v9002_v1  ;;  %v9278_v42 = vld [vmem:[%s9102_s27 + $0xd0] sm:$0xff]  ;;  %v9287_v43 = vld [vmem:[%s9102_s27 + $0xd8] sm:$0xff] }
  0x22   : > { %253 = vst.msk [vmem:[#allocation2 + $0x11] sm:$0x1] %vm234_vm2, %v9002_v1  ;;  %270 = vst.msk [vmem:[#allocation2 + $0x1a9] sm:$0x1] %vm234_vm2, %v9002_v1  ;;  %v9290_v44 = vld [vmem:[%s9102_s27 + $0xe0] sm:$0xff]  ;;  %v9299_v45 = vld [vmem:[%s9102_s27 + $0xe8] sm:$0xff] }
  0x23   : > { %11729 = vst [vmem:[#allocation3_spill] sm:$0xff] %v9105_v3  ;;  %11730 = vst [vmem:[#allocation4_spill] sm:$0xff] %v9108_v4 }
  0x24   : > { %11731 = vst [vmem:[#allocation5_spill] sm:$0xff] %v9111_v5  ;;  %304 = vst.msk [vmem:[#allocation2 + $0x19] sm:$0xff] %vm225_vm1, %v9105_v3 }
  0x25   : > { %305 = vst.msk [vmem:[#allocation2 + $0x21] sm:$0xff] %vm225_vm1, %v9108_v4  ;;  %306 = vst.msk [vmem:[#allocation2 + $0x31] sm:$0xff] %vm225_vm1, %v9111_v5 }
  0x26   : > { %11732 = vst [vmem:[#allocation6_spill] sm:$0xff] %v9122_v7  ;;  %11733 = vst [vmem:[#allocation7_spill] sm:$0xff] %v9125_v8 }
  0x27   : > { %v9132_v10 = vld [vmem:[#allocation2] sm:$0xff]  ;;  %307 = vst.msk [vmem:[#allocation2 + $0x39] sm:$0xff] %vm225_vm1, %v9122_v7  ;;  %308 = vst.msk [vmem:[#allocation2 + $0x49] sm:$0xff] %vm225_vm1, %v9125_v8 }
  0x28   : > { %11734 = vst [vmem:[#allocation8_spill] sm:$0xff] %v9140_v12  ;;  %11735 = vst [vmem:[#allocation9_spill] sm:$0xff] %v9143_v13  ;;  %7511 = vmatprep.mubr.msk.f32.mxu0 %vm225_vm1, %v9132_v10  ;;  %v1179_v14 = vrot.slane %v9132_v10, 2 }
  0x29   : > { %309 = vst.msk [vmem:[#allocation2 + $0x51] sm:$0xff] %vm225_vm1, %v9140_v12  ;;  %310 = vst.msk [vmem:[#allocation2 + $0x61] sm:$0xff] %vm225_vm1, %v9143_v13  ;;  %7512 = vmatmul.mubr.msk.f32.vlgmr.msra.gmra.mrb[0].mxu0 %vm225_vm1, %v9113_v6  ;;  %v338_v52 = vld [vmem:[#allocation2 + $0x10] sm:$0x3] }
  0x2a   : > { %11736 = vst [vmem:[#allocation10_spill] sm:$0xff] %v9153_v15  ;;  %11737 = vst [vmem:[#allocation11_spill] sm:$0xff] %v9156_v16  ;;  %7560 = vmatpush3.msk.msra.mxu0 %vm494_vm0, %v6333_v2  ;;  %v9197_v24 = vsel %vm1178_vm4, %v1179_v14, %v1180_v11  ;;  %v1182_v53 = vrot.slane %v338_v52, 2 }
  0x2b   : > { %11738 = vst [vmem:[#allocation12_spill] sm:$0xff] %v9159_v17  ;;  %311 = vst.msk [vmem:[#allocation2 + $0x69] sm:$0xff] %vm225_vm1, %v9153_v15  ;;  %7609 = vmatprep.subr.msk.mxu0 %vm494_vm0, %v9130_v9  ;;  %v9231_v31 = vld [vmem:[#allocation2 + $0x18] sm:$0xff] }
  0x2c   : > { %312 = vst.msk [vmem:[#allocation2 + $0x79] sm:$0xff] %vm225_vm1, %v9156_v16  ;;  %313 = vst.msk [vmem:[#allocation2 + $0x81] sm:$0xff] %vm225_vm1, %v9159_v17  ;;  %v9233_v32 = vld [vmem:[#allocation2 + $0x20] sm:$0xff]  ;;  %v9235_v33 = vld [vmem:[#allocation2 + $0x30] sm:$0xff]  ;;  %7514 = vmatprep.mubr.msk.f32.mxu0 %vm225_vm1, %v9231_v31  ;;  %v9336_v56 = vsel %vm1178_vm4, %v1180_v11, %v1182_v53 }
  0x2d   : > { %11739 = vst [vmem:[#allocation13_spill] sm:$0xff] %v9170_v18  ;;  %11740 = vst [vmem:[#allocation14_spill] sm:$0xff] %v9173_v19  ;;  %7515 = vmatmul.mubr.msk.f32.gmra.mrb[2].mxu0 %vm225_vm1, %v9233_v32 }
  0x2e   : > { %11741 = vst [vmem:[#allocation15_spill] sm:$0xff] %v9176_v20  ;;  %314 = vst.msk [vmem:[#allocation2 + $0x91] sm:$0xff] %vm225_vm1, %v9170_v18  ;;  %7517 = vmatprep.mubr.msk.f32.mxu0 %vm225_vm1, %v9235_v33  ;;  %v9257_v36 = vld [vmem:[#allocation2 + $0x38] sm:$0xff]  ;;  %v9261_v37 = vld [vmem:[#allocation2 + $0x48] sm:$0xff] }
  0x2f   : > { %315 = vst.msk [vmem:[#allocation2 + $0x99] sm:$0xff] %vm225_vm1, %v9173_v19  ;;  %316 = vst.msk [vmem:[#allocation2 + $0xa9] sm:$0xff] %vm225_vm1, %v9176_v20 }
  0x30   : > { %11742 = vst [vmem:[#allocation16_spill] sm:$0xff] %v9186_v21  ;;  %11743 = vst [vmem:[#allocation17_spill] sm:$0xff] %v9189_v22  ;;  %v9267_v38 = vld [vmem:[#allocation2 + $0x50] sm:$0xff]  ;;  %v9269_v39 = vld [vmem:[#allocation2 + $0x60] sm:$0xff] }
  0x31   : > { %11744 = vst [vmem:[#allocation18_spill] sm:$0xff] %v9192_v23  ;;  %317 = vst.msk [vmem:[#allocation2 + $0xb1] sm:$0xff] %vm225_vm1, %v9186_v21  ;;  %7518 = vmatmul.mubr.msk.f32.gmra.mrb[4].mxu0 %vm225_vm1, %v9257_v36 }
  0x32   : > { %318 = vst.msk [vmem:[#allocation2 + $0xc1] sm:$0xff] %vm225_vm1, %v9189_v22  ;;  %319 = vst.msk [vmem:[#allocation2 + $0xc9] sm:$0xff] %vm225_vm1, %v9192_v23  ;;  %7520 = vmatprep.mubr.msk.f32.mxu0 %vm225_vm1, %v9261_v37  ;;  %v9303_v46 = vld [vmem:[#allocation2 + $0x68] sm:$0xff]  ;;  %v9455_v22 = vld [vmem:[#allocation2 + $0x70] sm:$0x3] }
  0x33   : > { %11745 = vst [vmem:[#allocation19_spill] sm:$0xff] %v9206_v25  ;;  %11746 = vst [vmem:[#allocation20_spill] sm:$0xff] %v9209_v26  ;;  %v9307_v47 = vld [vmem:[#allocation2 + $0x78] sm:$0xff]  ;;  %v9313_v48 = vld [vmem:[#allocation2 + $0x80] sm:$0xff] }
  0x34   : > { %11747 = vst [vmem:[#allocation21_spill] sm:$0xff] %v9212_v27  ;;  %320 = vst.msk [vmem:[#allocation2 + $0xd9] sm:$0xff] %vm225_vm1, %v9206_v25  ;;  %v788_v25 = vrot.slane %v9267_v38, 1  ;;  %v797_v23 = vrot.slane %v9307_v47, 1  ;;  %v798_v20 = vrot.slane %v9313_v48, 1 }
  0x35   : > { %321 = vst.msk [vmem:[#allocation2 + $0xe1] sm:$0xff] %vm225_vm1, %v9209_v26  ;;  %322 = vst.msk [vmem:[#allocation2 + $0xf1] sm:$0xff] %vm225_vm1, %v9212_v27  ;;  %7521 = vmatmul.mubr.msk.f32.gmra.mrb[6].mxu0 %vm225_vm1, %v9267_v38  ;;  %v9315_v49 = vld [vmem:[#allocation2 + $0x90] sm:$0xff]  ;;  %v9417_v27 = vld [vmem:[#allocation2 + $0x40] sm:$0x3] }
  0x36   : > { %11748 = vst [vmem:[#allocation22_spill] sm:$0xff] %v9223_v28  ;;  %11749 = vst [vmem:[#allocation23_spill] sm:$0xff] %v9226_v29  ;;  %7523 = vmatprep.mubr.msk.f32.mxu0 %vm225_vm1, %v9269_v39  ;;  %v9321_v50 = vld [vmem:[#allocation2 + $0x98] sm:$0xff]  ;;  %v9323_v51 = vld [vmem:[#allocation2 + $0xa8] sm:$0xff]  ;;  %v802_v18 = vrot.slane %v9315_v49, 1 }
  0x37   : > { %11750 = vst [vmem:[#allocation24_spill] sm:$0xff] %v9229_v30  ;;  %323 = vst.msk [vmem:[#allocation2 + $0xf9] sm:$0xff] %vm225_vm1, %v9223_v28  ;;  %v9422_v28 = vld [vmem:[%s11548_s1 + $0xc] sm:$0xf]  ;;  %v9438_v26 = vld [vmem:[#allocation2 + $0x58] sm:$0x3] }
  0x38   : > { %324 = vst.msk [vmem:[#allocation2 + $0x109] sm:$0xff] %vm225_vm1, %v9226_v29  ;;  %325 = vst.msk [vmem:[#allocation2 + $0x111] sm:$0xff] %vm225_vm1, %v9229_v30  ;;  %v9329_v54 = vld [vmem:[#allocation2 + $0xb0] sm:$0xff]  ;;  %v9470_v21 = vld [vmem:[#allocation2 + $0x88] sm:$0x3]  ;;  %v803_v19 = vrot.slane %v9321_v50, 1 }
  0x39   : > { %11751 = vst [vmem:[#allocation25_spill] sm:$0xff] %v9246_v34  ;;  %326 = vst.msk [vmem:[#allocation2 + $0x121] sm:$0xff] %vm225_vm1, %v9246_v34  ;;  %7524 = vmatmul.mubr.msk.f32.gmra.mrb[8].mxu0 %vm225_vm1, %v9303_v46  ;;  %v9331_v55 = vld [vmem:[#allocation2 + $0xc0] sm:$0xff]  ;;  %v9342_v57 = vld [vmem:[#allocation2 + $0xc8] sm:$0xff]  ;;  %v777_v34 = vrot.slane %v9231_v31, 1  ;;  %v807_v17 = vrot.slane %v9323_v51, 1 }
  0x3a   : > { %11752 = vst [vmem:[#allocation26_spill] sm:$0xff] %v9253_v35  ;;  %327 = vst.msk [vmem:[#allocation2 + $0x129] sm:$0xff] %vm225_vm1, %v9253_v35  ;;  %7526 = vmatprep.mubr.msk.f32.mxu0 %vm225_vm1, %v9307_v47  ;;  %v9405_v35 = vld [vmem:[#allocation2 + $0x28] sm:$0x3]  ;;  %v9485_v16 = vld [vmem:[#allocation2 + $0xa0] sm:$0x3] }
  0x3b   : > { %11753 = vst [vmem:[#allocation27_spill] sm:$0xff] %v9272_v40  ;;  %11754 = vst [vmem:[#allocation28_spill] sm:$0xff] %v9275_v41  ;;  %v9344_v58 = vld [vmem:[#allocation2 + $0xd8] sm:$0xff]  ;;  %v780_v29 = vrot.slane %v9405_v35, 1  ;;  %v808_v13 = vrot.slane %v9329_v54, 1  ;;  %v812_v8 = vrot.slane %v9331_v55, 1 }
  0x3c   : > { %11755 = vst [vmem:[#allocation29_spill] sm:$0xff] %v9278_v42  ;;  %328 = vst.msk [vmem:[#allocation2 + $0x139] sm:$0xff] %vm225_vm1, %v9272_v40  ;;  %v9350_v59 = vld [vmem:[#allocation2 + $0xe0] sm:$0xff]  ;;  %v9352_v60 = vld [vmem:[#allocation2 + $0xf0] sm:$0xff]  ;;  %v775_v40 = vrot.slane %v338_v52, 1  ;;  %v783_v52 = vrot.slane %v9257_v36, 1 }
  0x3d   : > { %329 = vst.msk [vmem:[#allocation2 + $0x141] sm:$0xff] %vm225_vm1, %v9275_v41  ;;  %330 = vst.msk [vmem:[#allocation2 + $0x151] sm:$0xff] %vm225_vm1, %v9278_v42  ;;  %7527 = vmatmul.mubr.msk.f32.gmra.mrb[10].mxu0 %vm225_vm1, %v9313_v48  ;;  %v9500_v15 = vld [vmem:[#allocation2 + $0xb8] sm:$0x3]  ;;  %v813_v12 = vrot.slane %v9342_v57, 1  ;;  %v817_v7 = vrot.slane %v9344_v58, 1 }
  0x3e   : > { %11756 = vst [vmem:[#allocation30_spill] sm:$0xff] %v9287_v43  ;;  %11757 = vst [vmem:[#allocation31_spill] sm:$0xff] %v9290_v44  ;;  %7529 = vmatprep.mubr.msk.f32.mxu0 %vm225_vm1, %v9315_v49  ;;  %v9358_v61 = vld [vmem:[#allocation2 + $0xf8] sm:$0xff]  ;;  %v9515_v5 = vld [vmem:[#allocation2 + $0xd0] sm:$0x3]  ;;  %v818_v3 = vrot.slane %v9350_v59, 1 }
  0x3f   : > { %331 = vst.msk [vmem:[#allocation2 + $0x159] sm:$0xff] %vm225_vm1, %v9287_v43  ;;  %332 = vst.msk [vmem:[#allocation2 + $0x169] sm:$0xff] %vm225_vm1, %v9290_v44  ;;  %v9360_v62 = vld [vmem:[#allocation2 + $0x108] sm:$0xff]  ;;  %v9366_v63 = vld [vmem:[#allocation2 + $0x110] sm:$0xff]  ;;  %v772_v44 = vrot.slane %v9132_v10, 1  ;;  %v778_v10 = vrot.slane %v9233_v32, 1 }
  0x40   : > { %11758 = vst [vmem:[#allocation32_spill] sm:$0xff] %v9299_v45  ;;  %333 = vst.msk [vmem:[#allocation2 + $0x171] sm:$0xff] %vm225_vm1, %v9299_v45  ;;  %v9368_v0 = vld [vmem:[#allocation2 + $0x120] sm:$0xff]  ;;  %v773_v45 = vrot.slane %v9113_v6, 1  ;;  %v9530_v4 = vld [vmem:[#allocation2 + $0xe8] sm:$0x3] }
  0x41   : > { %7530 = vmatmul.mubr.msk.f32.gmra.mrb[12].mxu0 %vm225_vm1, %v9321_v50  ;;  %v9374_v1 = vld [vmem:[#allocation2 + $0x128] sm:$0xff]  ;;  %v9413_v30 = vsel %vm771_vm5, %v777_v34, %v778_v10  ;;  %v9430_v34 = vsel %vm771_vm5, %v778_v10, %v780_v29  ;;  %v790_v29 = vrot.slane %v9438_v26, 1 }
  0x42   : > { %7532 = vmatprep.mubr.msk.f32.mxu0 %vm225_vm1, %v9323_v51  ;;  %v774_v41 = vsel %vm771_vm5, %v772_v44, %v773_v45  ;;  %v776_v6 = vsel %vm771_vm5, %v773_v45, %v775_v40  ;;  %v782_v44 = vrot.slane %v9235_v33, 1  ;;  %v785_v40 = vrot.slane %v9417_v27, 1 }
  0x43   : > { %v9376_v2 = vld [vmem:[#allocation2 + $0x138] sm:$0xff]  ;;  %v787_v45 = vrot.slane %v9261_v37, 1 }
  0x44   : > { %v9382_v11 = vld [vmem:[#allocation2 + $0x140] sm:$0xff]  ;;  %v9384_v14 = vld [vmem:[#allocation2 + $0x150] sm:$0xff] }
  0x45   : > { %7533 = vmatmul.mubr.msk.f32.gmra.mrb[14].mxu0 %vm225_vm1, %v9329_v54  ;;  %v9451_v10 = vsel %vm771_vm5, %v787_v45, %v788_v25 }
  0x46   : > { %7535 = vmatprep.mubr.msk.f32.mxu0 %vm225_vm1, %v9331_v55  ;;  %v9390_v53 = vld [vmem:[#allocation2 + $0x158] sm:$0xff]  ;;  %v9394_v42 = vld [vmem:[#allocation2 + $0x168] sm:$0xff]  ;;  %11759 = vst [vmem:[#allocation33_spill] sm:$0xff] %v9451_v10 }
  0x47   : > { %v9400_v43 = vld [vmem:[#allocation2 + $0x170] sm:$0xff] }
  0x49   : > { %7536 = vmatmul.mubr.msk.f32.gmra.mrb[16].mxu0 %vm225_vm1, %v9342_v57 }
  0x4a   : > { %7538 = vmatprep.mubr.msk.f32.mxu0 %vm225_vm1, %v9344_v58 }
  0x4d   : > { %7539 = vmatmul.mubr.msk.f32.gmra.mrb[18].mxu0 %vm225_vm1, %v9350_v59 }
  0x4e   : > { %7541 = vmatprep.mubr.msk.f32.mxu0 %vm225_vm1, %v9352_v60 }
  0x51   : > { %7542 = vmatmul.mubr.msk.f32.gmra.mrb[20].mxu0 %vm225_vm1, %v9358_v61 }
  0x52   : > { %7544 = vmatprep.mubr.msk.f32.mxu0 %vm225_vm1, %v9360_v62 }
  0x55   : > { %7545 = vmatmul.mubr.msk.f32.gmra.mrb[22].mxu0 %vm225_vm1, %v9366_v63 }
  0x56   : > { %7547 = vmatprep.mubr.msk.f32.mxu0 %vm225_vm1, %v9368_v0 }
  0x59   : > { %7548 = vmatmul.mubr.msk.f32.gmra.mrb[24].mxu0 %vm225_vm1, %v9374_v1 }
  0x5a   : > { %7550 = vmatprep.mubr.msk.f32.mxu0 %vm225_vm1, %v9376_v2 }
  0x5d   : > { %7551 = vmatmul.mubr.msk.f32.gmra.mrb[26].mxu0 %vm225_vm1, %v9382_v11 }
  0x5e   : > { %7553 = vmatprep.mubr.msk.f32.mxu0 %vm225_vm1, %v9384_v14 }
  0x61   : > { %7554 = vmatmul.mubr.msk.f32.gmra.mrb[28].mxu0 %vm225_vm1, %v9390_v53 }
  0x62   : > { %7556 = vmatprep.mubr.msk.f32.mxu0 %vm225_vm1, %v9394_v42 }
  0x65   : > { %7557 = vmatmul.mubr.msk.f32.gmra.mrb[30].mxu0 %vm225_vm1, %v9400_v43 }
  0x66   : > { %7561 = vmatprep.mubr.msk.f32.mxu0 %vm225_vm1, %v774_v41  ;;  %v9434_v41 = vsel %vm771_vm5, %v782_v44, %v783_v52  ;;  %v793_v44 = vrot.slane %v9303_v46, 1 }
  0x69   : > { %7562 = vmatmul.mubr.msk.f32.vlgmr.msra.gmra.mrb[0].mxu0 %vm225_vm1, %v776_v6  ;;  %v792_v6 = vrot.slane %v9269_v39, 1 }
  0x6a   : > { %7610 = vmatpush3.msk.msra.mxu0 %vm494_vm0, %v9130_v9  ;;  %7564 = vmatprep.mubr.msk.f32.mxu0 %vm225_vm1, %v9413_v30  ;;  %v9447_v9 = vsel %vm771_vm5, %v783_v52, %v785_v40  ;;  %v9462_v52 = vsel %vm771_vm5, %v788_v25, %v790_v29  ;;  %v795_v40 = vrot.slane %v9455_v22, 1  ;;  %v800_v29 = vrot.slane %v9470_v21, 1 }
  0x6b   : > { %7659 = vmatprep.subr.msk.mxu0 %vm494_vm0, %v9422_v28  ;;  %11760 = vst [vmem:[#allocation34_spill] sm:$0xff] %v9462_v52  ;;  %v9466_v45 = vsel %vm771_vm5, %v792_v6, %v793_v44  ;;  %v9481_v6 = vsel %vm771_vm5, %v797_v23, %v798_v20  ;;  %v9496_v23 = vsel %vm771_vm5, %v802_v18, %v803_v19 }
  0x6c   : > { %11761 = vst [vmem:[#allocation35_spill] sm:$0xff] %v9466_v45  ;;  %v9477_v25 = vsel %vm771_vm5, %v793_v44, %v795_v40  ;;  %11763 = vst [vmem:[#allocation37_spill] sm:$0xff] %v9481_v6  ;;  %v9492_v44 = vsel %vm771_vm5, %v798_v20, %v800_v29  ;;  %v805_v40 = vrot.slane %v9485_v16, 1  ;;  %v810_v29 = vrot.slane %v9500_v15, 1 }
  0x6d   : > { %7565 = vmatmul.mubr.msk.f32.gmra.mrb[2].mxu0 %vm225_vm1, %v9430_v34  ;;  %11762 = vst [vmem:[#allocation36_spill] sm:$0xff] %v9477_v25  ;;  %11764 = vst [vmem:[#allocation38_spill] sm:$0xff] %v9492_v44  ;;  %v9511_v18 = vsel %vm771_vm5, %v807_v17, %v808_v13  ;;  %v9526_v17 = vsel %vm771_vm5, %v812_v8, %v813_v12  ;;  %v9541_v8 = vsel %vm771_vm5, %v817_v7, %v818_v3 }
  0x6e   : > { %7567 = vmatprep.mubr.msk.f32.mxu0 %vm225_vm1, %v9434_v41  ;;  %11765 = vst [vmem:[#allocation39_spill] sm:$0xff] %v9496_v23  ;;  %v9507_v20 = vsel %vm771_vm5, %v803_v19, %v805_v40  ;;  %11767 = vst [vmem:[#allocation41_spill] sm:$0xff] %v9511_v18  ;;  %v9522_v19 = vsel %vm771_vm5, %v808_v13, %v810_v29  ;;  %v815_v40 = vrot.slane %v9515_v5, 1  ;;  %v820_v29 = vrot.slane %v9530_v4, 1 }
  0x6f   : > { %11766 = vst [vmem:[#allocation40_spill] sm:$0xff] %v9507_v20  ;;  %11768 = vst [vmem:[#allocation42_spill] sm:$0xff] %v9522_v19 }
  0x70   : > { %11769 = vst [vmem:[#allocation43_spill] sm:$0xff] %v9526_v17  ;;  %v9537_v13 = vsel %vm771_vm5, %v813_v12, %v815_v40  ;;  %11771 = vst [vmem:[#allocation45_spill] sm:$0xff] %v9541_v8  ;;  %v9552_v12 = vsel %vm771_vm5, %v818_v3, %v820_v29 }
  0x71   : > { %7568 = vmatmul.mubr.msk.f32.gmra.mrb[4].mxu0 %vm225_vm1, %v9447_v9  ;;  %11770 = vst [vmem:[#allocation44_spill] sm:$0xff] %v9537_v13  ;;  %11772 = vst [vmem:[#allocation46_spill] sm:$0xff] %v9552_v12 }
  0x72   : > { %7570 = vmatprep.mubr.msk.f32.mxu0 %vm225_vm1, %v9451_v10  ;;  %v9623_v10 = vld [vmem:[%s9102_s27 + $0xf0] sm:$0xff] }
  0x73   : > { %11781 = vst [vmem:[#allocation55_spill] sm:$0xff] %v9623_v10  ;;  %334 = vst.msk [vmem:[#allocation2 + $0x181] sm:$0xff] %vm225_vm1, %v9623_v10 }
  0x75   : > { %7571 = vmatmul.mubr.msk.f32.gmra.mrb[6].mxu0 %vm225_vm1, %v9462_v52  ;;  %v9620_v52 = vld [vmem:[#allocation2 + $0x178] sm:$0x3] }
  0x76   : > { %7573 = vmatprep.mubr.msk.f32.mxu0 %vm225_vm1, %v9466_v45  ;;  %v9605_v45 = vld [vmem:[#allocation2 + $0x160] sm:$0x3] }
  0x79   : > { %7574 = vmatmul.mubr.msk.f32.gmra.mrb[8].mxu0 %vm225_vm1, %v9477_v25  ;;  %v9590_v25 = vld [vmem:[#allocation2 + $0x148] sm:$0x3] }
  0x7a   : > { %7576 = vmatprep.mubr.msk.f32.mxu0 %vm225_vm1, %v9481_v6  ;;  %v9575_v6 = vld [vmem:[#allocation2 + $0x130] sm:$0x3] }
  0x7d   : > { %7577 = vmatmul.mubr.msk.f32.gmra.mrb[10].mxu0 %vm225_vm1, %v9492_v44  ;;  %v9560_v44 = vld [vmem:[#allocation2 + $0x118] sm:$0x3] }
  0x7e   : > { %7579 = vmatprep.mubr.msk.f32.mxu0 %vm225_vm1, %v9496_v23  ;;  %v9545_v23 = vld [vmem:[#allocation2 + $0x100] sm:$0x3]  ;;  %v830_v29 = vrot.slane %v9560_v44, 1 }
  0x7f   : > { %v825_v40 = vrot.slane %v9545_v23, 1 }
  0x81   : > { %7580 = vmatmul.mubr.msk.f32.gmra.mrb[12].mxu0 %vm225_vm1, %v9507_v20  ;;  %v823_v20 = vrot.slane %v9358_v61, 1 }
  0x82   : > { %7582 = vmatprep.mubr.msk.f32.mxu0 %vm225_vm1, %v9511_v18  ;;  %v822_v18 = vrot.slane %v9352_v60, 1 }
  0x83   : > { %v9567_v3 = vsel %vm771_vm5, %v823_v20, %v825_v40  ;;  %v835_v40 = vrot.slane %v9575_v6, 1 }
  0x84   : > { %v9556_v7 = vsel %vm771_vm5, %v822_v18, %v823_v20  ;;  %11774 = vst [vmem:[#allocation48_spill] sm:$0xff] %v9567_v3 }
  0x85   : > { %7583 = vmatmul.mubr.msk.f32.gmra.mrb[14].mxu0 %vm225_vm1, %v9522_v19  ;;  %11773 = vst [vmem:[#allocation47_spill] sm:$0xff] %v9556_v7  ;;  %v828_v19 = vrot.slane %v9366_v63, 1 }
  0x86   : > { %7585 = vmatprep.mubr.msk.f32.mxu0 %vm225_vm1, %v9526_v17  ;;  %v827_v17 = vrot.slane %v9360_v62, 1 }
  0x87   : > { %v9582_v20 = vsel %vm771_vm5, %v828_v19, %v830_v29 }
  0x88   : > { %v9571_v18 = vsel %vm771_vm5, %v827_v17, %v828_v19  ;;  %11776 = vst [vmem:[#allocation50_spill] sm:$0xff] %v9582_v20 }
  0x89   : > { %7586 = vmatmul.mubr.msk.f32.gmra.mrb[16].mxu0 %vm225_vm1, %v9537_v13  ;;  %11775 = vst [vmem:[#allocation49_spill] sm:$0xff] %v9571_v18  ;;  %v833_v13 = vrot.slane %v9374_v1, 1 }
  0x8a   : > { %7588 = vmatprep.mubr.msk.f32.mxu0 %vm225_vm1, %v9541_v8  ;;  %v832_v8 = vrot.slane %v9368_v0, 1 }
  0x8b   : > { %v9597_v19 = vsel %vm771_vm5, %v833_v13, %v835_v40  ;;  %v845_v40 = vrot.slane %v9605_v45, 1 }
  0x8c   : > { %v9586_v17 = vsel %vm771_vm5, %v832_v8, %v833_v13  ;;  %11778 = vst [vmem:[#allocation52_spill] sm:$0xff] %v9597_v19  ;;  %v840_v8 = vrot.slane %v9590_v25, 1 }
  0x8d   : > { %7589 = vmatmul.mubr.msk.f32.gmra.mrb[18].mxu0 %vm225_vm1, %v9552_v12  ;;  %11777 = vst [vmem:[#allocation51_spill] sm:$0xff] %v9586_v17  ;;  %v838_v12 = vrot.slane %v9382_v11, 1 }
  0x8e   : > { %7591 = vmatprep.mubr.msk.f32.mxu0 %vm225_vm1, %v9556_v7  ;;  %v837_v7 = vrot.slane %v9376_v2, 1 }
  0x8f   : > { %v9612_v13 = vsel %vm771_vm5, %v838_v12, %v840_v8 }
  0x90   : > { %v9601_v29 = vsel %vm771_vm5, %v837_v7, %v838_v12 }
  0x91   : > { %7592 = vmatmul.mubr.msk.f32.gmra.mrb[20].mxu0 %vm225_vm1, %v9567_v3  ;;  %11779 = vst [vmem:[#allocation53_spill] sm:$0xff] %v9601_v29  ;;  %v843_v3 = vrot.slane %v9390_v53, 1 }
  0x92   : > { %7594 = vmatprep.mubr.msk.f32.mxu0 %vm225_vm1, %v9571_v18  ;;  %v842_v18 = vrot.slane %v9384_v14, 1 }
  0x93   : > { %v9637_v12 = vsel %vm771_vm5, %v843_v3, %v845_v40  ;;  %v1189_v40 = vrot.slane %v9235_v33, 2 }
  0x94   : > { %v9616_v7 = vsel %vm771_vm5, %v842_v18, %v843_v3  ;;  %v850_v18 = vrot.slane %v9620_v52, 1  ;;  %v1187_v3 = vrot.slane %v9405_v35, 2  ;;  %v1192_v35 = vrot.slane %v9417_v27, 2 }
  0x95   : > { %7595 = vmatmul.mubr.msk.f32.gmra.mrb[22].mxu0 %vm225_vm1, %v9582_v20  ;;  %11780 = vst [vmem:[#allocation54_spill] sm:$0xff] %v9616_v7  ;;  %v848_v20 = vrot.slane %v9400_v43, 1  ;;  %v1197_v27 = vrot.slane %v9438_v26, 2 }
  0x96   : > { %7597 = vmatprep.mubr.msk.f32.mxu0 %vm225_vm1, %v9586_v17  ;;  %v847_v17 = vrot.slane %v9394_v42, 1 }
  0x97   : > { %v9648_v10 = vsel %vm771_vm5, %v848_v20, %v850_v18  ;;  %v9665_v18 = vld [vmem:[%s11548_s1 + $0x10] sm:$0xf] }
  0x98   : > { %v9641_v8 = vsel %vm771_vm5, %v847_v17, %v848_v20  ;;  %11784 = vst [vmem:[#allocation58_spill] sm:$0xff] %v9648_v10  ;;  %v1190_v20 = vrot.slane %v9257_v36, 2 }
  0x99   : > { %7598 = vmatmul.mubr.msk.f32.gmra.mrb[24].mxu0 %vm225_vm1, %v9597_v19  ;;  %11783 = vst [vmem:[#allocation57_spill] sm:$0xff] %v9641_v8 }
  0x9a   : > { %7600 = vmatprep.mubr.msk.f32.mxu0 %vm225_vm1, %v9601_v29  ;;  %v9628_v29 = vld [vmem:[%s9102_s27 + $0xf8] sm:$0xff] }
  0x9b   : > { %11782 = vst [vmem:[#allocation56_spill] sm:$0xff] %v9628_v29  ;;  %335 = vst.msk [vmem:[#allocation2 + $0x189] sm:$0xff] %vm225_vm1, %v9628_v29  ;;  %v1184_v29 = vrot.slane %v9231_v31, 2 }
  0x9d   : > { %7601 = vmatmul.mubr.msk.f32.gmra.mrb[26].mxu0 %vm225_vm1, %v9612_v13 }
  0x9e   : > { %7603 = vmatprep.mubr.msk.f32.mxu0 %vm225_vm1, %v9616_v7  ;;  %v1185_v7 = vrot.slane %v9233_v32, 2 }
  0xa0   : > { %v9658_v17 = vsel %vm1178_vm4, %v1184_v29, %v1185_v7  ;;  %v9678_v29 = vsel %vm1178_vm4, %v1189_v40, %v1190_v20 }
  0xa1   : > { %7604 = vmatmul.mubr.msk.f32.gmra.mrb[28].mxu0 %vm225_vm1, %v9637_v12 }
  0xa2   : > { %7606 = vmatprep.mubr.msk.f32.mxu0 %vm225_vm1, %v9641_v8  ;;  %v1195_v8 = vrot.slane %v9267_v38, 2 }
  0xa4   : > { %v9702_v40 = vsel %vm1178_vm4, %v1195_v8, %v1197_v27  ;;  %v1209_v27 = vrot.slane %v9315_v49, 2 }
  0xa5   : > { %7607 = vmatmul.mubr.msk.f32.gmra.mrb[30].mxu0 %vm225_vm1, %v9648_v10  ;;  %v1194_v10 = vrot.slane %v9261_v37, 2 }
  0xa6   : > { %7611 = vmatprep.mubr.msk.f32.mxu0 %vm225_vm1, %v9197_v24  ;;  %v9674_v24 = vsel %vm1178_vm4, %v1185_v7, %v1187_v3  ;;  %v1199_v7 = vrot.slane %v9269_v39, 2  ;;  %v1200_v3 = vrot.slane %v9303_v46, 2 }
  0xa8   : > { %v9706_v26 = vsel %vm1178_vm4, %v1199_v7, %v1200_v3  ;;  %v1210_v7 = vrot.slane %v9321_v50, 2 }
  0xa9   : > { %7612 = vmatmul.mubr.msk.f32.vlgmr.msra.gmra.mrb[0].mxu0 %vm225_vm1, %v9336_v56  ;;  %v9693_v56 = vsel %vm1178_vm4, %v1194_v10, %v1195_v8  ;;  %11786 = vst [vmem:[#allocation60_spill] sm:$0xff] %v9706_v26  ;;  %v1204_v10 = vrot.slane %v9307_v47, 2  ;;  %v1207_v8 = vrot.slane %v9470_v21, 2 }
  0xaa   : > { %7660 = vmatpush3.msk.msra.mxu0 %vm494_vm0, %v9422_v28  ;;  %7614 = vmatprep.mubr.msk.f32.mxu0 %vm225_vm1, %v9658_v17  ;;  %v9689_v28 = vsel %vm1178_vm4, %v1190_v20, %v1192_v35  ;;  %11785 = vst [vmem:[#allocation59_spill] sm:$0xff] %v9693_v56  ;;  %v1202_v20 = vrot.slane %v9455_v22, 2  ;;  %v1205_v35 = vrot.slane %v9313_v48, 2  ;;  %v9732_v21 = vsel %vm1178_vm4, %v1209_v27, %v1210_v7 }
  0xab   : > { %7709 = vmatprep.subr.msk.mxu0 %vm494_vm0, %v9665_v18  ;;  %11788 = vst [vmem:[#allocation62_spill] sm:$0xff] %v9732_v21  ;;  %v1220_v27 = vrot.slane %v9342_v57, 2 }
  0xac   : > { %v9719_v22 = vsel %vm1178_vm4, %v1204_v10, %v1205_v35  ;;  %v1215_v10 = vrot.slane %v9329_v54, 2 }
  0xad   : > { %7615 = vmatmul.mubr.msk.f32.gmra.mrb[2].mxu0 %vm225_vm1, %v9674_v24  ;;  %11787 = vst [vmem:[#allocation61_spill] sm:$0xff] %v9719_v22 }
  0xae   : > { %7617 = vmatprep.mubr.msk.f32.mxu0 %vm225_vm1, %v9678_v29 }
  0xb1   : > { %7618 = vmatmul.mubr.msk.f32.gmra.mrb[4].mxu0 %vm225_vm1, %v9689_v28 }
  0xb2   : > { %7620 = vmatprep.mubr.msk.f32.mxu0 %vm225_vm1, %v9693_v56  ;;  %v9715_v56 = vsel %vm1178_vm4, %v1200_v3, %v1202_v20  ;;  %v1212_v3 = vrot.slane %v9485_v16, 2  ;;  %v1214_v20 = vrot.slane %v9323_v51, 2 }
  0xb4   : > { %v9745_v16 = vsel %vm1178_vm4, %v1214_v20, %v1215_v10  ;;  %v1225_v20 = vrot.slane %v9350_v59, 2 }
  0xb5   : > { %7621 = vmatmul.mubr.msk.f32.gmra.mrb[6].mxu0 %vm225_vm1, %v9702_v40  ;;  %11789 = vst [vmem:[#allocation63_spill] sm:$0xff] %v9745_v16 }
  0xb6   : > { %7623 = vmatprep.mubr.msk.f32.mxu0 %vm225_vm1, %v9706_v26  ;;  %v9728_v26 = vsel %vm1178_vm4, %v1205_v35, %v1207_v8  ;;  %v1217_v35 = vrot.slane %v9500_v15, 2  ;;  %v1219_v8 = vrot.slane %v9331_v55, 2 }
  0xb8   : > { %v9758_v15 = vsel %vm1178_vm4, %v1219_v8, %v1220_v27  ;;  %v1230_v8 = vrot.slane %v9358_v61, 2 }
  0xb9   : > { %7624 = vmatmul.mubr.msk.f32.gmra.mrb[8].mxu0 %vm225_vm1, %v9715_v56  ;;  %11790 = vst [vmem:[#allocation64_spill] sm:$0xff] %v9758_v15 }
  0xba   : > { %7626 = vmatprep.mubr.msk.f32.mxu0 %vm225_vm1, %v9719_v22  ;;  %v9741_v22 = vsel %vm1178_vm4, %v1210_v7, %v1212_v3  ;;  %v1222_v7 = vrot.slane %v9515_v5, 2  ;;  %v1224_v3 = vrot.slane %v9344_v58, 2 }
  0xbc   : > { %v9771_v5 = vsel %vm1178_vm4, %v1224_v3, %v1225_v20  ;;  %v1235_v3 = vrot.slane %v9366_v63, 2 }
  0xbd   : > { %7627 = vmatmul.mubr.msk.f32.gmra.mrb[10].mxu0 %vm225_vm1, %v9728_v26  ;;  %11791 = vst [vmem:[#allocation65_spill] sm:$0xff] %v9771_v5 }
  0xbe   : > { %7629 = vmatprep.mubr.msk.f32.mxu0 %vm225_vm1, %v9732_v21  ;;  %v9754_v21 = vsel %vm1178_vm4, %v1215_v10, %v1217_v35  ;;  %v1227_v10 = vrot.slane %v9530_v4, 2  ;;  %v1229_v35 = vrot.slane %v9352_v60, 2 }
  0xc0   : > { %v9784_v4 = vsel %vm1178_vm4, %v1229_v35, %v1230_v8  ;;  %v1240_v35 = vrot.slane %v9374_v1, 2 }
  0xc1   : > { %7630 = vmatmul.mubr.msk.f32.gmra.mrb[12].mxu0 %vm225_vm1, %v9741_v22  ;;  %11792 = vst [vmem:[#allocation66_spill] sm:$0xff] %v9784_v4 }
  0xc2   : > { %7632 = vmatprep.mubr.msk.f32.mxu0 %vm225_vm1, %v9745_v16  ;;  %v9767_v16 = vsel %vm1178_vm4, %v1220_v27, %v1222_v7  ;;  %v1232_v27 = vrot.slane %v9545_v23, 2  ;;  %v1234_v7 = vrot.slane %v9360_v62, 2 }
  0xc4   : > { %v9797_v23 = vsel %vm1178_vm4, %v1234_v7, %v1235_v3  ;;  %v1245_v7 = vrot.slane %v9382_v11, 2 }
  0xc5   : > { %7633 = vmatmul.mubr.msk.f32.gmra.mrb[14].mxu0 %vm225_vm1, %v9754_v21  ;;  %11794 = vst [vmem:[#allocation68_spill] sm:$0xff] %v9797_v23 }
  0xc6   : > { %7635 = vmatprep.mubr.msk.f32.mxu0 %vm225_vm1, %v9758_v15  ;;  %v9780_v15 = vsel %vm1178_vm4, %v1225_v20, %v1227_v10  ;;  %v1237_v20 = vrot.slane %v9560_v44, 2  ;;  %v1239_v10 = vrot.slane %v9368_v0, 2 }
  0xc8   : > { %v9810_v44 = vsel %vm1178_vm4, %v1239_v10, %v1240_v35  ;;  %v1250_v10 = vrot.slane %v9390_v53, 2 }
  0xc9   : > { %7636 = vmatmul.mubr.msk.f32.gmra.mrb[16].mxu0 %vm225_vm1, %v9767_v16  ;;  %11795 = vst [vmem:[#allocation69_spill] sm:$0xff] %v9810_v44 }
  0xca   : > { %7638 = vmatprep.mubr.msk.f32.mxu0 %vm225_vm1, %v9771_v5  ;;  %v9793_v5 = vsel %vm1178_vm4, %v1230_v8, %v1232_v27  ;;  %v1242_v8 = vrot.slane %v9575_v6, 2  ;;  %v1244_v27 = vrot.slane %v9376_v2, 2 }
  0xcb   : > { %11793 = vst [vmem:[#allocation67_spill] sm:$0xff] %v9793_v5 }
  0xcc   : > { %v9823_v6 = vsel %vm1178_vm4, %v1244_v27, %v1245_v7  ;;  %v1255_v27 = vrot.slane %v9400_v43, 2 }
  0xcd   : > { %7639 = vmatmul.mubr.msk.f32.gmra.mrb[18].mxu0 %vm225_vm1, %v9780_v15  ;;  %11797 = vst [vmem:[#allocation71_spill] sm:$0xff] %v9823_v6 }
  0xce   : > { %7641 = vmatprep.mubr.msk.f32.mxu0 %vm225_vm1, %v9784_v4  ;;  %v9806_v4 = vsel %vm1178_vm4, %v1235_v3, %v1237_v20  ;;  %v1247_v3 = vrot.slane %v9590_v25, 2  ;;  %v1249_v20 = vrot.slane %v9384_v14, 2 }
  0xd0   : > { %v9836_v25 = vsel %vm1178_vm4, %v1249_v20, %v1250_v10  ;;  %v11799_v20 = vld [vmem:[#allocation33_spill] sm:$0xff] }
  0xd1   : > { %7642 = vmatmul.mubr.msk.f32.gmra.mrb[20].mxu0 %vm225_vm1, %v9793_v5  ;;  %11798 = vst [vmem:[#allocation72_spill] sm:$0xff] %v9836_v25 }
  0xd2   : > { %7644 = vmatprep.mubr.msk.f32.mxu0 %vm225_vm1, %v9797_v23  ;;  %v9819_v23 = vsel %vm1178_vm4, %v1240_v35, %v1242_v8  ;;  %v1252_v35 = vrot.slane %v9605_v45, 2  ;;  %v1254_v8 = vrot.slane %v9394_v42, 2 }
  0xd3   : > { %11796 = vst [vmem:[#allocation70_spill] sm:$0xff] %v9819_v23 }
  0xd4   : > { %v9849_v45 = vsel %vm1178_vm4, %v1254_v8, %v1255_v27  ;;  %v11804_v8 = vld [vmem:[#allocation38_spill] sm:$0xff] }
  0xd5   : > { %7645 = vmatmul.mubr.msk.f32.gmra.mrb[22].mxu0 %vm225_vm1, %v9806_v4 }
  0xd6   : > { %7647 = vmatprep.mubr.msk.f32.mxu0 %vm225_vm1, %v9810_v44  ;;  %v9832_v44 = vsel %vm1178_vm4, %v1245_v7, %v1247_v3  ;;  %v1257_v7 = vrot.slane %v9620_v52, 2  ;;  %v6469_v52 = vld [vmem:[%s11548_s1 + $0x14] sm:$0xf] }
  0xd8   : > { %v9856_v3 = vsel %vm1178_vm4, %v1255_v27, %v1257_v7  ;;  %v11805_v27 = vld [vmem:[#allocation39_spill] sm:$0xff]  ;;  %v11806_v7 = vld [vmem:[#allocation40_spill] sm:$0xff] }
  0xd9   : > { %7648 = vmatmul.mubr.msk.f32.gmra.mrb[24].mxu0 %vm225_vm1, %v9819_v23 }
  0xda   : > { %7650 = vmatprep.mubr.msk.f32.mxu0 %vm225_vm1, %v9823_v6  ;;  %v9845_v6 = vsel %vm1178_vm4, %v1250_v10, %v1252_v35  ;;  %v11801_v10 = vld [vmem:[#allocation35_spill] sm:$0xff]  ;;  %v11803_v35 = vld [vmem:[#allocation37_spill] sm:$0xff] }
  0xdd   : > { %7651 = vmatmul.mubr.msk.f32.gmra.mrb[26].mxu0 %vm225_vm1, %v9832_v44 }
  0xde   : > { %7653 = vmatprep.mubr.msk.f32.mxu0 %vm225_vm1, %v9836_v25 }
  0xe1   : > { %7654 = vmatmul.mubr.msk.f32.gmra.mrb[28].mxu0 %vm225_vm1, %v9845_v6 }
  0xe2   : > { %7656 = vmatprep.mubr.msk.f32.mxu0 %vm225_vm1, %v9849_v45 }
  0xe5   : > { %7657 = vmatmul.mubr.msk.f32.gmra.mrb[30].mxu0 %vm225_vm1, %v9856_v3 }
  0xe6   : > { %7661 = vmatprep.mubr.msk.f32.mxu0 %vm225_vm1, %v9231_v31  ;;  %v9924_v31 = vld [vmem:[#allocation2 + $0x180] sm:$0xff] }
  0xe9   : > { %7662 = vmatmul.mubr.msk.f32.vlgmr.msra.gmra.mrb[0].mxu0 %vm225_vm1, %v9233_v32  ;;  %v9930_v32 = vld [vmem:[#allocation2 + $0x188] sm:$0xff] }
  0xea   : > { %7710 = vmatpush3.msk.msra.mxu0 %vm494_vm0, %v9665_v18  ;;  %7664 = vmatprep.mubr.msk.f32.mxu0 %vm225_vm1, %v9235_v33  ;;  %v6503_v18 = vld [vmem:[%s11548_s1 + $0x18] sm:$0xf] }
  0xeb   : > { %7759 = vmatprep.subr.msk.mxu0 %vm494_vm0, %v6469_v52 }
  0xed   : > { %7665 = vmatmul.mubr.msk.f32.gmra.mrb[2].mxu0 %vm225_vm1, %v9257_v36 }
  0xee   : > { %7667 = vmatprep.mubr.msk.f32.mxu0 %vm225_vm1, %v9261_v37 }
  0xf1   : > { %7668 = vmatmul.mubr.msk.f32.gmra.mrb[4].mxu0 %vm225_vm1, %v9267_v38 }
  0xf2   : > { %7670 = vmatprep.mubr.msk.f32.mxu0 %vm225_vm1, %v9269_v39 }
  0xf5   : > { %7671 = vmatmul.mubr.msk.f32.gmra.mrb[6].mxu0 %vm225_vm1, %v9303_v46 }
  0xf6   : > { %7673 = vmatprep.mubr.msk.f32.mxu0 %vm225_vm1, %v9307_v47 }
  0xf9   : > { %7674 = vmatmul.mubr.msk.f32.gmra.mrb[8].mxu0 %vm225_vm1, %v9313_v48 }
  0xfa   : > { %7676 = vmatprep.mubr.msk.f32.mxu0 %vm225_vm1, %v9315_v49 }
  0xfd   : > { %7677 = vmatmul.mubr.msk.f32.gmra.mrb[10].mxu0 %vm225_vm1, %v9321_v50 }
  0xfe   : > { %7679 = vmatprep.mubr.msk.f32.mxu0 %vm225_vm1, %v9323_v51 }
 0x101   : > { %7680 = vmatmul.mubr.msk.f32.gmra.mrb[12].mxu0 %vm225_vm1, %v9329_v54 }
 0x102   : > { %7682 = vmatprep.mubr.msk.f32.mxu0 %vm225_vm1, %v9331_v55 }
 0x105   : > { %7683 = vmatmul.mubr.msk.f32.gmra.mrb[14].mxu0 %vm225_vm1, %v9342_v57 }
 0x106   : > { %7685 = vmatprep.mubr.msk.f32.mxu0 %vm225_vm1, %v9344_v58 }
 0x109   : > { %7686 = vmatmul.mubr.msk.f32.gmra.mrb[16].mxu0 %vm225_vm1, %v9350_v59 }
 0x10a   : > { %7688 = vmatprep.mubr.msk.f32.mxu0 %vm225_vm1, %v9352_v60 }
 0x10d   : > { %7689 = vmatmul.mubr.msk.f32.gmra.mrb[18].mxu0 %vm225_vm1, %v9358_v61 }
 0x10e   : > { %7691 = vmatprep.mubr.msk.f32.mxu0 %vm225_vm1, %v9360_v62 }
 0x111   : > { %7692 = vmatmul.mubr.msk.f32.gmra.mrb[20].mxu0 %vm225_vm1, %v9366_v63 }
 0x112   : > { %7694 = vmatprep.mubr.msk.f32.mxu0 %vm225_vm1, %v9368_v0 }
 0x115   : > { %7695 = vmatmul.mubr.msk.f32.gmra.mrb[22].mxu0 %vm225_vm1, %v9374_v1 }
 0x116   : > { %7697 = vmatprep.mubr.msk.f32.mxu0 %vm225_vm1, %v9376_v2 }
 0x119   : > { %7698 = vmatmul.mubr.msk.f32.gmra.mrb[24].mxu0 %vm225_vm1, %v9382_v11 }
 0x11a   : > { %7700 = vmatprep.mubr.msk.f32.mxu0 %vm225_vm1, %v9384_v14 }
 0x11d   : > { %7701 = vmatmul.mubr.msk.f32.gmra.mrb[26].mxu0 %vm225_vm1, %v9390_v53 }
 0x11e   : > { %7703 = vmatprep.mubr.msk.f32.mxu0 %vm225_vm1, %v9394_v42 }
 0x121   : > { %7704 = vmatmul.mubr.msk.f32.gmra.mrb[28].mxu0 %vm225_vm1, %v9400_v43 }
 0x122   : > { %7706 = vmatprep.mubr.msk.f32.mxu0 %vm225_vm1, %v9924_v31 }
 0x125   : > { %7707 = vmatmul.mubr.msk.f32.gmra.mrb[30].mxu0 %vm225_vm1, %v9930_v32 }
 0x126   : > { %7711 = vmatprep.mubr.msk.f32.mxu0 %vm225_vm1, %v9413_v30  ;;  %v11800_v30 = vld [vmem:[#allocation34_spill] sm:$0xff] }
 0x129   : > { %7712 = vmatmul.mubr.msk.f32.vlgmr.msra.gmra.mrb[0].mxu0 %vm225_vm1, %v9430_v34  ;;  %v11802_v34 = vld [vmem:[#allocation36_spill] sm:$0xff] }
 0x12a   : > { %7760 = vmatpush3.msk.msra.mxu0 %vm494_vm0, %v6469_v52  ;;  %7714 = vmatprep.mubr.msk.f32.mxu0 %vm225_vm1, %v9434_v41  ;;  %v11807_v52 = vld [vmem:[#allocation41_spill] sm:$0xff] }
 0x12b   : > { %7809 = vmatprep.subr.msk.mxu0 %vm494_vm0, %v6503_v18 }
 0x12d   : > { %7715 = vmatmul.mubr.msk.f32.gmra.mrb[2].mxu0 %vm225_vm1, %v9447_v9 }
 0x12e   : > { %7717 = vmatprep.mubr.msk.f32.mxu0 %vm225_vm1, %v11799_v20 }
 0x131   : > { %7718 = vmatmul.mubr.msk.f32.gmra.mrb[4].mxu0 %vm225_vm1, %v11800_v30  ;;  %v11808_v30 = vld [vmem:[#allocation42_spill] sm:$0xff] }
 0x132   : > { %7720 = vmatprep.mubr.msk.f32.mxu0 %vm225_vm1, %v11801_v10  ;;  %v11809_v10 = vld [vmem:[#allocation43_spill] sm:$0xff] }
 0x135   : > { %7721 = vmatmul.mubr.msk.f32.gmra.mrb[6].mxu0 %vm225_vm1, %v11802_v34  ;;  %v11810_v34 = vld [vmem:[#allocation44_spill] sm:$0xff] }
 0x136   : > { %7723 = vmatprep.mubr.msk.f32.mxu0 %vm225_vm1, %v11803_v35  ;;  %v11811_v35 = vld [vmem:[#allocation45_spill] sm:$0xff] }
 0x139   : > { %7724 = vmatmul.mubr.msk.f32.gmra.mrb[8].mxu0 %vm225_vm1, %v11804_v8  ;;  %v11812_v8 = vld [vmem:[#allocation46_spill] sm:$0xff] }
 0x13a   : > { %7726 = vmatprep.mubr.msk.f32.mxu0 %vm225_vm1, %v11805_v27  ;;  %v11813_v27 = vld [vmem:[#allocation47_spill] sm:$0xff] }
 0x13d   : > { %7727 = vmatmul.mubr.msk.f32.gmra.mrb[10].mxu0 %vm225_vm1, %v11806_v7  ;;  %v11814_v7 = vld [vmem:[#allocation48_spill] sm:$0xff] }
 0x13e   : > { %7729 = vmatprep.mubr.msk.f32.mxu0 %vm225_vm1, %v11807_v52  ;;  %v11815_v52 = vld [vmem:[#allocation49_spill] sm:$0xff] }
 0x141   : > { %7730 = vmatmul.mubr.msk.f32.gmra.mrb[12].mxu0 %vm225_vm1, %v11808_v30  ;;  %v11816_v30 = vld [vmem:[#allocation50_spill] sm:$0xff] }
 0x142   : > { %7732 = vmatprep.mubr.msk.f32.mxu0 %vm225_vm1, %v11809_v10  ;;  %v11817_v10 = vld [vmem:[#allocation51_spill] sm:$0xff] }
 0x145   : > { %7733 = vmatmul.mubr.msk.f32.gmra.mrb[14].mxu0 %vm225_vm1, %v11810_v34 }
 0x146   : > { %7735 = vmatprep.mubr.msk.f32.mxu0 %vm225_vm1, %v11811_v35  ;;  %v11818_v35 = vld [vmem:[#allocation53_spill] sm:$0xff] }
 0x149   : > { %7736 = vmatmul.mubr.msk.f32.gmra.mrb[16].mxu0 %vm225_vm1, %v11812_v8  ;;  %v11821_v8 = vld [vmem:[#allocation58_spill] sm:$0xff] }
 0x14a   : > { %7738 = vmatprep.mubr.msk.f32.mxu0 %vm225_vm1, %v11813_v27  ;;  %v11819_v27 = vld [vmem:[#allocation54_spill] sm:$0xff] }
 0x14d   : > { %7739 = vmatmul.mubr.msk.f32.gmra.mrb[18].mxu0 %vm225_vm1, %v11814_v7  ;;  %v1855_v7 = vrot.slane %v9930_v32, 1 }
 0x14e   : > { %7741 = vmatprep.mubr.msk.f32.mxu0 %vm225_vm1, %v11815_v52  ;;  %v1854_v52 = vrot.slane %v9924_v31, 1 }
 0x151   : > { %7742 = vmatmul.mubr.msk.f32.gmra.mrb[20].mxu0 %vm225_vm1, %v11816_v30  ;;  %v386_v30 = vld [vmem:[#allocation2 + $0x190] sm:$0x3] }
 0x152   : > { %7744 = vmatprep.mubr.msk.f32.mxu0 %vm225_vm1, %v11817_v10  ;;  %v11820_v10 = vld [vmem:[#allocation57_spill] sm:$0xff] }
 0x155   : > { %7745 = vmatmul.mubr.msk.f32.gmra.mrb[22].mxu0 %vm225_vm1, %v9597_v19  ;;  %v1857_v19 = vrot.slane %v386_v30, 1 }
 0x156   : > { %7747 = vmatprep.mubr.msk.f32.mxu0 %vm225_vm1, %v11818_v35  ;;  %v10000_v35 = vsel %vm771_vm5, %v1854_v52, %v1855_v7  ;;  %v6537_v52 = vld [vmem:[%s11548_s1 + $0x1c] sm:$0xf] }
 0x159   : > { %7748 = vmatmul.mubr.msk.f32.gmra.mrb[24].mxu0 %vm225_vm1, %v9612_v13 }
 0x15a   : > { %7750 = vmatprep.mubr.msk.f32.mxu0 %vm225_vm1, %v11819_v27  ;;  %v10007_v27 = vsel %vm771_vm5, %v1855_v7, %v1857_v19  ;;  %v11822_v19 = vld [vmem:[#allocation59_spill] sm:$0xff] }
 0x15b   : > { %v11826_v7 = vld [vmem:[#allocation63_spill] sm:$0xff] }
 0x15d   : > { %7751 = vmatmul.mubr.msk.f32.gmra.mrb[26].mxu0 %vm225_vm1, %v9637_v12 }
 0x15e   : > { %7753 = vmatprep.mubr.msk.f32.mxu0 %vm225_vm1, %v11820_v10 }
 0x161   : > { %7754 = vmatmul.mubr.msk.f32.gmra.mrb[28].mxu0 %vm225_vm1, %v11821_v8 }
 0x162   : > { %7756 = vmatprep.mubr.msk.f32.mxu0 %vm225_vm1, %v10000_v35 }
 0x165   : > { %7757 = vmatmul.mubr.msk.f32.gmra.mrb[30].mxu0 %vm225_vm1, %v10007_v27 }
 0x166   : > { %7761 = vmatprep.mubr.msk.f32.mxu0 %vm225_vm1, %v9658_v17  ;;  %v11823_v17 = vld [vmem:[#allocation60_spill] sm:$0xff] }
 0x169   : > { %7762 = vmatmul.mubr.msk.f32.vlgmr.msra.gmra.mrb[0].mxu0 %vm225_vm1, %v9674_v24  ;;  %v11824_v24 = vld [vmem:[#allocation61_spill] sm:$0xff] }
 0x16a   : > { %7810 = vmatpush3.msk.msra.mxu0 %vm494_vm0, %v6503_v18  ;;  %7764 = vmatprep.mubr.msk.f32.mxu0 %vm225_vm1, %v9678_v29  ;;  %v11825_v18 = vld [vmem:[#allocation62_spill] sm:$0xff] }
 0x16b   : > { %7859 = vmatprep.subr.msk.mxu0 %vm494_vm0, %v6537_v52 }
 0x16d   : > { %7765 = vmatmul.mubr.msk.f32.gmra.mrb[2].mxu0 %vm225_vm1, %v9689_v28 }
 0x16e   : > { %7767 = vmatprep.mubr.msk.f32.mxu0 %vm225_vm1, %v11822_v19 }
 0x171   : > { %7768 = vmatmul.mubr.msk.f32.gmra.mrb[4].mxu0 %vm225_vm1, %v9702_v40 }
 0x172   : > { %7770 = vmatprep.mubr.msk.f32.mxu0 %vm225_vm1, %v11823_v17  ;;  %v11827_v17 = vld [vmem:[#allocation64_spill] sm:$0xff] }
 0x175   : > { %7771 = vmatmul.mubr.msk.f32.gmra.mrb[6].mxu0 %vm225_vm1, %v9715_v56 }
 0x176   : > { %7773 = vmatprep.mubr.msk.f32.mxu0 %vm225_vm1, %v11824_v24  ;;  %v11828_v24 = vld [vmem:[#allocation65_spill] sm:$0xff] }
 0x179   : > { %7774 = vmatmul.mubr.msk.f32.gmra.mrb[8].mxu0 %vm225_vm1, %v9728_v26 }
 0x17a   : > { %7776 = vmatprep.mubr.msk.f32.mxu0 %vm225_vm1, %v11825_v18  ;;  %v11829_v18 = vld [vmem:[#allocation66_spill] sm:$0xff] }
 0x17d   : > { %7777 = vmatmul.mubr.msk.f32.gmra.mrb[10].mxu0 %vm225_vm1, %v9741_v22 }
 0x17e   : > { %7779 = vmatprep.mubr.msk.f32.mxu0 %vm225_vm1, %v11826_v7  ;;  %v11830_v7 = vld [vmem:[#allocation68_spill] sm:$0xff] }
 0x181   : > { %7780 = vmatmul.mubr.msk.f32.gmra.mrb[12].mxu0 %vm225_vm1, %v9754_v21 }
 0x182   : > { %7782 = vmatprep.mubr.msk.f32.mxu0 %vm225_vm1, %v11827_v17  ;;  %v11831_v17 = vld [vmem:[#allocation69_spill] sm:$0xff] }
 0x185   : > { %7783 = vmatmul.mubr.msk.f32.gmra.mrb[14].mxu0 %vm225_vm1, %v9767_v16 }
 0x186   : > { %7785 = vmatprep.mubr.msk.f32.mxu0 %vm225_vm1, %v11828_v24  ;;  %v11832_v24 = vld [vmem:[#allocation71_spill] sm:$0xff] }
 0x189   : > { %7786 = vmatmul.mubr.msk.f32.gmra.mrb[16].mxu0 %vm225_vm1, %v9780_v15 }
 0x18a   : > { %7788 = vmatprep.mubr.msk.f32.mxu0 %vm225_vm1, %v11829_v18 }
 0x18d   : > { %7789 = vmatmul.mubr.msk.f32.gmra.mrb[18].mxu0 %vm225_vm1, %v9793_v5  ;;  %v2126_v5 = vrot.slane %v9930_v32, 2 }
 0x18e   : > { %7791 = vmatprep.mubr.msk.f32.mxu0 %vm225_vm1, %v11830_v7  ;;  %v2125_v7 = vrot.slane %v9924_v31, 2 }
 0x191   : > { %7792 = vmatmul.mubr.msk.f32.gmra.mrb[20].mxu0 %vm225_vm1, %v9806_v4 }
 0x192   : > { %7794 = vmatprep.mubr.msk.f32.mxu0 %vm225_vm1, %v11831_v17  ;;  %v10077_v17 = vsel %vm1178_vm4, %v2125_v7, %v2126_v5 }
 0x195   : > { %7795 = vmatmul.mubr.msk.f32.gmra.mrb[22].mxu0 %vm225_vm1, %v9819_v23  ;;  %v2128_v23 = vrot.slane %v386_v30, 2  ;;  %v6571_v30 = vld [vmem:[%s11548_s1 + $0x20] sm:$0xf] }
 0x196   : > { %7797 = vmatprep.mubr.msk.f32.mxu0 %vm225_vm1, %v11832_v24 }
 0x199   : > { %7798 = vmatmul.mubr.msk.f32.gmra.mrb[24].mxu0 %vm225_vm1, %v9832_v44 }
 0x19a   : > { %7800 = vmatprep.mubr.msk.f32.mxu0 %vm225_vm1, %v9836_v25  ;;  %v10084_v25 = vsel %vm1178_vm4, %v2126_v5, %v2128_v23 }
 0x19d   : > { %7801 = vmatmul.mubr.msk.f32.gmra.mrb[26].mxu0 %vm225_vm1, %v9845_v6 }
 0x19e   : > { %7803 = vmatprep.mubr.msk.f32.mxu0 %vm225_vm1, %v9849_v45 }
 0x1a1   : > { %7804 = vmatmul.mubr.msk.f32.gmra.mrb[28].mxu0 %vm225_vm1, %v9856_v3 }
 0x1a2   : > { %7806 = vmatprep.mubr.msk.f32.mxu0 %vm225_vm1, %v10077_v17 }
 0x1a5   : > { %7807 = vmatmul.mubr.msk.f32.gmra.mrb[30].mxu0 %vm225_vm1, %v10084_v25 }
 0x1a6   : > { %7811 = vmatprep.mubr.msk.f32.mxu0 %vm225_vm1, %v9235_v33  ;;  %v10151_v33 = vld [vmem:[#allocation2 + $0x198] sm:$0xff] }
 0x1a9   : > { %7812 = vmatmul.mubr.msk.f32.vlgmr.msra.gmra.mrb[0].mxu0 %vm225_vm1, %v9257_v36  ;;  %v10157_v36 = vld [vmem:[#allocation2 + $0x1a0] sm:$0xff] }
 0x1aa   : > { %7860 = vmatpush3.msk.msra.mxu0 %vm494_vm0, %v6537_v52  ;;  %7814 = vmatprep.mubr.msk.f32.mxu0 %vm225_vm1, %v9261_v37  ;;  %v11833_v37 = vld [vmem:[#allocation34_spill] sm:$0xff] }
 0x1ab   : > { %7909 = vmatprep.subr.msk.mxu0 %vm494_vm0, %v6571_v30 }
 0x1ad   : > { %7815 = vmatmul.mubr.msk.f32.gmra.mrb[2].mxu0 %vm225_vm1, %v9267_v38  ;;  %v11834_v38 = vld [vmem:[#allocation35_spill] sm:$0xff] }
 0x1ae   : > { %7817 = vmatprep.mubr.msk.f32.mxu0 %vm225_vm1, %v9269_v39  ;;  %v11835_v39 = vld [vmem:[#allocation36_spill] sm:$0xff] }
 0x1b1   : > { %7818 = vmatmul.mubr.msk.f32.gmra.mrb[4].mxu0 %vm225_vm1, %v9303_v46  ;;  %v11838_v46 = vld [vmem:[#allocation39_spill] sm:$0xff] }
 0x1b2   : > { %7820 = vmatprep.mubr.msk.f32.mxu0 %vm225_vm1, %v9307_v47  ;;  %v11839_v47 = vld [vmem:[#allocation40_spill] sm:$0xff] }
 0x1b5   : > { %7821 = vmatmul.mubr.msk.f32.gmra.mrb[6].mxu0 %vm225_vm1, %v9313_v48  ;;  %v11840_v48 = vld [vmem:[#allocation41_spill] sm:$0xff] }
 0x1b6   : > { %7823 = vmatprep.mubr.msk.f32.mxu0 %vm225_vm1, %v9315_v49  ;;  %v11841_v49 = vld [vmem:[#allocation42_spill] sm:$0xff] }
 0x1b9   : > { %7824 = vmatmul.mubr.msk.f32.gmra.mrb[8].mxu0 %vm225_vm1, %v9321_v50  ;;  %v11842_v50 = vld [vmem:[#allocation43_spill] sm:$0xff] }
 0x1ba   : > { %7826 = vmatprep.mubr.msk.f32.mxu0 %vm225_vm1, %v9323_v51  ;;  %v11843_v51 = vld [vmem:[#allocation45_spill] sm:$0xff] }
 0x1bd   : > { %7827 = vmatmul.mubr.msk.f32.gmra.mrb[10].mxu0 %vm225_vm1, %v9329_v54  ;;  %v11844_v54 = vld [vmem:[#allocation46_spill] sm:$0xff] }
 0x1be   : > { %7829 = vmatprep.mubr.msk.f32.mxu0 %vm225_vm1, %v9331_v55  ;;  %v11845_v55 = vld [vmem:[#allocation47_spill] sm:$0xff] }
 0x1c1   : > { %7830 = vmatmul.mubr.msk.f32.gmra.mrb[12].mxu0 %vm225_vm1, %v9342_v57  ;;  %v11846_v57 = vld [vmem:[#allocation48_spill] sm:$0xff] }
 0x1c2   : > { %7832 = vmatprep.mubr.msk.f32.mxu0 %vm225_vm1, %v9344_v58  ;;  %v11847_v58 = vld [vmem:[#allocation49_spill] sm:$0xff] }
 0x1c5   : > { %7833 = vmatmul.mubr.msk.f32.gmra.mrb[14].mxu0 %vm225_vm1, %v9350_v59  ;;  %v11848_v59 = vld [vmem:[#allocation50_spill] sm:$0xff] }
 0x1c6   : > { %7835 = vmatprep.mubr.msk.f32.mxu0 %vm225_vm1, %v9352_v60  ;;  %v11849_v60 = vld [vmem:[#allocation51_spill] sm:$0xff] }
 0x1c9   : > { %7836 = vmatmul.mubr.msk.f32.gmra.mrb[16].mxu0 %vm225_vm1, %v9358_v61  ;;  %v11850_v61 = vld [vmem:[#allocation52_spill] sm:$0xff] }
 0x1ca   : > { %7838 = vmatprep.mubr.msk.f32.mxu0 %vm225_vm1, %v9360_v62  ;;  %v11851_v62 = vld [vmem:[#allocation53_spill] sm:$0xff] }
 0x1cd   : > { %7839 = vmatmul.mubr.msk.f32.gmra.mrb[18].mxu0 %vm225_vm1, %v9366_v63  ;;  %v11852_v63 = vld [vmem:[#allocation54_spill] sm:$0xff] }
 0x1ce   : > { %7841 = vmatprep.mubr.msk.f32.mxu0 %vm225_vm1, %v9368_v0  ;;  %v2665_v0 = vrot.slane %v10151_v33, 1 }
 0x1d1   : > { %7842 = vmatmul.mubr.msk.f32.gmra.mrb[20].mxu0 %vm225_vm1, %v9374_v1  ;;  %v2666_v1 = vrot.slane %v10157_v36, 1 }
 0x1d2   : > { %7844 = vmatprep.mubr.msk.f32.mxu0 %vm225_vm1, %v9376_v2  ;;  %v389_v2 = vld [vmem:[#allocation2 + $0x1a8] sm:$0x3] }
 0x1d3   : > { %v2939_v5 = vrot.slane %v389_v2, 2 }
 0x1d5   : > { %7845 = vmatmul.mubr.msk.f32.gmra.mrb[22].mxu0 %vm225_vm1, %v9382_v11  ;;  %v2668_v11 = vrot.slane %v389_v2, 1 }
 0x1d6   : > { %7847 = vmatprep.mubr.msk.f32.mxu0 %vm225_vm1, %v9384_v14  ;;  %v2667_v14 = vsel %vm771_vm5, %v2665_v0, %v2666_v1 }
 0x1d9   : > { %7848 = vmatmul.mubr.msk.f32.gmra.mrb[24].mxu0 %vm225_vm1, %v9390_v53  ;;  %v2669_v53 = vsel %vm771_vm5, %v2666_v1, %v2668_v11 }
 0x1da   : > { %7850 = vmatprep.mubr.msk.f32.mxu0 %vm225_vm1, %v9394_v42  ;;  %v11836_v42 = vld [vmem:[#allocation37_spill] sm:$0xff] }
 0x1dd   : > { %7851 = vmatmul.mubr.msk.f32.gmra.mrb[26].mxu0 %vm225_vm1, %v9400_v43  ;;  %v11837_v43 = vld [vmem:[#allocation38_spill] sm:$0xff] }
 0x1de   : > { %7853 = vmatprep.mubr.msk.f32.mxu0 %vm225_vm1, %v9924_v31 }
 0x1e1   : > { %7854 = vmatmul.mubr.msk.f32.gmra.mrb[28].mxu0 %vm225_vm1, %v9930_v32 }
 0x1e2   : > { %7856 = vmatprep.mubr.msk.f32.mxu0 %vm225_vm1, %v10151_v33 }
 0x1e5   : > { %7857 = vmatmul.mubr.msk.f32.gmra.mrb[30].mxu0 %vm225_vm1, %v10157_v36 }
 0x1e6   : > { %7861 = vmatprep.mubr.msk.f32.mxu0 %vm225_vm1, %v9434_v41  ;;  %v11853_v41 = vld [vmem:[#allocation60_spill] sm:$0xff] }
 0x1e9   : > { %7862 = vmatmul.mubr.msk.f32.vlgmr.msra.gmra.mrb[0].mxu0 %vm225_vm1, %v9447_v9  ;;  %v11854_v9 = vld [vmem:[#allocation61_spill] sm:$0xff] }
 0x1ea   : > { %7910 = vmatpush3.msk.msra.mxu0 %vm494_vm0, %v6571_v30  ;;  %7864 = vmatprep.mubr.msk.f32.mxu0 %vm225_vm1, %v11799_v20  ;;  %v10318_v20 = vld [vmem:[%s11549_s2 + $0x8] sm:$0xf] }
 0x1ed   : > { %7865 = vmatmul.mubr.msk.f32.gmra.mrb[2].mxu0 %vm225_vm1, %v11833_v37  ;;  %v10334_v37 = vld [vmem:[#allocation2 + $0x10] sm:$0x3] }
 0x1ee   : > { %7867 = vmatprep.mubr.msk.f32.mxu0 %vm225_vm1, %v11834_v38 }
 0x1f1   : > { %7868 = vmatmul.mubr.msk.f32.gmra.mrb[4].mxu0 %vm225_vm1, %v11835_v39 }
 0x1f2   : > { %7870 = vmatprep.mubr.msk.f32.mxu0 %vm225_vm1, %v11836_v42 }
 0x1f5   : > { %7871 = vmatmul.mubr.msk.f32.gmra.mrb[6].mxu0 %vm225_vm1, %v11837_v43  ;;  %v4114_v43 = vrot.slane %v10334_v37, 2 }
 0x1f6   : > { %7873 = vmatprep.mubr.msk.f32.mxu0 %vm225_vm1, %v11838_v46 }
 0x1f9   : > { %7874 = vmatmul.mubr.msk.f32.gmra.mrb[8].mxu0 %vm225_vm1, %v11839_v47 }
 0x1fa   : > { %7876 = vmatprep.mubr.msk.f32.mxu0 %vm225_vm1, %v11840_v48 }
 0x1fd   : > { %7877 = vmatmul.mubr.msk.f32.gmra.mrb[10].mxu0 %vm225_vm1, %v11841_v49 }
 0x1fe   : > { %7879 = vmatprep.mubr.msk.f32.mxu0 %vm225_vm1, %v11842_v50 }
 0x201   : > { %7880 = vmatmul.mubr.msk.f32.gmra.mrb[12].mxu0 %vm225_vm1, %v11810_v34 }
 0x202   : > { %7882 = vmatprep.mubr.msk.f32.mxu0 %vm225_vm1, %v11843_v51 }
 0x205   : > { %7883 = vmatmul.mubr.msk.f32.gmra.mrb[14].mxu0 %vm225_vm1, %v11844_v54 }
 0x206   : > { %7885 = vmatprep.mubr.msk.f32.mxu0 %vm225_vm1, %v11845_v55 }
 0x209   : > { %7886 = vmatmul.mubr.msk.f32.gmra.mrb[16].mxu0 %vm225_vm1, %v11846_v57 }
 0x20a   : > { %7888 = vmatprep.mubr.msk.f32.mxu0 %vm225_vm1, %v11847_v58 }
 0x20d   : > { %7889 = vmatmul.mubr.msk.f32.gmra.mrb[18].mxu0 %vm225_vm1, %v11848_v59 }
 0x20e   : > { %7891 = vmatprep.mubr.msk.f32.mxu0 %vm225_vm1, %v11849_v60 }
 0x211   : > { %7892 = vmatmul.mubr.msk.f32.gmra.mrb[20].mxu0 %vm225_vm1, %v11850_v61 }
 0x212   : > { %7894 = vmatprep.mubr.msk.f32.mxu0 %vm225_vm1, %v11851_v62 }
 0x215   : > { %7895 = vmatmul.mubr.msk.f32.gmra.mrb[22].mxu0 %vm225_vm1, %v9612_v13  ;;  %v11855_v13 = vld [vmem:[#allocation62_spill] sm:$0xff] }
 0x216   : > { %7897 = vmatprep.mubr.msk.f32.mxu0 %vm225_vm1, %v11852_v63 }
 0x219   : > { %7898 = vmatmul.mubr.msk.f32.gmra.mrb[24].mxu0 %vm225_vm1, %v9637_v12  ;;  %v11856_v12 = vld [vmem:[#allocation63_spill] sm:$0xff] }
 0x21a   : > { %7900 = vmatprep.mubr.msk.f32.mxu0 %vm225_vm1, %v11820_v10  ;;  %v10325_v10 = vld [vmem:[%s11550_s3] ss:$0 sm:$0xff] }
 0x21d   : > { %7901 = vmatmul.mubr.msk.f32.gmra.mrb[26].mxu0 %vm225_vm1, %v11821_v8 }
 0x21e   : > { %7903 = vmatprep.mubr.msk.f32.mxu0 %vm225_vm1, %v10000_v35 }
 0x221   : > { %7904 = vmatmul.mubr.msk.f32.gmra.mrb[28].mxu0 %vm225_vm1, %v10007_v27 }
 0x222   : > { %7906 = vmatprep.mubr.msk.f32.mxu0 %vm225_vm1, %v2667_v14 }
 0x225   : > { %7907 = vmatmul.mubr.msk.f32.gmra.mrb[30].mxu0 %vm225_vm1, %v2669_v53 }
 0x226   : > { %7911 = vmatprep.mubr.msk.f32.mxu0 %vm225_vm1, %v9678_v29  ;;  %v11857_v29 = vld [vmem:[#allocation64_spill] sm:$0xff] }
 0x229   : > { %7912 = vmatmul.mubr.msk.f32.vlgmr.msra.gmra.mrb[0].mxu0 %vm225_vm1, %v9689_v28  ;;  %v11858_v28 = vld [vmem:[#allocation65_spill] sm:$0xff] }
 0x22a   : > { %7914 = vmatprep.mubr.msk.f32.mxu0 %vm225_vm1, %v11822_v19 }
 0x22d   : > { %7915 = vmatmul.mubr.msk.f32.gmra.mrb[2].mxu0 %vm225_vm1, %v9702_v40  ;;  %v11860_v40 = vld [vmem:[#allocation68_spill] sm:$0xff] }
 0x22e   : > { %7917 = vmatprep.mubr.msk.f32.mxu0 %vm225_vm1, %v11853_v41 }
 0x231   : > { %7918 = vmatmul.mubr.msk.f32.gmra.mrb[4].mxu0 %vm225_vm1, %v9715_v56  ;;  %v11859_v56 = vld [vmem:[#allocation67_spill] sm:$0xff] }
 0x232   : > { %7920 = vmatprep.mubr.msk.f32.mxu0 %vm225_vm1, %v11854_v9 }
 0x235   : > { %7921 = vmatmul.mubr.msk.f32.gmra.mrb[6].mxu0 %vm225_vm1, %v9728_v26  ;;  %v11861_v26 = vld [vmem:[#allocation69_spill] sm:$0xff] }
 0x236   : > { %7923 = vmatprep.mubr.msk.f32.mxu0 %vm225_vm1, %v11855_v13 }
 0x239   : > { %7924 = vmatmul.mubr.msk.f32.gmra.mrb[8].mxu0 %vm225_vm1, %v9741_v22  ;;  %v11862_v22 = vld [vmem:[#allocation70_spill] sm:$0xff] }
 0x23a   : > { %7926 = vmatprep.mubr.msk.f32.mxu0 %vm225_vm1, %v11856_v12 }
 0x23d   : > { %7927 = vmatmul.mubr.msk.f32.gmra.mrb[10].mxu0 %vm225_vm1, %v9754_v21  ;;  %v11863_v21 = vld [vmem:[#allocation72_spill] sm:$0xff] }
 0x23e   : > { %7929 = vmatprep.mubr.msk.f32.mxu0 %vm225_vm1, %v11857_v29 }
 0x241   : > { %7930 = vmatmul.mubr.msk.f32.gmra.mrb[12].mxu0 %vm225_vm1, %v9767_v16  ;;  %v2936_v16 = vrot.slane %v10151_v33, 2 }
 0x242   : > { %7932 = vmatprep.mubr.msk.f32.mxu0 %vm225_vm1, %v11858_v28 }
 0x245   : > { %7933 = vmatmul.mubr.msk.f32.gmra.mrb[14].mxu0 %vm225_vm1, %v9780_v15  ;;  %v2937_v15 = vrot.slane %v10157_v36, 2 }
 0x246   : > { %7935 = vmatprep.mubr.msk.f32.mxu0 %vm225_vm1, %v11829_v18 }
 0x247   : > { %v2940_v23 = vsel %vm1178_vm4, %v2937_v15, %v2939_v5 }
 0x249   : > { %7936 = vmatmul.mubr.msk.f32.gmra.mrb[16].mxu0 %vm225_vm1, %v11859_v56 }
 0x24a   : > { %7938 = vmatprep.mubr.msk.f32.mxu0 %vm225_vm1, %v11860_v40 }
 0x24d   : > { %7939 = vmatmul.mubr.msk.f32.gmra.mrb[18].mxu0 %vm225_vm1, %v9806_v4  ;;  %v2938_v4 = vsel %vm1178_vm4, %v2936_v16, %v2937_v15 }
 0x24e   : > { %7941 = vmatprep.mubr.msk.f32.mxu0 %vm225_vm1, %v11861_v26 }
 0x251   : > { %7942 = vmatmul.mubr.msk.f32.gmra.mrb[20].mxu0 %vm225_vm1, %v11862_v22 }
 0x252   : > { %7944 = vmatprep.mubr.msk.f32.mxu0 %vm225_vm1, %v11832_v24 }
 0x255   : > { %7945 = vmatmul.mubr.msk.f32.gmra.mrb[22].mxu0 %vm225_vm1, %v9832_v44  ;;  %v3332_v44 = vld [vmem:[%s11549_s2] sm:$0xf] }
 0x256   : > { %7947 = vmatprep.mubr.msk.f32.mxu0 %vm225_vm1, %v11863_v21  ;;  %7959 = vmatprep.subr.msk.mxu1 %vm494_vm0, %v3332_v44 }
 0x257   : > { %7960 = vmatpush3.msk.msra.mxu1 %vm494_vm0, %v3332_v44 }
 0x259   : > { %7948 = vmatmul.mubr.msk.f32.gmra.mrb[24].mxu0 %vm225_vm1, %v9845_v6  ;;  %v3271_v6 = vld [vmem:[#allocation2] sm:$0xff] }
 0x25a   : > { %7950 = vmatprep.mubr.msk.f32.mxu0 %vm225_vm1, %v9849_v45  ;;  %7961 = vmatprep.mubr.msk.f32.mxu1 %vm225_vm1, %v3271_v6  ;;  %v10300_v45 = vld [vmem:[#allocation2 + $0x8] sm:$0xff]  ;;  %v4111_v19 = vrot.slane %v3271_v6, 2 }
 0x25b   : > { %7962 = vmatmul.mubr.msk.f32.vlgmr.msra.gmra.mrb[0].mxu1 %vm225_vm1, %v10300_v45  ;;  %v3706_v31 = vrot.slane %v10300_v45, 1 }
 0x25d   : > { %7951 = vmatmul.mubr.msk.f32.gmra.mrb[26].mxu0 %vm225_vm1, %v9856_v3  ;;  %v3705_v3 = vrot.slane %v3271_v6, 1 }
 0x25e   : > { %7953 = vmatprep.mubr.msk.f32.mxu0 %vm225_vm1, %v10077_v17  ;;  %v4112_v17 = vrot.slane %v10300_v45, 2 }
 0x25f   : > { %v10313_v32 = vsel %vm771_vm5, %v3705_v3, %v3706_v31 }
 0x260   : > { %v10337_v38 = vsel %vm1178_vm4, %v4111_v19, %v4112_v17  ;;  %v10345_v49 = vsel %vm1178_vm4, %v4112_v17, %v4114_v43 }
 0x261   : > { %7954 = vmatmul.mubr.msk.f32.gmra.mrb[28].mxu0 %vm225_vm1, %v10084_v25  ;;  %v6639_v25 = vld [vmem:[%s11549_s2 + $0x4] sm:$0xf] }
 0x262   : > { %7956 = vmatprep.mubr.msk.f32.mxu0 %vm225_vm1, %v2938_v4  ;;  %8009 = vmatprep.subr.msk.mxu1 %vm494_vm0, %v6639_v25 }
 0x263   : > { %8010 = vmatpush3.msk.msra.mxu1 %vm494_vm0, %v6639_v25 }
 0x264   : > { %8059 = vmatprep.subr.msk.mxu1 %vm494_vm0, %v10318_v20 }
 0x265   : > { %7957 = vmatmul.mubr.msk.f32.gmra.mrb[30].mxu0 %vm225_vm1, %v2940_v23 }
 0x2fc   : > { %v7913_v34 = vpop.f32.mrb[0].mxu0 }
 0x2fd   : > { %v8409_v35 = vadd.f32 %v7913_v34, %v10325_v10  ;;  %v3016_v8 = vpop.f32.mrb[1].mxu0 }
 0x2fe   : > { %v8410_v27 = vadd.f32 %v10325_v10, %v3016_v8 }
 0x2ff   : > { %v3208_v52 = vmax.f32 %v8409_v35, 0.0 }
 0x300   : > { %v3207_v24 = vmax.f32 %v8410_v27, 0.0  ;;  %v7916_v18 = vpop.f32.mrb[2].mxu0 }
 0x301   : > { %3240 = vst.msk [vmem:[#allocation2 + $0x21] sm:$0xff] %vm225_vm1, %v3208_v52  ;;  %v8411_v7 = vadd.f32 %v7916_v18, %v10325_v10  ;;  %v3026_v30 = vpop.f32.mrb[3].mxu0 }
 0x302   : > { %3239 = vst.msk [vmem:[#allocation2 + $0x19] sm:$0xff] %vm225_vm1, %v3207_v24  ;;  %v8412_v33 = vadd.f32 %v10325_v10, %v3026_v30 }
 0x303   : > { %v3210_v36 = vmax.f32 %v8411_v7, 0.0 }
 0x304   : > { %v3209_v39 = vmax.f32 %v8412_v33, 0.0  ;;  %v7919_v42 = vpop.f32.mrb[4].mxu0 }
 0x305   : > { %3242 = vst.msk [vmem:[#allocation2 + $0x39] sm:$0xff] %vm225_vm1, %v3210_v36  ;;  %v8413_v46 = vadd.f32 %v7919_v42, %v10325_v10  ;;  %v3036_v47 = vpop.f32.mrb[5].mxu0 }
 0x306   : > { %3241 = vst.msk [vmem:[#allocation2 + $0x31] sm:$0xff] %vm225_vm1, %v3209_v39  ;;  %v8414_v48 = vadd.f32 %v10325_v10, %v3036_v47 }
 0x307   : > { %v3212_v50 = vmax.f32 %v8413_v46, 0.0 }
 0x308   : > { %v3211_v51 = vmax.f32 %v8414_v48, 0.0  ;;  %v7922_v54 = vpop.f32.mrb[6].mxu0 }
 0x309   : > { %3244 = vst.msk [vmem:[#allocation2 + $0x51] sm:$0xff] %vm225_vm1, %v3212_v50  ;;  %v8415_v55 = vadd.f32 %v7922_v54, %v10325_v10  ;;  %v3046_v57 = vpop.f32.mrb[7].mxu0  ;;  %v10349_v58 = vld [vmem:[#allocation2 + $0x18] sm:$0xff]  ;;  %v10351_v59 = vld [vmem:[#allocation2 + $0x20] sm:$0xff] }
 0x30a   : > { %3243 = vst.msk [vmem:[#allocation2 + $0x49] sm:$0xff] %vm225_vm1, %v3211_v51  ;;  %v8416_v60 = vadd.f32 %v10325_v10, %v3046_v57  ;;  %7964 = vmatprep.mubr.msk.f32.mxu1 %vm225_vm1, %v10349_v58 }
 0x30b   : > { %v3214_v61 = vmax.f32 %v8415_v55, 0.0  ;;  %7965 = vmatmul.mubr.msk.f32.gmra.mrb[2].mxu1 %vm225_vm1, %v10351_v59 }
 0x30c   : > { %v3213_v62 = vmax.f32 %v8416_v60, 0.0  ;;  %v7925_v63 = vpop.f32.mrb[8].mxu0 }
 0x30d   : > { %3246 = vst.msk [vmem:[#allocation2 + $0x69] sm:$0xff] %vm225_vm1, %v3214_v61  ;;  %v8417_v0 = vadd.f32 %v7925_v63, %v10325_v10  ;;  %v3056_v1 = vpop.f32.mrb[9].mxu0  ;;  %v10361_v2 = vld [vmem:[#allocation2 + $0x30] sm:$0xff]  ;;  %v10363_v11 = vld [vmem:[#allocation2 + $0x38] sm:$0xff] }
 0x30e   : > { %3245 = vst.msk [vmem:[#allocation2 + $0x61] sm:$0xff] %vm225_vm1, %v3213_v62  ;;  %v8418_v14 = vadd.f32 %v10325_v10, %v3056_v1  ;;  %7967 = vmatprep.mubr.msk.f32.mxu1 %vm225_vm1, %v10361_v2 }
 0x30f   : > { %v3216_v53 = vmax.f32 %v8417_v0, 0.0  ;;  %7968 = vmatmul.mubr.msk.f32.gmra.mrb[4].mxu1 %vm225_vm1, %v10363_v11 }
 0x310   : > { %v3215_v41 = vmax.f32 %v8418_v14, 0.0  ;;  %v7928_v9 = vpop.f32.mrb[10].mxu0 }
 0x311   : > { %3248 = vst.msk [vmem:[#allocation2 + $0x81] sm:$0xff] %vm225_vm1, %v3216_v53  ;;  %v8419_v13 = vadd.f32 %v7928_v9, %v10325_v10  ;;  %v3066_v12 = vpop.f32.mrb[11].mxu0  ;;  %v10373_v29 = vld [vmem:[#allocation2 + $0x48] sm:$0xff]  ;;  %v10375_v28 = vld [vmem:[#allocation2 + $0x50] sm:$0xff] }
 0x312   : > { %3247 = vst.msk [vmem:[#allocation2 + $0x79] sm:$0xff] %vm225_vm1, %v3215_v41  ;;  %v8420_v56 = vadd.f32 %v10325_v10, %v3066_v12  ;;  %7970 = vmatprep.mubr.msk.f32.mxu1 %vm225_vm1, %v10373_v29 }
 0x313   : > { %v3218_v40 = vmax.f32 %v8419_v13, 0.0  ;;  %7971 = vmatmul.mubr.msk.f32.gmra.mrb[6].mxu1 %vm225_vm1, %v10375_v28 }
 0x314   : > { %v3217_v26 = vmax.f32 %v8420_v56, 0.0  ;;  %v7931_v22 = vpop.f32.mrb[12].mxu0 }
 0x315   : > { %3250 = vst.msk [vmem:[#allocation2 + $0x99] sm:$0xff] %vm225_vm1, %v3218_v40  ;;  %v8421_v21 = vadd.f32 %v7931_v22, %v10325_v10  ;;  %v3076_v16 = vpop.f32.mrb[13].mxu0  ;;  %v10385_v15 = vld [vmem:[#allocation2 + $0x60] sm:$0xff]  ;;  %v10387_v5 = vld [vmem:[#allocation2 + $0x68] sm:$0xff] }
 0x316   : > { %3249 = vst.msk [vmem:[#allocation2 + $0x91] sm:$0xff] %vm225_vm1, %v3217_v26  ;;  %v8422_v4 = vadd.f32 %v10325_v10, %v3076_v16  ;;  %7973 = vmatprep.mubr.msk.f32.mxu1 %vm225_vm1, %v10385_v15 }
 0x317   : > { %v3220_v23 = vmax.f32 %v8421_v21, 0.0  ;;  %7974 = vmatmul.mubr.msk.f32.gmra.mrb[8].mxu1 %vm225_vm1, %v10387_v5 }
 0x318   : > { %v3219_v44 = vmax.f32 %v8422_v4, 0.0  ;;  %v7934_v6 = vpop.f32.mrb[14].mxu0 }
 0x319   : > { %3252 = vst.msk [vmem:[#allocation2 + $0xb1] sm:$0xff] %vm225_vm1, %v3220_v23  ;;  %v8423_v25 = vadd.f32 %v7934_v6, %v10325_v10  ;;  %v3086_v3 = vpop.f32.mrb[15].mxu0  ;;  %v10397_v34 = vld [vmem:[#allocation2 + $0x78] sm:$0xff]  ;;  %v10399_v35 = vld [vmem:[#allocation2 + $0x80] sm:$0xff] }
 0x31a   : > { %3251 = vst.msk [vmem:[#allocation2 + $0xa9] sm:$0xff] %vm225_vm1, %v3219_v44  ;;  %v8424_v8 = vadd.f32 %v10325_v10, %v3086_v3  ;;  %7976 = vmatprep.mubr.msk.f32.mxu1 %vm225_vm1, %v10397_v34 }
 0x31b   : > { %v3222_v27 = vmax.f32 %v8423_v25, 0.0  ;;  %7977 = vmatmul.mubr.msk.f32.gmra.mrb[10].mxu1 %vm225_vm1, %v10399_v35 }
 0x31c   : > { %v3221_v52 = vmax.f32 %v8424_v8, 0.0  ;;  %v7937_v19 = vpop.f32.mrb[16].mxu0 }
 0x31d   : > { %3254 = vst.msk [vmem:[#allocation2 + $0xc9] sm:$0xff] %vm225_vm1, %v3222_v27  ;;  %v8425_v17 = vadd.f32 %v7937_v19, %v10325_v10  ;;  %v3096_v24 = vpop.f32.mrb[17].mxu0  ;;  %v10409_v18 = vld [vmem:[#allocation2 + $0x90] sm:$0xff]  ;;  %v10411_v7 = vld [vmem:[#allocation2 + $0x98] sm:$0xff] }
 0x31e   : > { %3253 = vst.msk [vmem:[#allocation2 + $0xc1] sm:$0xff] %vm225_vm1, %v3221_v52  ;;  %v8426_v30 = vadd.f32 %v10325_v10, %v3096_v24  ;;  %7979 = vmatprep.mubr.msk.f32.mxu1 %vm225_vm1, %v10409_v18 }
 0x31f   : > { %v3224_v33 = vmax.f32 %v8425_v17, 0.0  ;;  %7980 = vmatmul.mubr.msk.f32.gmra.mrb[12].mxu1 %vm225_vm1, %v10411_v7 }
 0x320   : > { %v3223_v36 = vmax.f32 %v8426_v30, 0.0  ;;  %v7940_v39 = vpop.f32.mrb[18].mxu0 }
 0x321   : > { %3256 = vst.msk [vmem:[#allocation2 + $0xe1] sm:$0xff] %vm225_vm1, %v3224_v33  ;;  %v8427_v42 = vadd.f32 %v7940_v39, %v10325_v10  ;;  %v3106_v43 = vpop.f32.mrb[19].mxu0  ;;  %v10421_v46 = vld [vmem:[#allocation2 + $0xa8] sm:$0xff]  ;;  %v10423_v47 = vld [vmem:[#allocation2 + $0xb0] sm:$0xff] }
 0x322   : > { %3255 = vst.msk [vmem:[#allocation2 + $0xd9] sm:$0xff] %vm225_vm1, %v3223_v36  ;;  %v8428_v48 = vadd.f32 %v10325_v10, %v3106_v43  ;;  %7982 = vmatprep.mubr.msk.f32.mxu1 %vm225_vm1, %v10421_v46 }
 0x323   : > { %v3226_v50 = vmax.f32 %v8427_v42, 0.0  ;;  %7983 = vmatmul.mubr.msk.f32.gmra.mrb[14].mxu1 %vm225_vm1, %v10423_v47 }
 0x324   : > { %v3225_v51 = vmax.f32 %v8428_v48, 0.0  ;;  %v7943_v54 = vpop.f32.mrb[20].mxu0 }
 0x325   : > { %3258 = vst.msk [vmem:[#allocation2 + $0xf9] sm:$0xff] %vm225_vm1, %v3226_v50  ;;  %v8429_v55 = vadd.f32 %v7943_v54, %v10325_v10  ;;  %v3116_v57 = vpop.f32.mrb[21].mxu0  ;;  %v10433_v60 = vld [vmem:[#allocation2 + $0xc0] sm:$0xff]  ;;  %v10435_v61 = vld [vmem:[#allocation2 + $0xc8] sm:$0xff] }
 0x326   : > { %3257 = vst.msk [vmem:[#allocation2 + $0xf1] sm:$0xff] %vm225_vm1, %v3225_v51  ;;  %v8430_v62 = vadd.f32 %v10325_v10, %v3116_v57  ;;  %7985 = vmatprep.mubr.msk.f32.mxu1 %vm225_vm1, %v10433_v60 }
 0x327   : > { %v3228_v63 = vmax.f32 %v8429_v55, 0.0  ;;  %7986 = vmatmul.mubr.msk.f32.gmra.mrb[16].mxu1 %vm225_vm1, %v10435_v61 }
 0x328   : > { %v3227_v0 = vmax.f32 %v8430_v62, 0.0  ;;  %v7946_v1 = vpop.f32.mrb[22].mxu0 }
 0x329   : > { %3260 = vst.msk [vmem:[#allocation2 + $0x111] sm:$0xff] %vm225_vm1, %v3228_v63  ;;  %v8431_v14 = vadd.f32 %v7946_v1, %v10325_v10  ;;  %v3126_v53 = vpop.f32.mrb[23].mxu0  ;;  %v10445_v41 = vld [vmem:[#allocation2 + $0xd8] sm:$0xff]  ;;  %v10447_v9 = vld [vmem:[#allocation2 + $0xe0] sm:$0xff] }
 0x32a   : > { %3259 = vst.msk [vmem:[#allocation2 + $0x109] sm:$0xff] %vm225_vm1, %v3227_v0  ;;  %v8432_v13 = vadd.f32 %v10325_v10, %v3126_v53  ;;  %7988 = vmatprep.mubr.msk.f32.mxu1 %vm225_vm1, %v10445_v41 }
 0x32b   : > { %v3230_v12 = vmax.f32 %v8431_v14, 0.0  ;;  %7989 = vmatmul.mubr.msk.f32.gmra.mrb[18].mxu1 %vm225_vm1, %v10447_v9 }
 0x32c   : > { %v3229_v56 = vmax.f32 %v8432_v13, 0.0  ;;  %v7949_v40 = vpop.f32.mrb[24].mxu0 }
 0x32d   : > { %3262 = vst.msk [vmem:[#allocation2 + $0x129] sm:$0xff] %vm225_vm1, %v3230_v12  ;;  %v8433_v26 = vadd.f32 %v7949_v40, %v10325_v10  ;;  %v3136_v22 = vpop.f32.mrb[25].mxu0  ;;  %v10457_v21 = vld [vmem:[#allocation2 + $0xf0] sm:$0xff]  ;;  %v10459_v16 = vld [vmem:[#allocation2 + $0xf8] sm:$0xff]  ;;  %v3710_v12 = vrot.slane %v10349_v58, 1 }
 0x32e   : > { %3261 = vst.msk [vmem:[#allocation2 + $0x121] sm:$0xff] %vm225_vm1, %v3229_v56  ;;  %v8434_v4 = vadd.f32 %v10325_v10, %v3136_v22  ;;  %7991 = vmatprep.mubr.msk.f32.mxu1 %vm225_vm1, %v10457_v21  ;;  %v3711_v56 = vrot.slane %v10351_v59, 1  ;;  %v10524_v40 = vld [vmem:[#allocation2 + $0x28] sm:$0x3]  ;;  %v10535_v22 = vld [vmem:[%s11549_s2 + $0xc] sm:$0xf] }
 0x32f   : > { %v3232_v23 = vmax.f32 %v8433_v26, 0.0  ;;  %7992 = vmatmul.mubr.msk.f32.gmra.mrb[20].mxu1 %vm225_vm1, %v10459_v16  ;;  %v3713_v26 = vrot.slane %v10524_v40, 1 }
 0x330   : > { %v3231_v44 = vmax.f32 %v8434_v4, 0.0  ;;  %v7952_v6 = vpop.f32.mrb[26].mxu0  ;;  %v10539_v4 = vsel %vm771_vm5, %v3710_v12, %v3711_v56  ;;  %v3736_v12 = vrot.slane %v10411_v7, 1 }
 0x331   : > { %3264 = vst.msk [vmem:[#allocation2 + $0x141] sm:$0xff] %vm225_vm1, %v3232_v23  ;;  %v8435_v25 = vadd.f32 %v7952_v6, %v10325_v10  ;;  %v3146_v3 = vpop.f32.mrb[27].mxu0  ;;  %v10469_v8 = vld [vmem:[#allocation2 + $0x108] sm:$0xff]  ;;  %v10471_v27 = vld [vmem:[#allocation2 + $0x110] sm:$0xff]  ;;  %v3715_v23 = vrot.slane %v10361_v2, 1  ;;  %v10552_v45 = vsel %vm771_vm5, %v3711_v56, %v3713_v26 }
 0x332   : > { %3263 = vst.msk [vmem:[#allocation2 + $0x139] sm:$0xff] %vm225_vm1, %v3231_v44  ;;  %v8436_v52 = vadd.f32 %v10325_v10, %v3146_v3  ;;  %7994 = vmatprep.mubr.msk.f32.mxu1 %vm225_vm1, %v10469_v8  ;;  %v10543_v44 = vld [vmem:[#allocation2 + $0x40] sm:$0x3]  ;;  %v10562_v3 = vld [vmem:[#allocation2 + $0x58] sm:$0x3] }
 0x333   : > { %v3234_v19 = vmax.f32 %v8435_v25, 0.0  ;;  %7995 = vmatmul.mubr.msk.f32.gmra.mrb[22].mxu1 %vm225_vm1, %v10471_v27  ;;  %v3720_v25 = vrot.slane %v10373_v29, 1  ;;  %v10607_v56 = vld [vmem:[#allocation2 + $0xa0] sm:$0x3] }
 0x334   : > { %v3233_v17 = vmax.f32 %v8436_v52, 0.0  ;;  %v7955_v24 = vpop.f32.mrb[28].mxu0  ;;  %v3738_v26 = vrot.slane %v10607_v56, 1 }
 0x335   : > { %3266 = vst.msk [vmem:[#allocation2 + $0x159] sm:$0xff] %vm225_vm1, %v3234_v19  ;;  %v8437_v30 = vadd.f32 %v7955_v24, %v10325_v10  ;;  %v3156_v33 = vpop.f32.mrb[29].mxu0  ;;  %v10481_v36 = vld [vmem:[#allocation2 + $0x120] sm:$0xff]  ;;  %v10483_v39 = vld [vmem:[#allocation2 + $0x128] sm:$0xff]  ;;  %v3723_v19 = vrot.slane %v10562_v3, 1  ;;  %v3725_v24 = vrot.slane %v10385_v15, 1 }
 0x336   : > { %3265 = vst.msk [vmem:[#allocation2 + $0x151] sm:$0xff] %vm225_vm1, %v3233_v17  ;;  %v8438_v42 = vadd.f32 %v10325_v10, %v3156_v33  ;;  %7997 = vmatprep.mubr.msk.f32.mxu1 %vm225_vm1, %v10481_v36  ;;  %v10577_v33 = vld [vmem:[#allocation2 + $0x70] sm:$0x3] }
 0x337   : > { %v3236_v43 = vmax.f32 %v8437_v30, 0.0  ;;  %7998 = vmatmul.mubr.msk.f32.gmra.mrb[24].mxu1 %vm225_vm1, %v10483_v39  ;;  %v3726_v30 = vrot.slane %v10387_v5, 1 }
 0x338   : > { %v3235_v48 = vmax.f32 %v8438_v42, 0.0  ;;  %v7958_v50 = vpop.f32.mrb[30].mxu0 }
 0x339   : > { %3268 = vst.msk [vmem:[#allocation2 + $0x171] sm:$0xff] %vm225_vm1, %v3236_v43  ;;  %v8439_v51 = vadd.f32 %v7958_v50, %v10325_v10  ;;  %v3166_v54 = vpop.f32.mrb[31].mxu0  ;;  %v10493_v55 = vld [vmem:[#allocation2 + $0x138] sm:$0xff]  ;;  %v10495_v57 = vld [vmem:[#allocation2 + $0x140] sm:$0xff]  ;;  %v3728_v43 = vrot.slane %v10577_v33, 1  ;;  %v3730_v50 = vrot.slane %v10397_v34, 1 }
 0x33a   : > { %3267 = vst.msk [vmem:[#allocation2 + $0x169] sm:$0xff] %vm225_vm1, %v3235_v48  ;;  %v8440_v62 = vadd.f32 %v10325_v10, %v3166_v54  ;;  %8000 = vmatprep.mubr.msk.f32.mxu1 %vm225_vm1, %v10493_v55  ;;  %v3708_v10 = vrot.slane %v10334_v37, 1  ;;  %v10588_v48 = vsel %vm771_vm5, %v3725_v24, %v3726_v30  ;;  %v10592_v54 = vld [vmem:[#allocation2 + $0x88] sm:$0x3] }
 0x33b   : > { %v3238_v63 = vmax.f32 %v8439_v51, 0.0  ;;  %8001 = vmatmul.mubr.msk.f32.gmra.mrb[26].mxu1 %vm225_vm1, %v10495_v57  ;;  %11864 = vst [vmem:[#allocation33_spill] sm:$0xff] %v10588_v48  ;;  %v3731_v51 = vrot.slane %v10399_v35, 1 }
 0x33c   : > { %v3237_v0 = vmax.f32 %v8440_v62, 0.0  ;;  %v3709_v37 = vsel %vm771_vm5, %v3706_v31, %v3708_v10  ;;  %v3718_v31 = vrot.slane %v10543_v44, 1  ;;  %v10597_v62 = vsel %vm771_vm5, %v3726_v30, %v3728_v43 }
 0x33d   : > { %3270 = vst.msk [vmem:[#allocation2 + $0x189] sm:$0xff] %vm225_vm1, %v3238_v63  ;;  %v10504_v1 = vld [vmem:[#allocation2 + $0x150] sm:$0xff]  ;;  %v10506_v14 = vld [vmem:[#allocation2 + $0x158] sm:$0xff]  ;;  %11865 = vst [vmem:[#allocation44_spill] sm:$0xff] %v10597_v62  ;;  %v3733_v63 = vrot.slane %v10592_v54, 1  ;;  %v3735_v10 = vrot.slane %v10409_v18, 1 }
 0x33e   : > { %3269 = vst.msk [vmem:[#allocation2 + $0x181] sm:$0xff] %vm225_vm1, %v3237_v0  ;;  %8003 = vmatprep.mubr.msk.f32.mxu1 %vm225_vm1, %v10504_v1  ;;  %v10603_v0 = vsel %vm771_vm5, %v3730_v50, %v3731_v51  ;;  %v3745_v30 = vrot.slane %v10433_v60, 1  ;;  %v3746_v43 = vrot.slane %v10435_v61, 1  ;;  %v10637_v50 = vld [vmem:[#allocation2 + $0xd0] sm:$0x3] }
 0x33f   : > { %8004 = vmatmul.mubr.msk.f32.gmra.mrb[28].mxu1 %vm225_vm1, %v10506_v14  ;;  %11866 = vst [vmem:[#allocation57_spill] sm:$0xff] %v10603_v0 }
 0x341   : > { %v10514_v53 = vld [vmem:[#allocation2 + $0x168] sm:$0xff]  ;;  %v10516_v13 = vld [vmem:[#allocation2 + $0x170] sm:$0xff] }
 0x342   : > { %8006 = vmatprep.mubr.msk.f32.mxu1 %vm225_vm1, %v10514_v53 }
 0x343   : > { %8007 = vmatmul.mubr.msk.f32.gmra.mrb[30].mxu1 %vm225_vm1, %v10516_v13 }
 0x344   : > { %8011 = vmatprep.mubr.msk.f32.mxu1 %vm225_vm1, %v10313_v32  ;;  %v3716_v32 = vrot.slane %v10363_v11, 1 }
 0x346   : > { %v10558_v6 = vsel %vm771_vm5, %v3715_v23, %v3716_v32  ;;  %v10567_v52 = vsel %vm771_vm5, %v3716_v32, %v3718_v31  ;;  %v10618_v23 = vsel %vm771_vm5, %v3735_v10, %v3736_v12  ;;  %v3740_v32 = vrot.slane %v10421_v46, 1 }
 0x347   : > { %8012 = vmatmul.mubr.msk.f32.vlgmr.msra.gmra.mrb[0].mxu1 %vm225_vm1, %v3709_v37  ;;  %v10612_v37 = vsel %vm771_vm5, %v3731_v51, %v3733_v63  ;;  %11868 = vst [vmem:[#allocation59_spill] sm:$0xff] %v10618_v23  ;;  %v3741_v31 = vrot.slane %v10423_v47, 1  ;;  %v3748_v63 = vrot.slane %v10637_v50, 1  ;;  %v10648_v10 = vsel %vm771_vm5, %v3745_v30, %v3746_v43 }
 0x348   : > { %8060 = vmatpush3.msk.msra.mxu1 %vm494_vm0, %v10318_v20  ;;  %8014 = vmatprep.mubr.msk.f32.mxu1 %vm225_vm1, %v10539_v4  ;;  %v3721_v20 = vrot.slane %v10375_v28, 1  ;;  %11867 = vst [vmem:[#allocation58_spill] sm:$0xff] %v10612_v37  ;;  %11872 = vst [vmem:[#allocation35_spill] sm:$0xff] %v10648_v10 }
 0x349   : > { %8109 = vmatprep.subr.msk.mxu1 %vm494_vm0, %v10535_v22  ;;  %v10633_v24 = vsel %vm771_vm5, %v3740_v32, %v3741_v31  ;;  %v10652_v32 = vld [vmem:[#allocation2 + $0xe8] sm:$0x3] }
 0x34a   : > { %v10573_v17 = vsel %vm771_vm5, %v3720_v25, %v3721_v20  ;;  %v10582_v42 = vsel %vm771_vm5, %v3721_v20, %v3723_v19  ;;  %v10622_v25 = vld [vmem:[#allocation2 + $0xb8] sm:$0x3]  ;;  %v10627_v20 = vsel %vm771_vm5, %v3736_v12, %v3738_v26  ;;  %11870 = vst [vmem:[#allocation71_spill] sm:$0xff] %v10633_v24  ;;  %v3750_v12 = vrot.slane %v10445_v41, 1 }
 0x34b   : > { %8015 = vmatmul.mubr.msk.f32.gmra.mrb[2].mxu1 %vm225_vm1, %v10552_v45  ;;  %11869 = vst [vmem:[#allocation66_spill] sm:$0xff] %v10627_v20  ;;  %v3743_v19 = vrot.slane %v10622_v25, 1  ;;  %v3751_v26 = vrot.slane %v10447_v9, 1 }
 0x34c   : > { %8017 = vmatprep.mubr.msk.f32.mxu1 %vm225_vm1, %v10558_v6 }
 0x34d   : > { %v10642_v51 = vsel %vm771_vm5, %v3741_v31, %v3743_v19  ;;  %v10657_v31 = vsel %vm771_vm5, %v3746_v43, %v3748_v63  ;;  %v3753_v19 = vrot.slane %v10652_v32, 1  ;;  %v10663_v30 = vsel %vm771_vm5, %v3750_v12, %v3751_v26 }
 0x34e   : > { %11871 = vst [vmem:[#allocation34_spill] sm:$0xff] %v10642_v51  ;;  %11873 = vst [vmem:[#allocation36_spill] sm:$0xff] %v10657_v31 }
 0x34f   : > { %8018 = vmatmul.mubr.msk.f32.gmra.mrb[4].mxu1 %vm225_vm1, %v10567_v52  ;;  %11874 = vst [vmem:[#allocation37_spill] sm:$0xff] %v10663_v30  ;;  %v10672_v43 = vsel %vm771_vm5, %v3751_v26, %v3753_v19 }
 0x350   : > { %8020 = vmatprep.mubr.msk.f32.mxu1 %vm225_vm1, %v10573_v17  ;;  %11875 = vst [vmem:[#allocation38_spill] sm:$0xff] %v10672_v43 }
 0x353   : > { %8021 = vmatmul.mubr.msk.f32.gmra.mrb[6].mxu1 %vm225_vm1, %v10582_v42 }
 0x354   : > { %8023 = vmatprep.mubr.msk.f32.mxu1 %vm225_vm1, %v10588_v48  ;;  %v10742_v48 = vld [vmem:[#allocation2 + $0x178] sm:$0x3] }
 0x357   : > { %8024 = vmatmul.mubr.msk.f32.gmra.mrb[8].mxu1 %vm225_vm1, %v10597_v62  ;;  %v10727_v62 = vld [vmem:[#allocation2 + $0x160] sm:$0x3] }
 0x358   : > { %8026 = vmatprep.mubr.msk.f32.mxu1 %vm225_vm1, %v10603_v0  ;;  %v10712_v0 = vld [vmem:[#allocation2 + $0x148] sm:$0x3] }
 0x35b   : > { %8027 = vmatmul.mubr.msk.f32.gmra.mrb[10].mxu1 %vm225_vm1, %v10612_v37  ;;  %v10697_v37 = vld [vmem:[#allocation2 + $0x130] sm:$0x3] }
 0x35c   : > { %8029 = vmatprep.mubr.msk.f32.mxu1 %vm225_vm1, %v10618_v23  ;;  %v10682_v23 = vld [vmem:[#allocation2 + $0x118] sm:$0x3] }
 0x35d   : > { %v3763_v19 = vrot.slane %v10682_v23, 1 }
 0x35f   : > { %8030 = vmatmul.mubr.msk.f32.gmra.mrb[12].mxu1 %vm225_vm1, %v10627_v20  ;;  %v10667_v20 = vld [vmem:[#allocation2 + $0x100] sm:$0x3] }
 0x360   : > { %8032 = vmatprep.mubr.msk.f32.mxu1 %vm225_vm1, %v10633_v24  ;;  %v3756_v24 = vrot.slane %v10459_v16, 1  ;;  %v3758_v63 = vrot.slane %v10667_v20, 1 }
 0x362   : > { %v10687_v26 = vsel %vm771_vm5, %v3756_v24, %v3758_v63  ;;  %v3768_v63 = vrot.slane %v10697_v37, 1 }
 0x363   : > { %8033 = vmatmul.mubr.msk.f32.gmra.mrb[14].mxu1 %vm225_vm1, %v10642_v51  ;;  %v3755_v51 = vrot.slane %v10457_v21, 1  ;;  %11877 = vst [vmem:[#allocation40_spill] sm:$0xff] %v10687_v26 }
 0x364   : > { %8035 = vmatprep.mubr.msk.f32.mxu1 %vm225_vm1, %v10648_v10  ;;  %v3761_v10 = vrot.slane %v10471_v27, 1 }
 0x365   : > { %v10678_v12 = vsel %vm771_vm5, %v3755_v51, %v3756_v24 }
 0x366   : > { %11876 = vst [vmem:[#allocation39_spill] sm:$0xff] %v10678_v12  ;;  %v10702_v24 = vsel %vm771_vm5, %v3761_v10, %v3763_v19  ;;  %v3773_v19 = vrot.slane %v10712_v0, 1 }
 0x367   : > { %8036 = vmatmul.mubr.msk.f32.gmra.mrb[16].mxu1 %vm225_vm1, %v10657_v31  ;;  %v3760_v31 = vrot.slane %v10469_v8, 1  ;;  %11879 = vst [vmem:[#allocation42_spill] sm:$0xff] %v10702_v24 }
 0x368   : > { %8038 = vmatprep.mubr.msk.f32.mxu1 %vm225_vm1, %v10663_v30  ;;  %v3766_v30 = vrot.slane %v10483_v39, 1 }
 0x369   : > { %v10693_v51 = vsel %vm771_vm5, %v3760_v31, %v3761_v10 }
 0x36a   : > { %11878 = vst [vmem:[#allocation41_spill] sm:$0xff] %v10693_v51  ;;  %v10717_v10 = vsel %vm771_vm5, %v3766_v30, %v3768_v63  ;;  %v3778_v63 = vrot.slane %v10727_v62, 1 }
 0x36b   : > { %8039 = vmatmul.mubr.msk.f32.gmra.mrb[18].mxu1 %vm225_vm1, %v10672_v43  ;;  %v3765_v43 = vrot.slane %v10481_v36, 1  ;;  %11881 = vst [vmem:[#allocation45_spill] sm:$0xff] %v10717_v10 }
 0x36c   : > { %8041 = vmatprep.mubr.msk.f32.mxu1 %vm225_vm1, %v10678_v12  ;;  %v3771_v12 = vrot.slane %v10495_v57, 1 }
 0x36d   : > { %v10708_v31 = vsel %vm771_vm5, %v3765_v43, %v3766_v30 }
 0x36e   : > { %11880 = vst [vmem:[#allocation43_spill] sm:$0xff] %v10708_v31  ;;  %v10732_v30 = vsel %vm771_vm5, %v3771_v12, %v3773_v19  ;;  %v3783_v19 = vrot.slane %v10742_v48, 1 }
 0x36f   : > { %8042 = vmatmul.mubr.msk.f32.gmra.mrb[20].mxu1 %vm225_vm1, %v10687_v26  ;;  %v3770_v26 = vrot.slane %v10493_v55, 1  ;;  %11883 = vst [vmem:[#allocation47_spill] sm:$0xff] %v10732_v30 }
 0x370   : > { %8044 = vmatprep.mubr.msk.f32.mxu1 %vm225_vm1, %v10693_v51  ;;  %v3776_v51 = vrot.slane %v10506_v14, 1 }
 0x371   : > { %v10723_v43 = vsel %vm771_vm5, %v3770_v26, %v3771_v12 }
 0x372   : > { %11882 = vst [vmem:[#allocation46_spill] sm:$0xff] %v10723_v43  ;;  %v10747_v12 = vsel %vm771_vm5, %v3776_v51, %v3778_v63  ;;  %v4121_v63 = vrot.slane %v10361_v2, 2 }
 0x373   : > { %8045 = vmatmul.mubr.msk.f32.gmra.mrb[22].mxu1 %vm225_vm1, %v10702_v24  ;;  %v3775_v24 = vrot.slane %v10504_v1, 1  ;;  %11885 = vst [vmem:[#allocation49_spill] sm:$0xff] %v10747_v12 }
 0x374   : > { %8047 = vmatprep.mubr.msk.f32.mxu1 %vm225_vm1, %v10708_v31  ;;  %v3781_v31 = vrot.slane %v10516_v13, 1 }
 0x375   : > { %v10738_v26 = vsel %vm771_vm5, %v3775_v24, %v3776_v51  ;;  %v4119_v51 = vrot.slane %v10524_v40, 2 }
 0x376   : > { %11884 = vst [vmem:[#allocation48_spill] sm:$0xff] %v10738_v26 }
 0x377   : > { %8048 = vmatmul.mubr.msk.f32.gmra.mrb[24].mxu1 %vm225_vm1, %v10717_v10  ;;  %v3780_v10 = vrot.slane %v10514_v53, 1 }
 0x378   : > { %8050 = vmatprep.mubr.msk.f32.mxu1 %vm225_vm1, %v10723_v43  ;;  %v4116_v43 = vrot.slane %v10349_v58, 2 }
 0x379   : > { %v10753_v24 = vsel %vm771_vm5, %v3780_v10, %v3781_v31  ;;  %v10770_v10 = vld [vmem:[%s11549_s2 + $0x10] sm:$0xf] }
 0x37a   : > { %11886 = vst [vmem:[#allocation50_spill] sm:$0xff] %v10753_v24 }
 0x37b   : > { %8051 = vmatmul.mubr.msk.f32.gmra.mrb[26].mxu1 %vm225_vm1, %v10732_v30  ;;  %v10758_v30 = vsel %vm771_vm5, %v3781_v31, %v3783_v19  ;;  %v4122_v19 = vrot.slane %v10363_v11, 2 }
 0x37c   : > { %8053 = vmatprep.mubr.msk.f32.mxu1 %vm225_vm1, %v10738_v26  ;;  %v4117_v26 = vrot.slane %v10351_v59, 2 }
 0x37d   : > { %v10792_v40 = vsel %vm1178_vm4, %v4121_v63, %v4122_v19  ;;  %v4132_v63 = vrot.slane %v10387_v5, 2 }
 0x37e   : > { %v10775_v31 = vsel %vm1178_vm4, %v4116_v43, %v4117_v26  ;;  %11888 = vst [vmem:[#allocation52_spill] sm:$0xff] %v10792_v40  ;;  %v4126_v43 = vrot.slane %v10373_v29, 2 }
 0x37f   : > { %8054 = vmatmul.mubr.msk.f32.gmra.mrb[28].mxu1 %vm225_vm1, %v10747_v12  ;;  %11887 = vst [vmem:[#allocation51_spill] sm:$0xff] %v10775_v31 }
 0x380   : > { %8056 = vmatprep.mubr.msk.f32.mxu1 %vm225_vm1, %v10753_v24 }
 0x383   : > { %8057 = vmatmul.mubr.msk.f32.gmra.mrb[30].mxu1 %vm225_vm1, %v10758_v30 }
 0x384   : > { %8061 = vmatprep.mubr.msk.f32.mxu1 %vm225_vm1, %v10337_v38  ;;  %v10786_v38 = vsel %vm1178_vm4, %v4117_v26, %v4119_v51  ;;  %v4129_v26 = vrot.slane %v10562_v3, 2  ;;  %v4131_v51 = vrot.slane %v10385_v15, 2 }
 0x386   : > { %v10818_v3 = vsel %vm1178_vm4, %v4131_v51, %v4132_v63  ;;  %v4142_v51 = vrot.slane %v10411_v7, 2 }
 0x387   : > { %8062 = vmatmul.mubr.msk.f32.vlgmr.msra.gmra.mrb[0].mxu1 %vm225_vm1, %v10345_v49  ;;  %v4124_v49 = vrot.slane %v10543_v44, 2  ;;  %11890 = vst [vmem:[#allocation54_spill] sm:$0xff] %v10818_v3 }
 0x388   : > { %8110 = vmatpush3.msk.msra.mxu1 %vm494_vm0, %v10535_v22  ;;  %8064 = vmatprep.mubr.msk.f32.mxu1 %vm225_vm1, %v10775_v31  ;;  %v4127_v22 = vrot.slane %v10375_v28, 2 }
 0x389   : > { %8159 = vmatprep.subr.msk.mxu1 %vm494_vm0, %v10770_v10  ;;  %v10799_v31 = vsel %vm1178_vm4, %v4122_v19, %v4124_v49  ;;  %v4134_v19 = vrot.slane %v10577_v33, 2  ;;  %v4136_v49 = vrot.slane %v10397_v34, 2 }
 0x38a   : > { %v10805_v44 = vsel %vm1178_vm4, %v4126_v43, %v4127_v22  ;;  %v4137_v43 = vrot.slane %v10399_v35, 2 }
 0x38b   : > { %8065 = vmatmul.mubr.msk.f32.gmra.mrb[2].mxu1 %vm225_vm1, %v10786_v38  ;;  %11889 = vst [vmem:[#allocation53_spill] sm:$0xff] %v10805_v44 }
 0x38c   : > { %8067 = vmatprep.mubr.msk.f32.mxu1 %vm225_vm1, %v10792_v40  ;;  %v10812_v40 = vsel %vm1178_vm4, %v4127_v22, %v4129_v26  ;;  %v4139_v22 = vrot.slane %v10592_v54, 2  ;;  %v10831_v33 = vsel %vm1178_vm4, %v4136_v49, %v4137_v43  ;;  %v4141_v26 = vrot.slane %v10409_v18, 2 }
 0x38d   : > { %11891 = vst [vmem:[#allocation60_spill] sm:$0xff] %v10831_v33  ;;  %v4147_v49 = vrot.slane %v10423_v47, 2 }
 0x38e   : > { %v10844_v54 = vsel %vm1178_vm4, %v4141_v26, %v4142_v51  ;;  %v4152_v26 = vrot.slane %v10435_v61, 2 }
 0x38f   : > { %8068 = vmatmul.mubr.msk.f32.gmra.mrb[4].mxu1 %vm225_vm1, %v10799_v31  ;;  %11892 = vst [vmem:[#allocation61_spill] sm:$0xff] %v10844_v54 }
 0x390   : > { %8070 = vmatprep.mubr.msk.f32.mxu1 %vm225_vm1, %v10805_v44  ;;  %v10825_v44 = vsel %vm1178_vm4, %v4132_v63, %v4134_v19  ;;  %v4144_v63 = vrot.slane %v10607_v56, 2  ;;  %v4146_v19 = vrot.slane %v10421_v46, 2 }
 0x392   : > { %v10857_v56 = vsel %vm1178_vm4, %v4146_v19, %v4147_v49  ;;  %v4157_v19 = vrot.slane %v10447_v9, 2 }
 0x393   : > { %8071 = vmatmul.mubr.msk.f32.gmra.mrb[6].mxu1 %vm225_vm1, %v10812_v40  ;;  %11893 = vst [vmem:[#allocation62_spill] sm:$0xff] %v10857_v56 }
 0x394   : > { %8073 = vmatprep.mubr.msk.f32.mxu1 %vm225_vm1, %v10818_v3  ;;  %v10838_v3 = vsel %vm1178_vm4, %v4137_v43, %v4139_v22  ;;  %v4149_v43 = vrot.slane %v10622_v25, 2  ;;  %v4151_v22 = vrot.slane %v10433_v60, 2 }
 0x396   : > { %v10870_v25 = vsel %vm1178_vm4, %v4151_v22, %v4152_v26  ;;  %v4162_v22 = vrot.slane %v10459_v16, 2 }
 0x397   : > { %8074 = vmatmul.mubr.msk.f32.gmra.mrb[8].mxu1 %vm225_vm1, %v10825_v44  ;;  %11894 = vst [vmem:[#allocation63_spill] sm:$0xff] %v10870_v25 }
 0x398   : > { %8076 = vmatprep.mubr.msk.f32.mxu1 %vm225_vm1, %v10831_v33  ;;  %v10851_v33 = vsel %vm1178_vm4, %v4142_v51, %v4144_v63  ;;  %v4154_v51 = vrot.slane %v10637_v50, 2  ;;  %v4156_v63 = vrot.slane %v10445_v41, 2 }
 0x39a   : > { %v10883_v50 = vsel %vm1178_vm4, %v4156_v63, %v4157_v19  ;;  %v4167_v63 = vrot.slane %v10471_v27, 2 }
 0x39b   : > { %8077 = vmatmul.mubr.msk.f32.gmra.mrb[10].mxu1 %vm225_vm1, %v10838_v3  ;;  %11895 = vst [vmem:[#allocation64_spill] sm:$0xff] %v10883_v50 }
 0x39c   : > { %8079 = vmatprep.mubr.msk.f32.mxu1 %vm225_vm1, %v10844_v54  ;;  %v10864_v54 = vsel %vm1178_vm4, %v4147_v49, %v4149_v43  ;;  %v4159_v49 = vrot.slane %v10652_v32, 2  ;;  %v4161_v43 = vrot.slane %v10457_v21, 2 }
 0x39e   : > { %v10896_v32 = vsel %vm1178_vm4, %v4161_v43, %v4162_v22  ;;  %v4172_v43 = vrot.slane %v10483_v39, 2 }
 0x39f   : > { %8080 = vmatmul.mubr.msk.f32.gmra.mrb[12].mxu1 %vm225_vm1, %v10851_v33  ;;  %11896 = vst [vmem:[#allocation65_spill] sm:$0xff] %v10896_v32 }
 0x3a0   : > { %8082 = vmatprep.mubr.msk.f32.mxu1 %vm225_vm1, %v10857_v56  ;;  %v10877_v56 = vsel %vm1178_vm4, %v4152_v26, %v4154_v51  ;;  %v4164_v26 = vrot.slane %v10667_v20, 2  ;;  %v4166_v51 = vrot.slane %v10469_v8, 2 }
 0x3a2   : > { %v10909_v20 = vsel %vm1178_vm4, %v4166_v51, %v4167_v63  ;;  %v4177_v51 = vrot.slane %v10495_v57, 2 }
 0x3a3   : > { %8083 = vmatmul.mubr.msk.f32.gmra.mrb[14].mxu1 %vm225_vm1, %v10864_v54  ;;  %11898 = vst [vmem:[#allocation68_spill] sm:$0xff] %v10909_v20 }
 0x3a4   : > { %8085 = vmatprep.mubr.msk.f32.mxu1 %vm225_vm1, %v10870_v25  ;;  %v10890_v25 = vsel %vm1178_vm4, %v4157_v19, %v4159_v49  ;;  %v4169_v19 = vrot.slane %v10682_v23, 2  ;;  %v4171_v49 = vrot.slane %v10481_v36, 2 }
 0x3a6   : > { %v10922_v23 = vsel %vm1178_vm4, %v4171_v49, %v4172_v43  ;;  %v4182_v49 = vrot.slane %v10506_v14, 2 }
 0x3a7   : > { %8086 = vmatmul.mubr.msk.f32.gmra.mrb[16].mxu1 %vm225_vm1, %v10877_v56  ;;  %11899 = vst [vmem:[#allocation69_spill] sm:$0xff] %v10922_v23 }
 0x3a8   : > { %8088 = vmatprep.mubr.msk.f32.mxu1 %vm225_vm1, %v10883_v50  ;;  %v10903_v50 = vsel %vm1178_vm4, %v4162_v22, %v4164_v26  ;;  %v4174_v22 = vrot.slane %v10697_v37, 2  ;;  %v4176_v26 = vrot.slane %v10493_v55, 2 }
 0x3a9   : > { %11897 = vst [vmem:[#allocation67_spill] sm:$0xff] %v10903_v50 }
 0x3aa   : > { %v10935_v37 = vsel %vm1178_vm4, %v4176_v26, %v4177_v51  ;;  %v4187_v26 = vrot.slane %v10516_v13, 2 }
 0x3ab   : > { %8089 = vmatmul.mubr.msk.f32.gmra.mrb[18].mxu1 %vm225_vm1, %v10890_v25  ;;  %11901 = vst [vmem:[#allocation72_spill] sm:$0xff] %v10935_v37 }
 0x3ac   : > { %8091 = vmatprep.mubr.msk.f32.mxu1 %vm225_vm1, %v10896_v32  ;;  %v10916_v32 = vsel %vm1178_vm4, %v4167_v63, %v4169_v19  ;;  %v4179_v63 = vrot.slane %v10712_v0, 2  ;;  %v4181_v19 = vrot.slane %v10504_v1, 2 }
 0x3ae   : > { %v10948_v0 = vsel %vm1178_vm4, %v4181_v19, %v4182_v49  ;;  %v11905_v19 = vld [vmem:[#allocation57_spill] sm:$0xff] }
 0x3af   : > { %8092 = vmatmul.mubr.msk.f32.gmra.mrb[20].mxu1 %vm225_vm1, %v10903_v50  ;;  %11902 = vst [vmem:[#allocation73_spill] sm:$0xff] %v10948_v0 }
 0x3b0   : > { %8094 = vmatprep.mubr.msk.f32.mxu1 %vm225_vm1, %v10909_v20  ;;  %v10929_v20 = vsel %vm1178_vm4, %v4172_v43, %v4174_v22  ;;  %v4184_v43 = vrot.slane %v10727_v62, 2  ;;  %v4186_v22 = vrot.slane %v10514_v53, 2 }
 0x3b1   : > { %11900 = vst [vmem:[#allocation70_spill] sm:$0xff] %v10929_v20 }
 0x3b2   : > { %v10961_v62 = vsel %vm1178_vm4, %v4186_v22, %v4187_v26  ;;  %v11908_v22 = vld [vmem:[#allocation66_spill] sm:$0xff] }
 0x3b3   : > { %8095 = vmatmul.mubr.msk.f32.gmra.mrb[22].mxu1 %vm225_vm1, %v10916_v32 }
 0x3b4   : > { %8097 = vmatprep.mubr.msk.f32.mxu1 %vm225_vm1, %v10922_v23  ;;  %v10942_v23 = vsel %vm1178_vm4, %v4177_v51, %v4179_v63  ;;  %v4189_v51 = vrot.slane %v10742_v48, 2  ;;  %v6775_v48 = vld [vmem:[%s11549_s2 + $0x14] sm:$0xf] }
 0x3b6   : > { %v10966_v63 = vsel %vm1178_vm4, %v4187_v26, %v4189_v51  ;;  %v11909_v26 = vld [vmem:[#allocation71_spill] sm:$0xff]  ;;  %v11910_v51 = vld [vmem:[#allocation34_spill] sm:$0xff] }
 0x3b7   : > { %8098 = vmatmul.mubr.msk.f32.gmra.mrb[24].mxu1 %vm225_vm1, %v10929_v20 }
 0x3b8   : > { %8100 = vmatprep.mubr.msk.f32.mxu1 %vm225_vm1, %v10935_v37  ;;  %v10955_v37 = vsel %vm1178_vm4, %v4182_v49, %v4184_v43  ;;  %v11906_v49 = vld [vmem:[#allocation58_spill] sm:$0xff]  ;;  %v11907_v43 = vld [vmem:[#allocation59_spill] sm:$0xff] }
 0x3bb   : > { %8101 = vmatmul.mubr.msk.f32.gmra.mrb[26].mxu1 %vm225_vm1, %v10942_v23 }
 0x3bc   : > { %8103 = vmatprep.mubr.msk.f32.mxu1 %vm225_vm1, %v10948_v0 }
 0x3bf   : > { %8104 = vmatmul.mubr.msk.f32.gmra.mrb[28].mxu1 %vm225_vm1, %v10955_v37 }
 0x3c0   : > { %8106 = vmatprep.mubr.msk.f32.mxu1 %vm225_vm1, %v10961_v62 }
 0x3c3   : > { %8107 = vmatmul.mubr.msk.f32.gmra.mrb[30].mxu1 %vm225_vm1, %v10966_v63 }
 0x3c4   : > { %8111 = vmatprep.mubr.msk.f32.mxu1 %vm225_vm1, %v10349_v58  ;;  %v11036_v58 = vld [vmem:[#allocation2 + $0x180] sm:$0xff] }
 0x3c7   : > { %8112 = vmatmul.mubr.msk.f32.vlgmr.msra.gmra.mrb[0].mxu1 %vm225_vm1, %v10351_v59  ;;  %v11040_v59 = vld [vmem:[#allocation2 + $0x188] sm:$0xff] }
 0x3c8   : > { %8160 = vmatpush3.msk.msra.mxu1 %vm494_vm0, %v10770_v10  ;;  %8114 = vmatprep.mubr.msk.f32.mxu1 %vm225_vm1, %v10361_v2  ;;  %v6809_v10 = vld [vmem:[%s11549_s2 + $0x18] sm:$0xf] }
 0x3c9   : > { %8209 = vmatprep.subr.msk.mxu1 %vm494_vm0, %v6775_v48 }
 0x3cb   : > { %8115 = vmatmul.mubr.msk.f32.gmra.mrb[2].mxu1 %vm225_vm1, %v10363_v11 }
 0x3cc   : > { %8117 = vmatprep.mubr.msk.f32.mxu1 %vm225_vm1, %v10373_v29 }
 0x3cf   : > { %8118 = vmatmul.mubr.msk.f32.gmra.mrb[4].mxu1 %vm225_vm1, %v10375_v28 }
 0x3d0   : > { %8120 = vmatprep.mubr.msk.f32.mxu1 %vm225_vm1, %v10385_v15 }
 0x3d3   : > { %8121 = vmatmul.mubr.msk.f32.gmra.mrb[6].mxu1 %vm225_vm1, %v10387_v5 }
 0x3d4   : > { %8123 = vmatprep.mubr.msk.f32.mxu1 %vm225_vm1, %v10397_v34 }
 0x3d7   : > { %8124 = vmatmul.mubr.msk.f32.gmra.mrb[8].mxu1 %vm225_vm1, %v10399_v35 }
 0x3d8   : > { %8126 = vmatprep.mubr.msk.f32.mxu1 %vm225_vm1, %v10409_v18 }
 0x3db   : > { %8127 = vmatmul.mubr.msk.f32.gmra.mrb[10].mxu1 %vm225_vm1, %v10411_v7 }
 0x3dc   : > { %8129 = vmatprep.mubr.msk.f32.mxu1 %vm225_vm1, %v10421_v46 }
 0x3df   : > { %8130 = vmatmul.mubr.msk.f32.gmra.mrb[12].mxu1 %vm225_vm1, %v10423_v47 }
 0x3e0   : > { %8132 = vmatprep.mubr.msk.f32.mxu1 %vm225_vm1, %v10433_v60 }
 0x3e3   : > { %8133 = vmatmul.mubr.msk.f32.gmra.mrb[14].mxu1 %vm225_vm1, %v10435_v61 }
 0x3e4   : > { %8135 = vmatprep.mubr.msk.f32.mxu1 %vm225_vm1, %v10445_v41 }
 0x3e7   : > { %8136 = vmatmul.mubr.msk.f32.gmra.mrb[16].mxu1 %vm225_vm1, %v10447_v9 }
 0x3e8   : > { %8138 = vmatprep.mubr.msk.f32.mxu1 %vm225_vm1, %v10457_v21 }
 0x3eb   : > { %8139 = vmatmul.mubr.msk.f32.gmra.mrb[18].mxu1 %vm225_vm1, %v10459_v16 }
 0x3ec   : > { %8141 = vmatprep.mubr.msk.f32.mxu1 %vm225_vm1, %v10469_v8 }
 0x3ef   : > { %8142 = vmatmul.mubr.msk.f32.gmra.mrb[20].mxu1 %vm225_vm1, %v10471_v27 }
 0x3f0   : > { %8144 = vmatprep.mubr.msk.f32.mxu1 %vm225_vm1, %v10481_v36 }
 0x3f3   : > { %8145 = vmatmul.mubr.msk.f32.gmra.mrb[22].mxu1 %vm225_vm1, %v10483_v39 }
 0x3f4   : > { %8147 = vmatprep.mubr.msk.f32.mxu1 %vm225_vm1, %v10493_v55 }
 0x3f7   : > { %8148 = vmatmul.mubr.msk.f32.gmra.mrb[24].mxu1 %vm225_vm1, %v10495_v57 }
 0x3f8   : > { %8150 = vmatprep.mubr.msk.f32.mxu1 %vm225_vm1, %v10504_v1 }
 0x3fb   : > { %8151 = vmatmul.mubr.msk.f32.gmra.mrb[26].mxu1 %vm225_vm1, %v10506_v14 }
 0x3fc   : > { %8153 = vmatprep.mubr.msk.f32.mxu1 %vm225_vm1, %v10514_v53 }
 0x3ff   : > { %8154 = vmatmul.mubr.msk.f32.gmra.mrb[28].mxu1 %vm225_vm1, %v10516_v13 }
 0x400   : > { %8156 = vmatprep.mubr.msk.f32.mxu1 %vm225_vm1, %v11036_v58 }
 0x403   : > { %8157 = vmatmul.mubr.msk.f32.gmra.mrb[30].mxu1 %vm225_vm1, %v11040_v59 }
 0x404   : > { %8161 = vmatprep.mubr.msk.f32.mxu1 %vm225_vm1, %v10539_v4  ;;  %v11903_v4 = vld [vmem:[#allocation33_spill] sm:$0xff] }
 0x407   : > { %8162 = vmatmul.mubr.msk.f32.vlgmr.msra.gmra.mrb[0].mxu1 %vm225_vm1, %v10552_v45  ;;  %v11904_v45 = vld [vmem:[#allocation44_spill] sm:$0xff] }
 0x408   : > { %8210 = vmatpush3.msk.msra.mxu1 %vm494_vm0, %v6775_v48  ;;  %8164 = vmatprep.mubr.msk.f32.mxu1 %vm225_vm1, %v10558_v6  ;;  %v11911_v48 = vld [vmem:[#allocation35_spill] sm:$0xff] }
 0x409   : > { %8259 = vmatprep.subr.msk.mxu1 %vm494_vm0, %v6809_v10 }
 0x40b   : > { %8165 = vmatmul.mubr.msk.f32.gmra.mrb[2].mxu1 %vm225_vm1, %v10567_v52 }
 0x40c   : > { %8167 = vmatprep.mubr.msk.f32.mxu1 %vm225_vm1, %v10573_v17 }
 0x40f   : > { %8168 = vmatmul.mubr.msk.f32.gmra.mrb[4].mxu1 %vm225_vm1, %v10582_v42 }
 0x410   : > { %8170 = vmatprep.mubr.msk.f32.mxu1 %vm225_vm1, %v11903_v4 }
 0x413   : > { %8171 = vmatmul.mubr.msk.f32.gmra.mrb[6].mxu1 %vm225_vm1, %v11904_v45  ;;  %v11912_v45 = vld [vmem:[#allocation36_spill] sm:$0xff] }
 0x414   : > { %8173 = vmatprep.mubr.msk.f32.mxu1 %vm225_vm1, %v11905_v19  ;;  %v11913_v19 = vld [vmem:[#allocation37_spill] sm:$0xff] }
 0x417   : > { %8174 = vmatmul.mubr.msk.f32.gmra.mrb[8].mxu1 %vm225_vm1, %v11906_v49  ;;  %v11914_v49 = vld [vmem:[#allocation38_spill] sm:$0xff] }
 0x418   : > { %8176 = vmatprep.mubr.msk.f32.mxu1 %vm225_vm1, %v11907_v43  ;;  %v11915_v43 = vld [vmem:[#allocation39_spill] sm:$0xff] }
 0x41b   : > { %8177 = vmatmul.mubr.msk.f32.gmra.mrb[10].mxu1 %vm225_vm1, %v11908_v22  ;;  %v11916_v22 = vld [vmem:[#allocation40_spill] sm:$0xff] }
 0x41c   : > { %8179 = vmatprep.mubr.msk.f32.mxu1 %vm225_vm1, %v11909_v26  ;;  %v11917_v26 = vld [vmem:[#allocation41_spill] sm:$0xff] }
 0x41f   : > { %8180 = vmatmul.mubr.msk.f32.gmra.mrb[12].mxu1 %vm225_vm1, %v11910_v51  ;;  %v11918_v51 = vld [vmem:[#allocation42_spill] sm:$0xff] }
 0x420   : > { %8182 = vmatprep.mubr.msk.f32.mxu1 %vm225_vm1, %v11911_v48  ;;  %v11919_v48 = vld [vmem:[#allocation43_spill] sm:$0xff] }
 0x423   : > { %8183 = vmatmul.mubr.msk.f32.gmra.mrb[14].mxu1 %vm225_vm1, %v11912_v45  ;;  %v11920_v45 = vld [vmem:[#allocation45_spill] sm:$0xff] }
 0x424   : > { %8185 = vmatprep.mubr.msk.f32.mxu1 %vm225_vm1, %v11913_v19  ;;  %v11921_v19 = vld [vmem:[#allocation46_spill] sm:$0xff] }
 0x427   : > { %8186 = vmatmul.mubr.msk.f32.gmra.mrb[16].mxu1 %vm225_vm1, %v11914_v49  ;;  %v11922_v49 = vld [vmem:[#allocation47_spill] sm:$0xff] }
 0x428   : > { %8188 = vmatprep.mubr.msk.f32.mxu1 %vm225_vm1, %v11915_v43  ;;  %v11923_v43 = vld [vmem:[#allocation48_spill] sm:$0xff] }
 0x42b   : > { %8189 = vmatmul.mubr.msk.f32.gmra.mrb[18].mxu1 %vm225_vm1, %v11916_v22  ;;  %v4787_v22 = vrot.slane %v11040_v59, 1 }
 0x42c   : > { %8191 = vmatprep.mubr.msk.f32.mxu1 %vm225_vm1, %v11917_v26  ;;  %v4786_v26 = vrot.slane %v11036_v58, 1 }
 0x42f   : > { %8192 = vmatmul.mubr.msk.f32.gmra.mrb[20].mxu1 %vm225_vm1, %v11918_v51 }
 0x430   : > { %8194 = vmatprep.mubr.msk.f32.mxu1 %vm225_vm1, %v11919_v48  ;;  %v3321_v48 = vld [vmem:[#allocation2 + $0x190] sm:$0x3] }
 0x433   : > { %8195 = vmatmul.mubr.msk.f32.gmra.mrb[22].mxu1 %vm225_vm1, %v11920_v45  ;;  %v4789_v45 = vrot.slane %v3321_v48, 1 }
 0x434   : > { %8197 = vmatprep.mubr.msk.f32.mxu1 %vm225_vm1, %v11921_v19 }
 0x437   : > { %8198 = vmatmul.mubr.msk.f32.gmra.mrb[24].mxu1 %vm225_vm1, %v11922_v49  ;;  %v11112_v49 = vsel %vm771_vm5, %v4786_v26, %v4787_v22  ;;  %v11925_v26 = vld [vmem:[#allocation52_spill] sm:$0xff] }
 0x438   : > { %8200 = vmatprep.mubr.msk.f32.mxu1 %vm225_vm1, %v11923_v43  ;;  %v11117_v43 = vsel %vm771_vm5, %v4787_v22, %v4789_v45  ;;  %v11926_v45 = vld [vmem:[#allocation53_spill] sm:$0xff]  ;;  %v11930_v22 = vld [vmem:[#allocation62_spill] sm:$0xff] }
 0x43b   : > { %8201 = vmatmul.mubr.msk.f32.gmra.mrb[26].mxu1 %vm225_vm1, %v10747_v12  ;;  %v11924_v12 = vld [vmem:[#allocation51_spill] sm:$0xff] }
 0x43c   : > { %8203 = vmatprep.mubr.msk.f32.mxu1 %vm225_vm1, %v10753_v24  ;;  %v6843_v24 = vld [vmem:[%s11549_s2 + $0x1c] sm:$0xf] }
 0x43f   : > { %8204 = vmatmul.mubr.msk.f32.gmra.mrb[28].mxu1 %vm225_vm1, %v10758_v30 }
 0x440   : > { %8206 = vmatprep.mubr.msk.f32.mxu1 %vm225_vm1, %v11112_v49 }
 0x443   : > { %8207 = vmatmul.mubr.msk.f32.gmra.mrb[30].mxu1 %vm225_vm1, %v11117_v43 }
 0x444   : > { %8211 = vmatprep.mubr.msk.f32.mxu1 %vm225_vm1, %v11924_v12  ;;  %v11927_v12 = vld [vmem:[#allocation54_spill] sm:$0xff] }
 0x447   : > { %8212 = vmatmul.mubr.msk.f32.vlgmr.msra.gmra.mrb[0].mxu1 %vm225_vm1, %v10786_v38  ;;  %v11928_v38 = vld [vmem:[#allocation60_spill] sm:$0xff] }
 0x448   : > { %8260 = vmatpush3.msk.msra.mxu1 %vm494_vm0, %v6809_v10  ;;  %8214 = vmatprep.mubr.msk.f32.mxu1 %vm225_vm1, %v11925_v26  ;;  %v11929_v10 = vld [vmem:[#allocation61_spill] sm:$0xff] }
 0x449   : > { %8309 = vmatprep.subr.msk.mxu1 %vm494_vm0, %v6843_v24 }
 0x44b   : > { %8215 = vmatmul.mubr.msk.f32.gmra.mrb[2].mxu1 %vm225_vm1, %v10799_v31 }
 0x44c   : > { %8217 = vmatprep.mubr.msk.f32.mxu1 %vm225_vm1, %v11926_v45 }
 0x44f   : > { %8218 = vmatmul.mubr.msk.f32.gmra.mrb[4].mxu1 %vm225_vm1, %v10812_v40 }
 0x450   : > { %8220 = vmatprep.mubr.msk.f32.mxu1 %vm225_vm1, %v11927_v12  ;;  %v11931_v12 = vld [vmem:[#allocation63_spill] sm:$0xff] }
 0x453   : > { %8221 = vmatmul.mubr.msk.f32.gmra.mrb[6].mxu1 %vm225_vm1, %v10825_v44 }
 0x454   : > { %8223 = vmatprep.mubr.msk.f32.mxu1 %vm225_vm1, %v11928_v38  ;;  %v11932_v38 = vld [vmem:[#allocation64_spill] sm:$0xff] }
 0x457   : > { %8224 = vmatmul.mubr.msk.f32.gmra.mrb[8].mxu1 %vm225_vm1, %v10838_v3 }
 0x458   : > { %8226 = vmatprep.mubr.msk.f32.mxu1 %vm225_vm1, %v11929_v10  ;;  %v11933_v10 = vld [vmem:[#allocation65_spill] sm:$0xff] }
 0x45b   : > { %8227 = vmatmul.mubr.msk.f32.gmra.mrb[10].mxu1 %vm225_vm1, %v10851_v33 }
 0x45c   : > { %8229 = vmatprep.mubr.msk.f32.mxu1 %vm225_vm1, %v11930_v22  ;;  %v11934_v22 = vld [vmem:[#allocation68_spill] sm:$0xff] }
 0x45f   : > { %8230 = vmatmul.mubr.msk.f32.gmra.mrb[12].mxu1 %vm225_vm1, %v10864_v54 }
 0x460   : > { %8232 = vmatprep.mubr.msk.f32.mxu1 %vm225_vm1, %v11931_v12  ;;  %v11935_v12 = vld [vmem:[#allocation69_spill] sm:$0xff] }
 0x463   : > { %8233 = vmatmul.mubr.msk.f32.gmra.mrb[14].mxu1 %vm225_vm1, %v10877_v56 }
 0x464   : > { %8235 = vmatprep.mubr.msk.f32.mxu1 %vm225_vm1, %v11932_v38  ;;  %v11936_v38 = vld [vmem:[#allocation72_spill] sm:$0xff] }
 0x467   : > { %8236 = vmatmul.mubr.msk.f32.gmra.mrb[16].mxu1 %vm225_vm1, %v10890_v25 }
 0x468   : > { %8238 = vmatprep.mubr.msk.f32.mxu1 %vm225_vm1, %v11933_v10 }
 0x46b   : > { %8239 = vmatmul.mubr.msk.f32.gmra.mrb[18].mxu1 %vm225_vm1, %v10903_v50  ;;  %v5058_v50 = vrot.slane %v11040_v59, 2 }
 0x46c   : > { %8241 = vmatprep.mubr.msk.f32.mxu1 %vm225_vm1, %v11934_v22  ;;  %v5057_v22 = vrot.slane %v11036_v58, 2 }
 0x46f   : > { %8242 = vmatmul.mubr.msk.f32.gmra.mrb[20].mxu1 %vm225_vm1, %v10916_v32 }
 0x470   : > { %8244 = vmatprep.mubr.msk.f32.mxu1 %vm225_vm1, %v11935_v12 }
 0x473   : > { %8245 = vmatmul.mubr.msk.f32.gmra.mrb[22].mxu1 %vm225_vm1, %v10929_v20  ;;  %v5060_v20 = vrot.slane %v3321_v48, 2  ;;  %v6877_v48 = vld [vmem:[%s11549_s2 + $0x20] sm:$0xf] }
 0x474   : > { %8247 = vmatprep.mubr.msk.f32.mxu1 %vm225_vm1, %v11936_v38  ;;  %v11189_v38 = vsel %vm1178_vm4, %v5057_v22, %v5058_v50 }
 0x477   : > { %8248 = vmatmul.mubr.msk.f32.gmra.mrb[24].mxu1 %vm225_vm1, %v10942_v23 }
 0x478   : > { %8250 = vmatprep.mubr.msk.f32.mxu1 %vm225_vm1, %v10948_v0  ;;  %v11194_v0 = vsel %vm1178_vm4, %v5058_v50, %v5060_v20  ;;  %v11407_v20 = vld [vmem:[%s11551_s4] ss:$0 sm:$0xff] }
 0x47b   : > { %8251 = vmatmul.mubr.msk.f32.gmra.mrb[26].mxu1 %vm225_vm1, %v10955_v37 }
 0x47c   : > { %8253 = vmatprep.mubr.msk.f32.mxu1 %vm225_vm1, %v10961_v62 }
 0x47f   : > { %8254 = vmatmul.mubr.msk.f32.gmra.mrb[28].mxu1 %vm225_vm1, %v10966_v63 }
 0x480   : > { %8256 = vmatprep.mubr.msk.f32.mxu1 %vm225_vm1, %v11189_v38 }
 0x483   : > { %8257 = vmatmul.mubr.msk.f32.gmra.mrb[30].mxu1 %vm225_vm1, %v11194_v0 }
 0x484   : > { %8261 = vmatprep.mubr.msk.f32.mxu1 %vm225_vm1, %v10361_v2  ;;  %v11261_v2 = vld [vmem:[#allocation2 + $0x198] sm:$0xff] }
 0x487   : > { %8262 = vmatmul.mubr.msk.f32.vlgmr.msra.gmra.mrb[0].mxu1 %vm225_vm1, %v10363_v11  ;;  %v11267_v11 = vld [vmem:[#allocation2 + $0x1a0] sm:$0xff] }
 0x488   : > { %8310 = vmatpush3.msk.msra.mxu1 %vm494_vm0, %v6843_v24  ;;  %8264 = vmatprep.mubr.msk.f32.mxu1 %vm225_vm1, %v10373_v29  ;;  %v11937_v29 = vld [vmem:[#allocation44_spill] sm:$0xff] }
 0x489   : > { %8359 = vmatprep.subr.msk.mxu1 %vm494_vm0, %v6877_v48  ;;  %v11962_v24 = vld [vmem:[#allocation64_spill] sm:$0xff] }
 0x48b   : > { %8265 = vmatmul.mubr.msk.f32.gmra.mrb[2].mxu1 %vm225_vm1, %v10375_v28  ;;  %v11938_v28 = vld [vmem:[#allocation57_spill] sm:$0xff] }
 0x48c   : > { %8267 = vmatprep.mubr.msk.f32.mxu1 %vm225_vm1, %v10385_v15  ;;  %v11939_v15 = vld [vmem:[#allocation58_spill] sm:$0xff] }
 0x48f   : > { %8268 = vmatmul.mubr.msk.f32.gmra.mrb[4].mxu1 %vm225_vm1, %v10387_v5  ;;  %v11940_v5 = vld [vmem:[#allocation59_spill] sm:$0xff] }
 0x490   : > { %8270 = vmatprep.mubr.msk.f32.mxu1 %vm225_vm1, %v10397_v34  ;;  %v11941_v34 = vld [vmem:[#allocation66_spill] sm:$0xff] }
 0x493   : > { %8271 = vmatmul.mubr.msk.f32.gmra.mrb[6].mxu1 %vm225_vm1, %v10399_v35  ;;  %v11942_v35 = vld [vmem:[#allocation71_spill] sm:$0xff] }
 0x494   : > { %8273 = vmatprep.mubr.msk.f32.mxu1 %vm225_vm1, %v10409_v18  ;;  %v11943_v18 = vld [vmem:[#allocation34_spill] sm:$0xff] }
 0x497   : > { %8274 = vmatmul.mubr.msk.f32.gmra.mrb[8].mxu1 %vm225_vm1, %v10411_v7  ;;  %v11944_v7 = vld [vmem:[#allocation35_spill] sm:$0xff] }
 0x498   : > { %8276 = vmatprep.mubr.msk.f32.mxu1 %vm225_vm1, %v10421_v46  ;;  %v11945_v46 = vld [vmem:[#allocation36_spill] sm:$0xff] }
 0x49b   : > { %8277 = vmatmul.mubr.msk.f32.gmra.mrb[10].mxu1 %vm225_vm1, %v10423_v47  ;;  %v11946_v47 = vld [vmem:[#allocation37_spill] sm:$0xff] }
 0x49c   : > { %8279 = vmatprep.mubr.msk.f32.mxu1 %vm225_vm1, %v10433_v60  ;;  %v11947_v60 = vld [vmem:[#allocation38_spill] sm:$0xff] }
 0x49f   : > { %8280 = vmatmul.mubr.msk.f32.gmra.mrb[12].mxu1 %vm225_vm1, %v10435_v61  ;;  %v11948_v61 = vld [vmem:[#allocation39_spill] sm:$0xff] }
 0x4a0   : > { %8282 = vmatprep.mubr.msk.f32.mxu1 %vm225_vm1, %v10445_v41  ;;  %v11949_v41 = vld [vmem:[#allocation40_spill] sm:$0xff] }
 0x4a3   : > { %8283 = vmatmul.mubr.msk.f32.gmra.mrb[14].mxu1 %vm225_vm1, %v10447_v9  ;;  %v11950_v9 = vld [vmem:[#allocation41_spill] sm:$0xff] }
 0x4a4   : > { %8285 = vmatprep.mubr.msk.f32.mxu1 %vm225_vm1, %v10457_v21  ;;  %v11951_v21 = vld [vmem:[#allocation43_spill] sm:$0xff] }
 0x4a7   : > { %8286 = vmatmul.mubr.msk.f32.gmra.mrb[16].mxu1 %vm225_vm1, %v10459_v16  ;;  %v11952_v16 = vld [vmem:[#allocation45_spill] sm:$0xff] }
 0x4a8   : > { %8288 = vmatprep.mubr.msk.f32.mxu1 %vm225_vm1, %v10469_v8  ;;  %v11953_v8 = vld [vmem:[#allocation47_spill] sm:$0xff] }
 0x4ab   : > { %8289 = vmatmul.mubr.msk.f32.gmra.mrb[18].mxu1 %vm225_vm1, %v10471_v27  ;;  %v11954_v27 = vld [vmem:[#allocation48_spill] sm:$0xff] }
 0x4ac   : > { %8291 = vmatprep.mubr.msk.f32.mxu1 %vm225_vm1, %v10481_v36  ;;  %v11955_v36 = vld [vmem:[#allocation49_spill] sm:$0xff] }
 0x4af   : > { %8292 = vmatmul.mubr.msk.f32.gmra.mrb[20].mxu1 %vm225_vm1, %v10483_v39  ;;  %v11956_v39 = vld [vmem:[#allocation50_spill] sm:$0xff] }
 0x4b0   : > { %8294 = vmatprep.mubr.msk.f32.mxu1 %vm225_vm1, %v10493_v55  ;;  %v5597_v55 = vrot.slane %v11261_v2, 1 }
 0x4b3   : > { %8295 = vmatmul.mubr.msk.f32.gmra.mrb[22].mxu1 %vm225_vm1, %v10495_v57  ;;  %v5598_v57 = vrot.slane %v11267_v11, 1 }
 0x4b4   : > { %8297 = vmatprep.mubr.msk.f32.mxu1 %vm225_vm1, %v10504_v1  ;;  %v3324_v1 = vld [vmem:[#allocation2 + $0x1a8] sm:$0x3] }
 0x4b7   : > { %8298 = vmatmul.mubr.msk.f32.gmra.mrb[24].mxu1 %vm225_vm1, %v10506_v14  ;;  %v5600_v14 = vrot.slane %v3324_v1, 1 }
 0x4b8   : > { %8300 = vmatprep.mubr.msk.f32.mxu1 %vm225_vm1, %v10514_v53  ;;  %v5599_v53 = vsel %vm771_vm5, %v5597_v55, %v5598_v57 }
 0x4bb   : > { %8301 = vmatmul.mubr.msk.f32.gmra.mrb[26].mxu1 %vm225_vm1, %v10516_v13  ;;  %v5601_v13 = vsel %vm771_vm5, %v5598_v57, %v5600_v14  ;;  %v11976_v14 = vld [vmem:[#allocation12_spill] sm:$0xff] }
 0x4bc   : > { %8303 = vmatprep.mubr.msk.f32.mxu1 %vm225_vm1, %v11036_v58  ;;  %v11968_v58 = vld [vmem:[#allocation4_spill] sm:$0xff] }
 0x4bf   : > { %8304 = vmatmul.mubr.msk.f32.gmra.mrb[28].mxu1 %vm225_vm1, %v11040_v59 }
 0x4c0   : > { %8306 = vmatprep.mubr.msk.f32.mxu1 %vm225_vm1, %v11261_v2 }
 0x4c3   : > { %8307 = vmatmul.mubr.msk.f32.gmra.mrb[30].mxu1 %vm225_vm1, %v11267_v11 }
 0x4c4   : > { %8311 = vmatprep.mubr.msk.f32.mxu1 %vm225_vm1, %v10558_v6  ;;  %v11957_v6 = vld [vmem:[#allocation54_spill] sm:$0xff] }
 0x4c7   : > { %8312 = vmatmul.mubr.msk.f32.vlgmr.msra.gmra.mrb[0].mxu1 %vm225_vm1, %v10567_v52  ;;  %v11958_v52 = vld [vmem:[#allocation60_spill] sm:$0xff] }
 0x4c8   : > { %8360 = vmatpush3.msk.msra.mxu1 %vm494_vm0, %v6877_v48  ;;  %8314 = vmatprep.mubr.msk.f32.mxu1 %vm225_vm1, %v10573_v17  ;;  %v11959_v17 = vld [vmem:[#allocation61_spill] sm:$0xff] }
 0x4cb   : > { %8315 = vmatmul.mubr.msk.f32.gmra.mrb[2].mxu1 %vm225_vm1, %v10582_v42  ;;  %v11960_v42 = vld [vmem:[#allocation62_spill] sm:$0xff] }
 0x4cc   : > { %8317 = vmatprep.mubr.msk.f32.mxu1 %vm225_vm1, %v11903_v4 }
 0x4cf   : > { %8318 = vmatmul.mubr.msk.f32.gmra.mrb[4].mxu1 %vm225_vm1, %v11937_v29 }
 0x4d0   : > { %8320 = vmatprep.mubr.msk.f32.mxu1 %vm225_vm1, %v11938_v28 }
 0x4d3   : > { %8321 = vmatmul.mubr.msk.f32.gmra.mrb[6].mxu1 %vm225_vm1, %v11939_v15 }
 0x4d4   : > { %8323 = vmatprep.mubr.msk.f32.mxu1 %vm225_vm1, %v11940_v5  ;;  %v11972_v5 = vld [vmem:[#allocation8_spill] sm:$0xff] }
 0x4d7   : > { %8324 = vmatmul.mubr.msk.f32.gmra.mrb[8].mxu1 %vm225_vm1, %v11941_v34 }
 0x4d8   : > { %8326 = vmatprep.mubr.msk.f32.mxu1 %vm225_vm1, %v11942_v35  ;;  %v11973_v35 = vld [vmem:[#allocation7_spill] sm:$0xff] }
 0x4db   : > { %8327 = vmatmul.mubr.msk.f32.gmra.mrb[10].mxu1 %vm225_vm1, %v11943_v18 }
 0x4dc   : > { %8329 = vmatprep.mubr.msk.f32.mxu1 %vm225_vm1, %v11944_v7 }
 0x4df   : > { %8330 = vmatmul.mubr.msk.f32.gmra.mrb[12].mxu1 %vm225_vm1, %v11945_v46 }
 0x4e0   : > { %8332 = vmatprep.mubr.msk.f32.mxu1 %vm225_vm1, %v11946_v47 }
 0x4e3   : > { %8333 = vmatmul.mubr.msk.f32.gmra.mrb[14].mxu1 %vm225_vm1, %v11947_v60 }
 0x4e4   : > { %8335 = vmatprep.mubr.msk.f32.mxu1 %vm225_vm1, %v11948_v61 }
 0x4e7   : > { %8336 = vmatmul.mubr.msk.f32.gmra.mrb[16].mxu1 %vm225_vm1, %v11949_v41 }
 0x4e8   : > { %8338 = vmatprep.mubr.msk.f32.mxu1 %vm225_vm1, %v11950_v9  ;;  %v11974_v9 = vld [vmem:[#allocation10_spill] sm:$0xff] }
 0x4eb   : > { %8339 = vmatmul.mubr.msk.f32.gmra.mrb[18].mxu1 %vm225_vm1, %v11918_v51 }
 0x4ec   : > { %8341 = vmatprep.mubr.msk.f32.mxu1 %vm225_vm1, %v11951_v21 }
 0x4ef   : > { %8342 = vmatmul.mubr.msk.f32.gmra.mrb[20].mxu1 %vm225_vm1, %v11952_v16  ;;  %v11975_v16 = vld [vmem:[#allocation9_spill] sm:$0xff] }
 0x4f0   : > { %8344 = vmatprep.mubr.msk.f32.mxu1 %vm225_vm1, %v11921_v19 }
 0x4f3   : > { %8345 = vmatmul.mubr.msk.f32.gmra.mrb[22].mxu1 %vm225_vm1, %v11953_v8 }
 0x4f4   : > { %8347 = vmatprep.mubr.msk.f32.mxu1 %vm225_vm1, %v11954_v27 }
 0x4f7   : > { %8348 = vmatmul.mubr.msk.f32.gmra.mrb[24].mxu1 %vm225_vm1, %v11955_v36 }
 0x4f8   : > { %8350 = vmatprep.mubr.msk.f32.mxu1 %vm225_vm1, %v11956_v39 }
 0x4fb   : > { %8351 = vmatmul.mubr.msk.f32.gmra.mrb[26].mxu1 %vm225_vm1, %v10758_v30  ;;  %v11961_v30 = vld [vmem:[#allocation63_spill] sm:$0xff] }
 0x4fc   : > { %8353 = vmatprep.mubr.msk.f32.mxu1 %vm225_vm1, %v11112_v49 }
 0x4ff   : > { %8354 = vmatmul.mubr.msk.f32.gmra.mrb[28].mxu1 %vm225_vm1, %v11117_v43 }
 0x500   : > { %8356 = vmatprep.mubr.msk.f32.mxu1 %vm225_vm1, %v5599_v53 }
 0x503   : > { %8357 = vmatmul.mubr.msk.f32.gmra.mrb[30].mxu1 %vm225_vm1, %v5601_v13  ;;  %v11977_v13 = vld [vmem:[#allocation11_spill] sm:$0xff] }
 0x504   : > { %8361 = vmatprep.mubr.msk.f32.mxu1 %vm225_vm1, %v11925_v26 }
 0x507   : > { %8362 = vmatmul.mubr.msk.f32.vlgmr.msra.gmra.mrb[0].mxu1 %vm225_vm1, %v10799_v31  ;;  %v11963_v31 = vld [vmem:[#allocation67_spill] sm:$0xff] }
 0x508   : > { %8364 = vmatprep.mubr.msk.f32.mxu1 %vm225_vm1, %v11926_v45 }
 0x50b   : > { %8365 = vmatmul.mubr.msk.f32.gmra.mrb[2].mxu1 %vm225_vm1, %v10812_v40  ;;  %v11964_v40 = vld [vmem:[#allocation68_spill] sm:$0xff] }
 0x50c   : > { %8367 = vmatprep.mubr.msk.f32.mxu1 %vm225_vm1, %v11957_v6 }
 0x50f   : > { %8368 = vmatmul.mubr.msk.f32.gmra.mrb[4].mxu1 %vm225_vm1, %v10825_v44  ;;  %v11965_v44 = vld [vmem:[#allocation70_spill] sm:$0xff] }
 0x510   : > { %8370 = vmatprep.mubr.msk.f32.mxu1 %vm225_vm1, %v11958_v52 }
 0x513   : > { %8371 = vmatmul.mubr.msk.f32.gmra.mrb[6].mxu1 %vm225_vm1, %v10838_v3  ;;  %v11966_v3 = vld [vmem:[#allocation72_spill] sm:$0xff] }
 0x514   : > { %8373 = vmatprep.mubr.msk.f32.mxu1 %vm225_vm1, %v11959_v17 }
 0x517   : > { %8374 = vmatmul.mubr.msk.f32.gmra.mrb[8].mxu1 %vm225_vm1, %v10851_v33  ;;  %v11967_v33 = vld [vmem:[#allocation73_spill] sm:$0xff] }
 0x518   : > { %8376 = vmatprep.mubr.msk.f32.mxu1 %vm225_vm1, %v11960_v42 }
 0x51b   : > { %8377 = vmatmul.mubr.msk.f32.gmra.mrb[10].mxu1 %vm225_vm1, %v10864_v54  ;;  %v5868_v54 = vrot.slane %v11261_v2, 2 }
 0x51c   : > { %8379 = vmatprep.mubr.msk.f32.mxu1 %vm225_vm1, %v11961_v30 }
 0x51f   : > { %8380 = vmatmul.mubr.msk.f32.gmra.mrb[12].mxu1 %vm225_vm1, %v10877_v56  ;;  %v5869_v56 = vrot.slane %v11267_v11, 2 }
 0x520   : > { %8382 = vmatprep.mubr.msk.f32.mxu1 %vm225_vm1, %v11962_v24 }
 0x521   : > { %v5870_v50 = vsel %vm1178_vm4, %v5868_v54, %v5869_v56 }
 0x523   : > { %8383 = vmatmul.mubr.msk.f32.gmra.mrb[14].mxu1 %vm225_vm1, %v10890_v25  ;;  %v5871_v25 = vrot.slane %v3324_v1, 2 }
 0x524   : > { %8385 = vmatprep.mubr.msk.f32.mxu1 %vm225_vm1, %v11933_v10  ;;  %v11971_v10 = vld [vmem:[#allocation5_spill] sm:$0xff] }
 0x527   : > { %8386 = vmatmul.mubr.msk.f32.gmra.mrb[16].mxu1 %vm225_vm1, %v11963_v31 }
 0x528   : > { %8388 = vmatprep.mubr.msk.f32.mxu1 %vm225_vm1, %v11964_v40  ;;  %v11978_v40 = vld [vmem:[#allocation14_spill] sm:$0xff] }
 0x52b   : > { %8389 = vmatmul.mubr.msk.f32.gmra.mrb[18].mxu1 %vm225_vm1, %v10916_v32  ;;  %v5872_v32 = vsel %vm1178_vm4, %v5869_v56, %v5871_v25 }
 0x52c   : > { %8391 = vmatprep.mubr.msk.f32.mxu1 %vm225_vm1, %v11935_v12  ;;  %v11970_v12 = vld [vmem:[#allocation6_spill] sm:$0xff] }
 0x52f   : > { %8392 = vmatmul.mubr.msk.f32.gmra.mrb[20].mxu1 %vm225_vm1, %v11965_v44 }
 0x530   : > { %8394 = vmatprep.mubr.msk.f32.mxu1 %vm225_vm1, %v11966_v3  ;;  %v11979_v3 = vld [vmem:[#allocation13_spill] sm:$0xff] }
 0x533   : > { %8395 = vmatmul.mubr.msk.f32.gmra.mrb[22].mxu1 %vm225_vm1, %v10942_v23 }
 0x534   : > { %8397 = vmatprep.mubr.msk.f32.mxu1 %vm225_vm1, %v11967_v33 }
 0x537   : > { %8398 = vmatmul.mubr.msk.f32.gmra.mrb[24].mxu1 %vm225_vm1, %v10955_v37 }
 0x538   : > { %8400 = vmatprep.mubr.msk.f32.mxu1 %vm225_vm1, %v10961_v62 }
 0x53b   : > { %8401 = vmatmul.mubr.msk.f32.gmra.mrb[26].mxu1 %vm225_vm1, %v10966_v63 }
 0x53c   : > { %8403 = vmatprep.mubr.msk.f32.mxu1 %vm225_vm1, %v11189_v38 }
 0x53f   : > { %8404 = vmatmul.mubr.msk.f32.gmra.mrb[28].mxu1 %vm225_vm1, %v11194_v0  ;;  %v11969_v0 = vld [vmem:[#allocation3_spill] sm:$0xff] }
 0x540   : > { %8406 = vmatprep.mubr.msk.f32.mxu1 %vm225_vm1, %v5870_v50 }
 0x543   : > { %8407 = vmatmul.mubr.msk.f32.gmra.mrb[30].mxu1 %vm225_vm1, %v5872_v32 }
 0x5da   : > { %v8363_v23 = vpop.f32.mrb[0].mxu1 }
 0x5db   : > { %v8441_v37 = vadd.f32 %v8363_v23, %v11407_v20  ;;  %v5948_v62 = vpop.f32.mrb[1].mxu1 }
 0x5dc   : > { %v8442_v63 = vadd.f32 %v11407_v20, %v5948_v62 }
 0x5dd   : > { %v6140_v59 = vadd.f32 %v8441_v37, %v11968_v58  ;;  %v11980_v37 = vld [vmem:[#allocation16_spill] sm:$0xff] }
 0x5de   : > { %v6139_v4 = vadd.f32 %v8442_v63, %v11969_v0  ;;  %v8366_v19 = vpop.f32.mrb[2].mxu1  ;;  %v11981_v63 = vld [vmem:[#allocation15_spill] sm:$0xff] }
 0x5df   : > { %v6172_v49 = vmax.f32 %v6140_v59, 0.0  ;;  %v8443_v43 = vadd.f32 %v8366_v19, %v11407_v20  ;;  %v5958_v51 = vpop.f32.mrb[3].mxu1 }
 0x5e0   : > { %v6171_v26 = vmax.f32 %v6139_v4, 0.0  ;;  %v8444_v45 = vadd.f32 %v11407_v20, %v5958_v51  ;;  %v11982_v51 = vld [vmem:[#allocation18_spill] sm:$0xff] }
 0x5e1   : > { %6204 = vst.msk [vmem:[%s11417_s21 + $0x8] sm:$0xff] %vm225_vm1, %v6172_v49  ;;  %v6142_v38 = vadd.f32 %v8443_v43, %v11970_v12 }
 0x5e2   : > { %6203 = vst.msk [vmem:[%s11417_s21] sm:$0xff] %vm225_vm1, %v6171_v26  ;;  %v6141_v22 = vadd.f32 %v8444_v45, %v11971_v10  ;;  %v8369_v48 = vpop.f32.mrb[4].mxu1  ;;  %v11983_v45 = vld [vmem:[#allocation17_spill] sm:$0xff] }
 0x5e3   : > { %v6174_v2 = vmax.f32 %v6142_v38, 0.0  ;;  %v8445_v11 = vadd.f32 %v8369_v48, %v11407_v20  ;;  %v5968_v29 = vpop.f32.mrb[5].mxu1 }
 0x5e4   : > { %v6173_v28 = vmax.f32 %v6141_v22, 0.0  ;;  %v8446_v15 = vadd.f32 %v11407_v20, %v5968_v29  ;;  %v11984_v29 = vld [vmem:[#allocation20_spill] sm:$0xff] }
 0x5e5   : > { %6206 = vst.msk [vmem:[%s11417_s21 + $0x18] sm:$0xff] %vm225_vm1, %v6174_v2  ;;  %v6144_v34 = vadd.f32 %v8445_v11, %v11972_v5 }
 0x5e6   : > { %6205 = vst.msk [vmem:[%s11417_s21 + $0x10] sm:$0xff] %vm225_vm1, %v6173_v28  ;;  %v6143_v18 = vadd.f32 %v8446_v15, %v11973_v35  ;;  %v8372_v7 = vpop.f32.mrb[6].mxu1  ;;  %v11985_v15 = vld [vmem:[#allocation19_spill] sm:$0xff] }
 0x5e7   : > { %v6176_v46 = vmax.f32 %v6144_v34, 0.0  ;;  %v8447_v47 = vadd.f32 %v8372_v7, %v11407_v20  ;;  %v5978_v60 = vpop.f32.mrb[7].mxu1 }
 0x5e8   : > { %v6175_v61 = vmax.f32 %v6143_v18, 0.0  ;;  %v8448_v41 = vadd.f32 %v11407_v20, %v5978_v60  ;;  %v11986_v60 = vld [vmem:[#allocation22_spill] sm:$0xff] }
 0x5e9   : > { %6208 = vst.msk [vmem:[%s11417_s21 + $0x28] sm:$0xff] %vm225_vm1, %v6176_v46  ;;  %v6146_v21 = vadd.f32 %v8447_v47, %v11974_v9 }
 0x5ea   : > { %6207 = vst.msk [vmem:[%s11417_s21 + $0x20] sm:$0xff] %vm225_vm1, %v6175_v61  ;;  %v6145_v8 = vadd.f32 %v8448_v41, %v11975_v16  ;;  %v8375_v27 = vpop.f32.mrb[8].mxu1  ;;  %v11987_v41 = vld [vmem:[#allocation21_spill] sm:$0xff] }
 0x5eb   : > { %v6178_v36 = vmax.f32 %v6146_v21, 0.0  ;;  %v8449_v39 = vadd.f32 %v8375_v27, %v11407_v20  ;;  %v5988_v55 = vpop.f32.mrb[9].mxu1 }
 0x5ec   : > { %v6177_v57 = vmax.f32 %v6145_v8, 0.0  ;;  %v8450_v1 = vadd.f32 %v11407_v20, %v5988_v55  ;;  %v11988_v55 = vld [vmem:[#allocation24_spill] sm:$0xff] }
 0x5ed   : > { %6210 = vst.msk [vmem:[%s11417_s21 + $0x38] sm:$0xff] %vm225_vm1, %v6178_v36  ;;  %v6148_v53 = vadd.f32 %v8449_v39, %v11976_v14 }
 0x5ee   : > { %6209 = vst.msk [vmem:[%s11417_s21 + $0x30] sm:$0xff] %vm225_vm1, %v6177_v57  ;;  %v6147_v6 = vadd.f32 %v8450_v1, %v11977_v13  ;;  %v8378_v52 = vpop.f32.mrb[10].mxu1  ;;  %v11989_v1 = vld [vmem:[#allocation23_spill] sm:$0xff] }
 0x5ef   : > { %v6180_v17 = vmax.f32 %v6148_v53, 0.0  ;;  %v8451_v42 = vadd.f32 %v8378_v52, %v11407_v20  ;;  %v5998_v30 = vpop.f32.mrb[11].mxu1 }
 0x5f0   : > { %v6179_v24 = vmax.f32 %v6147_v6, 0.0  ;;  %v8452_v31 = vadd.f32 %v11407_v20, %v5998_v30  ;;  %v11990_v30 = vld [vmem:[#allocation26_spill] sm:$0xff] }
 0x5f1   : > { %6212 = vst.msk [vmem:[%s11417_s21 + $0x48] sm:$0xff] %vm225_vm1, %v6180_v17  ;;  %v6150_v44 = vadd.f32 %v8451_v42, %v11978_v40 }
 0x5f2   : > { %6211 = vst.msk [vmem:[%s11417_s21 + $0x40] sm:$0xff] %vm225_vm1, %v6179_v24  ;;  %v6149_v33 = vadd.f32 %v8452_v31, %v11979_v3  ;;  %v8381_v54 = vpop.f32.mrb[12].mxu1  ;;  %v11991_v31 = vld [vmem:[#allocation25_spill] sm:$0xff] }
 0x5f3   : > { %v6182_v56 = vmax.f32 %v6150_v44, 0.0  ;;  %v8453_v25 = vadd.f32 %v8381_v54, %v11407_v20  ;;  %v6008_v50 = vpop.f32.mrb[13].mxu1 }
 0x5f4   : > { %v6181_v32 = vmax.f32 %v6149_v33, 0.0  ;;  %v8454_v23 = vadd.f32 %v11407_v20, %v6008_v50  ;;  %v11992_v50 = vld [vmem:[#allocation28_spill] sm:$0xff] }
 0x5f5   : > { %6214 = vst.msk [vmem:[%s11417_s21 + $0x58] sm:$0xff] %vm225_vm1, %v6182_v56  ;;  %v6152_v62 = vadd.f32 %v8453_v25, %v11980_v37 }
 0x5f6   : > { %6213 = vst.msk [vmem:[%s11417_s21 + $0x50] sm:$0xff] %vm225_vm1, %v6181_v32  ;;  %v6151_v58 = vadd.f32 %v8454_v23, %v11981_v63  ;;  %v8384_v59 = vpop.f32.mrb[14].mxu1  ;;  %v11993_v23 = vld [vmem:[#allocation27_spill] sm:$0xff] }
 0x5f7   : > { %v6184_v0 = vmax.f32 %v6152_v62, 0.0  ;;  %v8455_v4 = vadd.f32 %v8384_v59, %v11407_v20  ;;  %v6018_v19 = vpop.f32.mrb[15].mxu1 }
 0x5f8   : > { %v6183_v49 = vmax.f32 %v6151_v58, 0.0  ;;  %v8456_v43 = vadd.f32 %v11407_v20, %v6018_v19  ;;  %v11994_v19 = vld [vmem:[#allocation30_spill] sm:$0xff] }
 0x5f9   : > { %6216 = vst.msk [vmem:[%s11417_s21 + $0x68] sm:$0xff] %vm225_vm1, %v6184_v0  ;;  %v6154_v26 = vadd.f32 %v8455_v4, %v11982_v51 }
 0x5fa   : > { %6215 = vst.msk [vmem:[%s11417_s21 + $0x60] sm:$0xff] %vm225_vm1, %v6183_v49  ;;  %v6153_v12 = vadd.f32 %v8456_v43, %v11983_v45  ;;  %v8387_v38 = vpop.f32.mrb[16].mxu1  ;;  %v11995_v43 = vld [vmem:[#allocation29_spill] sm:$0xff] }
 0x5fb   : > { %v6186_v10 = vmax.f32 %v6154_v26, 0.0  ;;  %v8457_v22 = vadd.f32 %v8387_v38, %v11407_v20  ;;  %v6028_v48 = vpop.f32.mrb[17].mxu1 }
 0x5fc   : > { %v6185_v2 = vmax.f32 %v6153_v12, 0.0  ;;  %v8458_v11 = vadd.f32 %v11407_v20, %v6028_v48  ;;  %v11996_v48 = vld [vmem:[#allocation32_spill] sm:$0xff] }
 0x5fd   : > { %6218 = vst.msk [vmem:[%s11417_s21 + $0x78] sm:$0xff] %vm225_vm1, %v6186_v10  ;;  %v6156_v28 = vadd.f32 %v8457_v22, %v11984_v29 }
 0x5fe   : > { %6217 = vst.msk [vmem:[%s11417_s21 + $0x70] sm:$0xff] %vm225_vm1, %v6185_v2  ;;  %v6155_v5 = vadd.f32 %v8458_v11, %v11985_v15  ;;  %v8390_v34 = vpop.f32.mrb[18].mxu1  ;;  %v11997_v11 = vld [vmem:[#allocation31_spill] sm:$0xff] }
 0x5ff   : > { %v6188_v35 = vmax.f32 %v6156_v28, 0.0  ;;  %v8459_v18 = vadd.f32 %v8390_v34, %v11407_v20  ;;  %v6038_v7 = vpop.f32.mrb[19].mxu1 }
 0x600   : > { %v6187_v46 = vmax.f32 %v6155_v5, 0.0  ;;  %v8460_v47 = vadd.f32 %v11407_v20, %v6038_v7  ;;  %v11998_v7 = vld [vmem:[#allocation56_spill] sm:$0xff] }
 0x601   : > { %6220 = vst.msk [vmem:[%s11417_s21 + $0x88] sm:$0xff] %vm225_vm1, %v6188_v35  ;;  %v6158_v61 = vadd.f32 %v8459_v18, %v11986_v60 }
 0x602   : > { %6219 = vst.msk [vmem:[%s11417_s21 + $0x80] sm:$0xff] %vm225_vm1, %v6187_v46  ;;  %v6157_v9 = vadd.f32 %v8460_v47, %v11987_v41  ;;  %v8393_v21 = vpop.f32.mrb[20].mxu1  ;;  %v11999_v47 = vld [vmem:[#allocation55_spill] sm:$0xff] }
 0x603   : > { %v6190_v16 = vmax.f32 %v6158_v61, 0.0  ;;  %v8461_v8 = vadd.f32 %v8393_v21, %v11407_v20  ;;  %v6048_v27 = vpop.f32.mrb[21].mxu1 }
 0x604   : > { %v6189_v36 = vmax.f32 %v6157_v9, 0.0  ;;  %v8462_v39 = vadd.f32 %v11407_v20, %v6048_v27 }
 0x605   : > { %6222 = vst.msk [vmem:[%s11417_s21 + $0x98] sm:$0xff] %vm225_vm1, %v6190_v16  ;;  %v6160_v57 = vadd.f32 %v8461_v8, %v11988_v55 }
 0x606   : > { %6221 = vst.msk [vmem:[%s11417_s21 + $0x90] sm:$0xff] %vm225_vm1, %v6189_v36  ;;  %v6159_v14 = vadd.f32 %v8462_v39, %v11989_v1  ;;  %v8396_v53 = vpop.f32.mrb[22].mxu1 }
 0x607   : > { %v6192_v13 = vmax.f32 %v6160_v57, 0.0  ;;  %v8463_v6 = vadd.f32 %v8396_v53, %v11407_v20  ;;  %v6058_v52 = vpop.f32.mrb[23].mxu1 }
 0x608   : > { %v6191_v17 = vmax.f32 %v6159_v14, 0.0  ;;  %v8464_v42 = vadd.f32 %v11407_v20, %v6058_v52 }
 0x609   : > { %6224 = vst.msk [vmem:[%s11417_s21 + $0xa8] sm:$0xff] %vm225_vm1, %v6192_v13  ;;  %v6162_v24 = vadd.f32 %v8463_v6, %v11990_v30 }
 0x60a   : > { %6223 = vst.msk [vmem:[%s11417_s21 + $0xa0] sm:$0xff] %vm225_vm1, %v6191_v17  ;;  %v6161_v40 = vadd.f32 %v8464_v42, %v11991_v31  ;;  %v8399_v44 = vpop.f32.mrb[24].mxu1 }
 0x60b   : > { %v6194_v3 = vmax.f32 %v6162_v24, 0.0  ;;  %v8465_v33 = vadd.f32 %v8399_v44, %v11407_v20  ;;  %v6068_v54 = vpop.f32.mrb[25].mxu1 }
 0x60c   : > { %v6193_v56 = vmax.f32 %v6161_v40, 0.0  ;;  %v8466_v25 = vadd.f32 %v11407_v20, %v6068_v54 }
 0x60d   : > { %6226 = vst.msk [vmem:[%s11417_s21 + $0xb8] sm:$0xff] %vm225_vm1, %v6194_v3  ;;  %v6164_v32 = vadd.f32 %v8465_v33, %v11992_v50 }
 0x60e   : > { %6225 = vst.msk [vmem:[%s11417_s21 + $0xb0] sm:$0xff] %vm225_vm1, %v6193_v56  ;;  %v6163_v37 = vadd.f32 %v8466_v25, %v11993_v23  ;;  %v8402_v62 = vpop.f32.mrb[26].mxu1 }
 0x60f   : > { %v6196_v63 = vmax.f32 %v6164_v32, 0.0  ;;  %v8467_v58 = vadd.f32 %v8402_v62, %v11407_v20  ;;  %v6078_v59 = vpop.f32.mrb[27].mxu1 }
 0x610   : > { %v6195_v0 = vmax.f32 %v6163_v37, 0.0  ;;  %v8468_v4 = vadd.f32 %v11407_v20, %v6078_v59 }
 0x611   : > { %6228 = vst.msk [vmem:[%s11417_s21 + $0xc8] sm:$0xff] %vm225_vm1, %v6196_v63  ;;  %v6166_v49 = vadd.f32 %v8467_v58, %v11994_v19 }
 0x612   : > { %6227 = vst.msk [vmem:[%s11417_s21 + $0xc0] sm:$0xff] %vm225_vm1, %v6195_v0  ;;  %v6165_v51 = vadd.f32 %v8468_v4, %v11995_v43  ;;  %v8405_v26 = vpop.f32.mrb[28].mxu1 }
 0x613   : > { %v6198_v45 = vmax.f32 %v6166_v49, 0.0  ;;  %v8469_v12 = vadd.f32 %v8405_v26, %v11407_v20  ;;  %v6088_v38 = vpop.f32.mrb[29].mxu1 }
 0x614   : > { %v6197_v10 = vmax.f32 %v6165_v51, 0.0  ;;  %v8470_v22 = vadd.f32 %v11407_v20, %v6088_v38 }
 0x615   : > { %6230 = vst.msk [vmem:[%s11417_s21 + $0xd8] sm:$0xff] %vm225_vm1, %v6198_v45  ;;  %v6168_v2 = vadd.f32 %v8469_v12, %v11996_v48 }
 0x616   : > { %6229 = vst.msk [vmem:[%s11417_s21 + $0xd0] sm:$0xff] %vm225_vm1, %v6197_v10  ;;  %v6167_v29 = vadd.f32 %v8470_v22, %v11997_v11  ;;  %v8408_v28 = vpop.f32.mrb[30].mxu1 }
 0x617   : > { %v6200_v15 = vmax.f32 %v6168_v2, 0.0  ;;  %v8471_v5 = vadd.f32 %v8408_v28, %v11407_v20  ;;  %v6098_v34 = vpop.f32.mrb[31].mxu1 }
 0x618   : > { %v6199_v35 = vmax.f32 %v6167_v29, 0.0  ;;  %v8472_v18 = vadd.f32 %v11407_v20, %v6098_v34 }
 0x619   : > { %6232 = vst.msk [vmem:[%s11417_s21 + $0xe8] sm:$0xff] %vm225_vm1, %v6200_v15  ;;  %v6170_v46 = vadd.f32 %v8471_v5, %v11998_v7 }
 0x61a   : > { %6231 = vst.msk [vmem:[%s11417_s21 + $0xe0] sm:$0xff] %vm225_vm1, %v6199_v35  ;;  %v6169_v60 = vadd.f32 %v8472_v18, %v11999_v47 }
 0x61b   : > { %v6202_v61 = vmax.f32 %v6170_v46, 0.0 }
 0x61c   : > { %v6201_v41 = vmax.f32 %v6169_v60, 0.0 }
 0x61d   : > { %6234 = vst.msk [vmem:[%s11417_s21 + $0xf8] sm:$0xff] %vm225_vm1, %v6202_v61 }
 0x61e   : > { %6233 = vst.msk [vmem:[%s11417_s21 + $0xf0] sm:$0xff] %vm225_vm1, %v6201_v41 }
 0x61f PF: > { %s15_s18 = sadd.s32 1, %s9000_s18  }
 0x620   : > { %p12_p4 = scmp.ge.s32.totalorder %s15_s18, 4  }
 0x622   :  { %14 = sbr.rel (!%p12_p4) target bundleno = 1 (0x1), region = 88 }

</bundles_post_ra>
